<compile_context>
chip_gen: v7x
topology: tpu7x:2x2x1
jax: 0.10.0
libtpu: 0.0.40
codegen_flags: <defaults>
</compile_context>

<pallas_src>
import jax
import jax.numpy as jnp
from jax.experimental import pallas as pl
from jax.experimental.pallas import tpu as pltpu

LANE = 128      # channel padding target (lane width -> lane-dense stores / full MXU width)
TILE_N = 128    # node tile (users / items). Raise to 256/512 on big graphs; re-derive for
                # v7x's 64 MiB VMEM (these 128x128 tiles use < 1 MiB, far under any limit).


# ---------------------------------------------------------------------------
# padding helpers (zero padding keeps the math exact: padded lanes stay zero)
# ---------------------------------------------------------------------------
def _pad_last(x, mult=LANE):
    pad = (-x.shape[-1]) % mult
    if pad:
        x = jnp.pad(x, [(0, 0)] * (x.ndim - 1) + [(0, pad)])
    return x


def _pad_first(x, mult=LANE):
    pad = (-x.shape[0]) % mult
    if pad:
        x = jnp.pad(x, [(0, pad)] + [(0, 0)] * (x.ndim - 1))
    return x


# ---------------------------------------------------------------------------
# Kernel A: fused per-user-tile stage.
#   hu    = x_user @ Wproj_user + b           (bf16 out, conv source messages)
#   a_src = att_src · hu   (lane-major [1,TU], hoisted once per user tile)
#   uout  = relu(x_user @ Wprojuser + b)      (projuser1 / projuser2 branch)
# ---------------------------------------------------------------------------
def user_stage_kernel(xu_ref, wpu_ref, bpu_ref, asrc_ref, wproj_ref, bproj_ref,
                      hu_ref, arow_ref, uout_ref):
    xu = xu_ref[...].astype(jnp.bfloat16)

    hu = jnp.dot(xu, wpu_ref[...].astype(jnp.bfloat16),
                 preferred_element_type=jnp.float32) + bpu_ref[...]
    hu_ref[...] = hu.astype(jnp.bfloat16)

    # one small transpose per user tile (reused by every item tile downstream)
    arow_ref[...] = jnp.dot(asrc_ref[...], hu.T, preferred_element_type=jnp.float32)

    uout_ref[...] = jnp.maximum(
        jnp.dot(xu, wproj_ref[...].astype(jnp.bfloat16),
                preferred_element_type=jnp.float32) + bproj_ref[...], 0.0)


def user_stage(x_user, conv_p, proj_p, *, tile=TILE_N):
    nu, din = x_user.shape
    c = conv_p["w_proj_user"].shape[1]
    assert nu % tile == 0 and din % LANE == 0 and c % LANE == 0

    full2 = lambda r, cc: pl.BlockSpec((r, cc), lambda k: (0, 0))

    return pl.pallas_call(
        user_stage_kernel,
        out_shape=(
            jax.ShapeDtypeStruct((nu, c), jnp.bfloat16),   # hu
            jax.ShapeDtypeStruct((1, nu), jnp.float32),    # a_src (lane-major)
            jax.ShapeDtypeStruct((nu, c), jnp.float32),    # relu(projuser(x))
        ),
        grid_spec=pltpu.PrefetchScalarGridSpec(
            num_scalar_prefetch=0,
            grid=(nu // tile,),
            in_specs=[
                pl.BlockSpec((tile, din), lambda k: (k, 0)),
                full2(din, c),   # w_proj_user
                full2(1, c),     # b_proj_user
                full2(1, c),     # att_src
                full2(din, c),   # projuser weight
                full2(1, c),     # projuser bias
            ],
            out_specs=[
                pl.BlockSpec((tile, c), lambda k: (k, 0)),
                pl.BlockSpec((1, tile), lambda k: (0, k)),
                pl.BlockSpec((tile, c), lambda k: (k, 0)),
            ],
        ),
        compiler_params=pltpu.CompilerParams(dimension_semantics=("parallel",)),
    )(x_user, conv_p["w_proj_user"], conv_p["b_proj_user"], conv_p["att_src"],
      proj_p["w"], proj_p["b"])


# ---------------------------------------------------------------------------
# Kernel B: item-side HANConv stage with online (flash-style) masked softmax.
#   grid = (item tiles [parallel], user tiles [arbitrary reduction])
# ---------------------------------------------------------------------------
def item_stage_kernel(xi_ref, wvd_ref, bd_ref, arow_ref, hu_ref, adj_ref,
                      out_ref, adst_s, m_s, l_s, acc_s):
    k = pl.program_id(1)

    @pl.when(k == 0)
    def _init():
        # folded destination attention logit: a_dst = x_item @ (Wpi@att_dst^T) + bpi·att_dst
        adst_s[...] = jnp.sum(xi_ref[...] * wvd_ref[...], axis=-1,
                              keepdims=True) + bd_ref[...]
        m_s[...] = jnp.full_like(m_s, -1e30)
        l_s[...] = jnp.zeros_like(l_s)
        acc_s[...] = jnp.zeros_like(acc_s)

    # edge attention logits only for this (TI, TU) block — never [Ni, Nu]
    logits = adst_s[...] + arow_ref[...]                         # [TI,1] + [1,TU]
    logits = jnp.where(logits >= 0.0, logits, 0.2 * logits)      # leaky_relu(0.2)
    mask = adj_ref[...].astype(jnp.int32) > 0

    masked = jnp.where(mask, logits, -1e30)
    m_new = jnp.maximum(m_s[...], jnp.max(masked, axis=-1, keepdims=True))
    rescale = jnp.exp(m_s[...] - m_new)
    # explicit zero for masked entries is required so edge-less items end up all-zero
    e = jnp.where(mask, jnp.exp(masked - m_new), 0.0)
    l_s[...] = rescale * l_s[...] + jnp.sum(e, axis=-1, keepdims=True)
    acc_s[...] = rescale * acc_s[...] + jnp.dot(
        e.astype(jnp.bfloat16), hu_ref[...], preferred_element_type=jnp.float32)
    m_s[...] = m_new

    @pl.when(k == pl.num_programs(1) - 1)
    def _finalize():
        l = l_s[...]
        inv = pl.reciprocal(jnp.where(l > 0.0, l, 1.0), approx=True)
        out_ref[...] = jnp.maximum(acc_s[...] * inv, 0.0)


def item_stage(x_item, hu, a_row, adj, conv_p, *, ti=TILE_N, tu=TILE_N):
    ni, din = x_item.shape
    nu, c = hu.shape
    assert ni % ti == 0 and nu % tu == 0 and din % LANE == 0 and c % LANE == 0

    return pl.pallas_call(
        item_stage_kernel,
        out_shape=jax.ShapeDtypeStruct((ni, c), jnp.float32),
        grid_spec=pltpu.PrefetchScalarGridSpec(
            num_scalar_prefetch=0,
            grid=(ni // ti, nu // tu),
            in_specs=[
                pl.BlockSpec((ti, din), lambda i, k: (i, 0)),  # x_item (same block across k)
                pl.BlockSpec((1, din), lambda i, k: (0, 0)),   # folded Wpi@att_dst^T
                pl.BlockSpec((1, 1), lambda i, k: (0, 0)),     # folded bias
                pl.BlockSpec((1, tu), lambda i, k: (0, k)),    # a_src row (lane-major)
                pl.BlockSpec((tu, c), lambda i, k: (k, 0)),    # hu (bf16)
                pl.BlockSpec((ti, tu), lambda i, k: (i, k)),   # adjacency (int8)
            ],
            out_specs=pl.BlockSpec((ti, c), lambda i, k: (i, 0)),
            scratch_shapes=[
                pltpu.VMEM((ti, 1), jnp.float32),   # a_dst
                pltpu.VMEM((ti, 1), jnp.float32),   # running max
                pltpu.VMEM((ti, 1), jnp.float32),   # running denom
                pltpu.VMEM((ti, c), jnp.float32),   # accumulator
            ],
        ),
        compiler_params=pltpu.CompilerParams(
            dimension_semantics=("parallel", "arbitrary")),
    )(x_item, conv_p["wv_dst"], conv_p["b_dst"], a_row, hu, adj)


# ---------------------------------------------------------------------------
# Kernel C: link-prediction head.
#   In-kernel edge gather via one-hot MXU matmul + folded post Linear (+sum(-1)).
# ---------------------------------------------------------------------------
def predict_kernel(u_ref, it_ref, eu_ref, ei_ref, weff_ref, beff_ref, out_ref):
    ne, nu, ni = eu_ref.shape[0], u_ref.shape[0], it_ref.shape[0]
    onehot_u = (jax.lax.broadcasted_iota(jnp.int32, (ne, nu), 1)
                == eu_ref[...]).astype(jnp.float32)
    onehot_i = (jax.lax.broadcasted_iota(jnp.int32, (ne, ni), 1)
                == ei_ref[...]).astype(jnp.float32)
    h_src = jnp.dot(onehot_u, u_ref[...], preferred_element_type=jnp.float32)
    h_dst = jnp.dot(onehot_i, it_ref[...], preferred_element_type=jnp.float32)
    # sum(post(h), -1) == h @ W.sum(1) + b.sum()
    out_ref[...] = jnp.sum(h_src * h_dst * weff_ref[...], axis=-1,
                           keepdims=True) + beff_ref[...]


def predict(user2, item2, edge_label_index, post_p):
    ne = edge_label_index.shape[1]
    eli_u = edge_label_index[0].reshape(ne, 1).astype(jnp.int32)
    eli_i = edge_label_index[1].reshape(ne, 1).astype(jnp.int32)
    vmem = pl.BlockSpec(memory_space=pltpu.MemorySpace.VMEM)
    out = pl.pallas_call(
        predict_kernel,
        out_shape=jax.ShapeDtypeStruct((ne, 1), jnp.float32),
        in_specs=[vmem] * 6,
        out_specs=vmem,
    )(user2, item2, eli_u, eli_i, post_p["w_eff"], post_p["b_eff"])
    return out[:, 0]


# ---------------------------------------------------------------------------
# Full forward pass.
# ---------------------------------------------------------------------------
def taobao_han_forward(params, x_user, x_item, adj_iu, edge_label_index):
    x_user = _pad_last(x_user)
    x_item = _pad_last(x_item)

    # layer 1: item1 = relu(HANConv_item(x_user, x_item)); user1 = relu(projuser1(x_user))
    hu1, arow1, user1 = user_stage(x_user, params["conv1"], params["projuser1"])
    item1 = item_stage(x_item, hu1, arow1, adj_iu, params["conv1"])

    # layer 2: item2 = relu(HANConv_item(user1, item1)); user2 = relu(projuser2(user1))
    hu2, arow2, user2 = user_stage(user1, params["conv2"], params["projuser2"])
    item2 = item_stage(item1, hu2, arow2, adj_iu, params["conv2"])

    # link-prediction head (gather + folded post Linear + sum, inside one kernel)
    return predict(user2, item2, edge_label_index, params["post"])


# ---------------------------------------------------------------------------
# Parameters: raw (logical shapes) + preparation (folding & lane padding).
# ---------------------------------------------------------------------------
def init_params(key, d_user, d_item, c1, c2):
    ks = jax.random.split(key, 18)
    g = lambda k, s: 0.1 * jax.random.normal(k, s, dtype=jnp.float32)
    return {
        "conv1": {
            "w_proj_user": g(ks[0], (d_user, c1)), "b_proj_user": g(ks[1], (1, c1)),
            "w_proj_item": g(ks[2], (d_item, c1)), "b_proj_item": g(ks[3], (1, c1)),
            "att_src": g(ks[4], (1, c1)), "att_dst": g(ks[5], (1, c1)),
        },
        "projuser1": {"w": g(ks[6], (d_user, c1)), "b": g(ks[7], (1, c1))},
        "conv2": {
            "w_proj_user": g(ks[8], (c1, c2)), "b_proj_user": g(ks[9], (1, c2)),
            "w_proj_item": g(ks[10], (c1, c2)), "b_proj_item": g(ks[11], (1, c2)),
            "att_src": g(ks[12], (1, c2)), "att_dst": g(ks[13], (1, c2)),
        },
        "projuser2": {"w": g(ks[14], (c1, c2)), "b": g(ks[15], (1, c2))},
        "post": {"w": g(ks[16], (c2, 2)), "b": g(ks[17], (1, 2))},
    }
    # TODO(synk): HANConv's semantic attention params (q, k_lin) are omitted — with a
    # single edge type targeting 'item' the semantic softmax is over one element (identity).


def prepare_params(raw):
    def conv(c):
        # exact fold: a_dst = x_item @ (Wpi @ att_dst^T) + bpi·att_dst  (hi unused elsewhere)
        wv_dst = c["att_dst"] @ c["w_proj_item"].T                         # [1, D_item]
        b_dst = jnp.sum(c["b_proj_item"] * c["att_dst"]).reshape(1, 1)
        return {
            "w_proj_user": _pad_last(_pad_first(c["w_proj_user"])),
            "b_proj_user": _pad_last(c["b_proj_user"]),
            "att_src": _pad_last(c["att_src"]),
            "wv_dst": _pad_last(wv_dst),
            "b_dst": b_dst,
        }

    def lin(p):
        return {"w": _pad_last(_pad_first(p["w"])), "b": _pad_last(p["b"])}

    # exact fold of post Linear + sum(dim=-1)
    w_eff = _pad_last(jnp.sum(raw["post"]["w"], axis=1, keepdims=True).T)  # [1, C2pad]
    b_eff = jnp.sum(raw["post"]["b"]).reshape(1, 1)

    return {
        "conv1": conv(raw["conv1"]),
        "conv2": conv(raw["conv2"]),
        "projuser1": lin(raw["projuser1"]),
        "projuser2": lin(raw["projuser2"]),
        "post": {"w_eff": w_eff, "b_eff": b_eff},
    }


if __name__ == "__main__":
    key = jax.random.PRNGKey(0)
    k_param, k_xu, k_xi, k_eli = jax.random.split(key, 4)

    # small but grid-exercising sizes: 2x2 item/user tiles, channels padded 32 -> 128
    N_USER, N_ITEM = 256, 256
    D_USER, D_ITEM = 16, 16
    C1, C2 = 32, 32
    N_EDGES = 128

    params = prepare_params(init_params(k_param, D_USER, D_ITEM, C1, C2))

    x_user = jax.random.normal(k_xu, (N_USER, D_USER), dtype=jnp.float32)
    x_item = jax.random.normal(k_xi, (N_ITEM, D_ITEM), dtype=jnp.float32)

    # deterministic user->item edges as an int8 adjacency mask adj[item, user]
    item_ids = jnp.arange(N_ITEM, dtype=jnp.int32)
    adj_iu = jnp.zeros((N_ITEM, N_USER), dtype=jnp.int8)
    for mult, off in ((1, 0), (3, 1), (7, 5)):
        adj_iu = adj_iu.at[item_ids, (mult * item_ids + off) % N_USER].set(1)
    adj_iu = adj_iu.at[N_ITEM - 4:].set(0)   # a few items with no incoming edges

    # edge_label_index: row 0 = user indices, row 1 = item indices
    edge_label_index = jax.random.randint(k_eli, (2, N_EDGES), 0,
                                          min(N_USER, N_ITEM), dtype=jnp.int32)

    fwd = jax.jit(taobao_han_forward)
    pred = jax.block_until_ready(fwd(params, x_user, x_item, adj_iu, edge_label_index))

    assert pred.shape == (N_EDGES,)
    assert bool(jnp.all(jnp.isfinite(pred)))
    print("KERNEL_OK")
</pallas_src>

<mosaic_0001>
module attributes {stable_mosaic.version = 11 : i64} {
  func.func @user_stage_kernel(%arg0: i32, %arg1: memref<128x128xf32, #tpu.memory_space<vmem>>, %arg2: memref<128x128xf32, #tpu.memory_space<vmem>>, %arg3: memref<1x128xf32, #tpu.memory_space<vmem>>, %arg4: memref<1x128xf32, #tpu.memory_space<vmem>>, %arg5: memref<128x128xf32, #tpu.memory_space<vmem>>, %arg6: memref<1x128xf32, #tpu.memory_space<vmem>>, %arg7: memref<128x128xbf16, #tpu.memory_space<vmem>>, %arg8: memref<1x128xf32, #tpu.memory_space<vmem>>, %arg9: memref<128x128xf32, #tpu.memory_space<vmem>>) attributes {dimension_semantics = [#tpu.dimension_semantics<parallel>], iteration_bounds = array<i64: 2>, scalar_prefetch = 0 : i64, scratch_operands = 0 : i64, tpu.core_type = #tpu.core_type<tc>, window_params = [{transform_indices = @transform_0, window_bounds = array<i64: 128, 128>}, {pipeline_mode = #tpu.pipeline_mode<synchronous>, transform_indices = @transform_1, window_bounds = array<i64: 128, 128>}, {pipeline_mode = #tpu.pipeline_mode<synchronous>, transform_indices = @transform_2, window_bounds = array<i64: 1, 128>}, {pipeline_mode = #tpu.pipeline_mode<synchronous>, transform_indices = @transform_3, window_bounds = array<i64: 1, 128>}, {pipeline_mode = #tpu.pipeline_mode<synchronous>, transform_indices = @transform_4, window_bounds = array<i64: 128, 128>}, {pipeline_mode = #tpu.pipeline_mode<synchronous>, transform_indices = @transform_5, window_bounds = array<i64: 1, 128>}, {transform_indices = @transform_6, window_bounds = array<i64: 128, 128>}, {transform_indices = @transform_7, window_bounds = array<i64: 1, 128>}, {transform_indices = @transform_8, window_bounds = array<i64: 128, 128>}]} {
    %c0 = arith.constant 0 : index
    %c0_0 = arith.constant 0 : index
    %0 = vector.load %arg1[%c0, %c0_0] : memref<128x128xf32, #tpu.memory_space<vmem>>, vector<128x128xf32>
    %1 = arith.truncf %0 : vector<128x128xf32> to vector<128x128xbf16>
    %c0_1 = arith.constant 0 : index
    %c0_2 = arith.constant 0 : index
    %2 = vector.load %arg2[%c0_1, %c0_2] : memref<128x128xf32, #tpu.memory_space<vmem>>, vector<128x128xf32>
    %3 = arith.truncf %2 : vector<128x128xf32> to vector<128x128xbf16>
    %cst = arith.constant dense<0.000000e+00> : vector<128x128xf32>
    %4 = tpu.matmul %1, %3, %cst {dimension_numbers = #tpu.dot_dimension_numbers<[1], [0], [0], [1], [0, 0, 1, 1], [], []>} : vector<128x128xbf16>, vector<128x128xbf16>, vector<128x128xf32> -> vector<128x128xf32>
    %c0_3 = arith.constant 0 : index
    %c0_4 = arith.constant 0 : index
    %5 = vector.load %arg3[%c0_3, %c0_4] : memref<1x128xf32, #tpu.memory_space<vmem>>, vector<1x128xf32>
    %6 = vector.broadcast %5 : vector<1x128xf32> to vector<128x128xf32>
    %7 = arith.addf %4, %6 : vector<128x128xf32>
    %8 = arith.truncf %7 : vector<128x128xf32> to vector<128x128xbf16>
    %c0_5 = arith.constant 0 : index
    %c0_6 = arith.constant 0 : index
    %9 = vector.load %arg7[%c0_5, %c0_6] : memref<128x128xbf16, #tpu.memory_space<vmem>>, vector<128x128xbf16>
    tpu.vector_store %arg7[%c0_5, %c0_6], %8 {strides = array<i32>} : memref<128x128xbf16, #tpu.memory_space<vmem>>, vector<128x128xbf16>,
    %c0_7 = arith.constant 0 : index
    %c0_8 = arith.constant 0 : index
    %10 = vector.load %arg4[%c0_7, %c0_8] : memref<1x128xf32, #tpu.memory_space<vmem>>, vector<1x128xf32>
    %11 = tpu.transpose %7, [1, 0] : vector<128x128xf32> -> vector<128x128xf32>
    %cst_9 = arith.constant dense<0.000000e+00> : vector<1x128xf32>
    %12 = tpu.matmul %10, %11, %cst_9 {dimension_numbers = #tpu.dot_dimension_numbers<[1], [0], [0], [1], [0, 0, 1, 1], [], []>} : vector<1x128xf32>, vector<128x128xf32>, vector<1x128xf32> -> vector<1x128xf32>
    %c0_10 = arith.constant 0 : index
    %c0_11 = arith.constant 0 : index
    %13 = vector.load %arg8[%c0_10, %c0_11] : memref<1x128xf32, #tpu.memory_space<vmem>>, vector<1x128xf32>
    tpu.vector_store %arg8[%c0_10, %c0_11], %12 {strides = array<i32>} : memref<1x128xf32, #tpu.memory_space<vmem>>, vector<1x128xf32>,
    %c0_12 = arith.constant 0 : index
    %c0_13 = arith.constant 0 : index
    %14 = vector.load %arg5[%c0_12, %c0_13] : memref<128x128xf32, #tpu.memory_space<vmem>>, vector<128x128xf32>
    %15 = arith.truncf %14 : vector<128x128xf32> to vector<128x128xbf16>
    %cst_14 = arith.constant dense<0.000000e+00> : vector<128x128xf32>
    %16 = tpu.matmul %1, %15, %cst_14 {dimension_numbers = #tpu.dot_dimension_numbers<[1], [0], [0], [1], [0, 0, 1, 1], [], []>} : vector<128x128xbf16>, vector<128x128xbf16>, vector<128x128xf32> -> vector<128x128xf32>
    %c0_15 = arith.constant 0 : index
    %c0_16 = arith.constant 0 : index
    %17 = vector.load %arg6[%c0_15, %c0_16] : memref<1x128xf32, #tpu.memory_space<vmem>>, vector<1x128xf32>
    %18 = vector.broadcast %17 : vector<1x128xf32> to vector<128x128xf32>
    %19 = arith.addf %16, %18 : vector<128x128xf32>
    %cst_17 = arith.constant 0.000000e+00 : f32
    %20 = vector.broadcast %cst_17 : f32 to vector<128x128xf32>
    %21 = arith.maximumf %19, %20 : vector<128x128xf32>
    %c0_18 = arith.constant 0 : index
    %c0_19 = arith.constant 0 : index
    %22 = vector.load %arg9[%c0_18, %c0_19] : memref<128x128xf32, #tpu.memory_space<vmem>>, vector<128x128xf32>
    tpu.vector_store %arg9[%c0_18, %c0_19], %21 {strides = array<i32>} : memref<128x128xf32, #tpu.memory_space<vmem>>, vector<128x128xf32>,
    return
  }
  func.func @transform_0(%arg0: i32) -> (i32, i32) {
    %c0_i32 = arith.constant 0 : i32
    %c0_i32_0 = arith.constant 0 : i32
    return %arg0, %c0_i32 : i32, i32
  }
  func.func @transform_1(%arg0: i32) -> (i32, i32) {
    %c0_i32 = arith.constant 0 : i32
    %c0_i32_0 = arith.constant 0 : i32
    %c0_i32_1 = arith.constant 0 : i32
    return %c0_i32, %c0_i32_0 : i32, i32
  }
  func.func @transform_2(%arg0: i32) -> (i32, i32) {
    %c0_i32 = arith.constant 0 : i32
    %c0_i32_0 = arith.constant 0 : i32
    %c0_i32_1 = arith.constant 0 : i32
    return %c0_i32, %c0_i32_0 : i32, i32
  }
  func.func @transform_3(%arg0: i32) -> (i32, i32) {
    %c0_i32 = arith.constant 0 : i32
    %c0_i32_0 = arith.constant 0 : i32
    %c0_i32_1 = arith.constant 0 : i32
    return %c0_i32, %c0_i32_0 : i32, i32
  }
  func.func @transform_4(%arg0: i32) -> (i32, i32) {
    %c0_i32 = arith.constant 0 : i32
    %c0_i32_0 = arith.constant 0 : i32
    %c0_i32_1 = arith.constant 0 : i32
    return %c0_i32, %c0_i32_0 : i32, i32
  }
  func.func @transform_5(%arg0: i32) -> (i32, i32) {
    %c0_i32 = arith.constant 0 : i32
    %c0_i32_0 = arith.constant 0 : i32
    %c0_i32_1 = arith.constant 0 : i32
    return %c0_i32, %c0_i32_0 : i32, i32
  }
  func.func @transform_6(%arg0: i32) -> (i32, i32) {
    %c0_i32 = arith.constant 0 : i32
    %c0_i32_0 = arith.constant 0 : i32
    return %arg0, %c0_i32 : i32, i32
  }
  func.func @transform_7(%arg0: i32) -> (i32, i32) {
    %c0_i32 = arith.constant 0 : i32
    %c0_i32_0 = arith.constant 0 : i32
    return %c0_i32, %arg0 : i32, i32
  }
  func.func @transform_8(%arg0: i32) -> (i32, i32) {
    %c0_i32 = arith.constant 0 : i32
    %c0_i32_0 = arith.constant 0 : i32
    return %arg0, %c0_i32 : i32, i32
  }
}

module attributes {stable_mosaic.version = 11 : i64} {
  func.func @item_stage_kernel(%arg0: i32, %arg1: i32, %arg2: memref<128x128xf32, #tpu.memory_space<vmem>>, %arg3: memref<1x128xf32, #tpu.memory_space<vmem>>, %arg4: memref<1x1xf32, #tpu.memory_space<vmem>>, %arg5: memref<1x128xf32, #tpu.memory_space<vmem>>, %arg6: memref<128x128xbf16, #tpu.memory_space<vmem>>, %arg7: memref<128x128xi8, #tpu.memory_space<vmem>>, %arg8: memref<128x128xf32, #tpu.memory_space<vmem>>, %arg9: memref<128x1xf32, #tpu.memory_space<vmem>>, %arg10: memref<128x1xf32, #tpu.memory_space<vmem>>, %arg11: memref<128x1xf32, #tpu.memory_space<vmem>>, %arg12: memref<128x128xf32, #tpu.memory_space<vmem>>) attributes {dimension_semantics = [#tpu.dimension_semantics<parallel>, #tpu.dimension_semantics<arbitrary>], iteration_bounds = array<i64: 2, 2>, scalar_prefetch = 0 : i64, scratch_operands = 4 : i64, tpu.core_type = #tpu.core_type<tc>, window_params = [{transform_indices = @transform_0, window_bounds = array<i64: 128, 128>}, {pipeline_mode = #tpu.pipeline_mode<synchronous>, transform_indices = @transform_1, window_bounds = array<i64: 1, 128>}, {pipeline_mode = #tpu.pipeline_mode<synchronous>, transform_indices = @transform_2, window_bounds = array<i64: 1, 1>}, {transform_indices = @transform_3, window_bounds = array<i64: 1, 128>}, {transform_indices = @transform_4, window_bounds = array<i64: 128, 128>}, {transform_indices = @transform_5, window_bounds = array<i64: 128, 128>}, {transform_indices = @transform_6, window_bounds = array<i64: 128, 128>}]} {
    %c0_i32 = arith.constant 0 : i32
    %0 = arith.cmpi eq, %arg1, %c0_i32 : i32
    %1 = arith.extui %0 : i1 to i32
    %c0_i32_0 = arith.constant 0 : i32
    %2 = arith.cmpi ne, %1, %c0_i32_0 : i32
    scf.if %2 {
      %c0_30 = arith.constant 0 : index
      %c0_31 = arith.constant 0 : index
      %49 = vector.load %arg2[%c0_30, %c0_31] : memref<128x128xf32, #tpu.memory_space<vmem>>, vector<128x128xf32>
      %c0_32 = arith.constant 0 : index
      %c0_33 = arith.constant 0 : index
      %50 = vector.load %arg3[%c0_32, %c0_33] : memref<1x128xf32, #tpu.memory_space<vmem>>, vector<1x128xf32>
      %51 = vector.broadcast %50 : vector<1x128xf32> to vector<128x128xf32>
      %52 = arith.mulf %49, %51 : vector<128x128xf32>
      %cst_34 = arith.constant dense<0.000000e+00> : vector<128xf32>
      %53 = vector.multi_reduction <add>, %52, %cst_34 [1] : vector<128x128xf32> to vector<128xf32>
      %54 = vector.shape_cast %53 : vector<128xf32> to vector<128x1xf32>
      %c0_35 = arith.constant 0 : index
      %c0_36 = arith.constant 0 : index
      %55 = vector.load %arg4[%c0_35, %c0_36] : memref<1x1xf32, #tpu.memory_space<vmem>>, vector<1x1xf32>
      %56 = vector.broadcast %55 : vector<1x1xf32> to vector<128x1xf32>
      %57 = arith.addf %54, %56 : vector<128x1xf32>
      %c0_37 = arith.constant 0 : index
      %c0_38 = arith.constant 0 : index
      %58 = vector.load %arg9[%c0_37, %c0_38] : memref<128x1xf32, #tpu.memory_space<vmem>>, vector<128x1xf32>
      tpu.vector_store %arg9[%c0_37, %c0_38], %57 {strides = array<i32>} : memref<128x1xf32, #tpu.memory_space<vmem>>, vector<128x1xf32>,
      %cst_39 = arith.constant -1.000000e+30 : f32
      %59 = vector.broadcast %cst_39 : f32 to vector<128x1xf32>
      %c0_40 = arith.constant 0 : index
      %c0_41 = arith.constant 0 : index
      %60 = vector.load %arg10[%c0_40, %c0_41] : memref<128x1xf32, #tpu.memory_space<vmem>>, vector<128x1xf32>
      tpu.vector_store %arg10[%c0_40, %c0_41], %59 {strides = array<i32>} : memref<128x1xf32, #tpu.memory_space<vmem>>, vector<128x1xf32>,
      %cst_42 = arith.constant 0.000000e+00 : f32
      %61 = vector.broadcast %cst_42 : f32 to vector<128x1xf32>
      %c0_43 = arith.constant 0 : index
      %c0_44 = arith.constant 0 : index
      %62 = vector.load %arg11[%c0_43, %c0_44] : memref<128x1xf32, #tpu.memory_space<vmem>>, vector<128x1xf32>
      tpu.vector_store %arg11[%c0_43, %c0_44], %61 {strides = array<i32>} : memref<128x1xf32, #tpu.memory_space<vmem>>, vector<128x1xf32>,
      %cst_45 = arith.constant 0.000000e+00 : f32
      %63 = vector.broadcast %cst_45 : f32 to vector<128x128xf32>
      %c0_46 = arith.constant 0 : index
      %c0_47 = arith.constant 0 : index
      %64 = vector.load %arg12[%c0_46, %c0_47] : memref<128x128xf32, #tpu.memory_space<vmem>>, vector<128x128xf32>
      tpu.vector_store %arg12[%c0_46, %c0_47], %63 {strides = array<i32>} : memref<128x128xf32, #tpu.memory_space<vmem>>, vector<128x128xf32>,
    } else {
    }
    %c0 = arith.constant 0 : index
    %c0_1 = arith.constant 0 : index
    %3 = vector.load %arg9[%c0, %c0_1] : memref<128x1xf32, #tpu.memory_space<vmem>>, vector<128x1xf32>
    %c0_2 = arith.constant 0 : index
    %c0_3 = arith.constant 0 : index
    %4 = vector.load %arg5[%c0_2, %c0_3] : memref<1x128xf32, #tpu.memory_space<vmem>>, vector<1x128xf32>
    %5 = vector.broadcast %3 : vector<128x1xf32> to vector<128x128xf32>
    %6 = vector.broadcast %4 : vector<1x128xf32> to vector<128x128xf32>
    %7 = arith.addf %5, %6 : vector<128x128xf32>
    %cst = arith.constant 0.000000e+00 : f32
    %8 = vector.broadcast %cst : f32 to vector<128x128xf32>
    %9 = arith.cmpf oge, %7, %8 : vector<128x128xf32>
    %cst_4 = arith.constant 2.000000e-01 : f32
    %10 = vector.broadcast %cst_4 : f32 to vector<128x128xf32>
    %11 = arith.mulf %10, %7 : vector<128x128xf32>
    %12 = arith.select %9, %7, %11 : vector<128x128xi1>, vector<128x128xf32>
    %c0_5 = arith.constant 0 : index
    %c0_6 = arith.constant 0 : index
    %13 = vector.load %arg7[%c0_5, %c0_6] : memref<128x128xi8, #tpu.memory_space<vmem>>, vector<128x128xi8>
    %14 = arith.extsi %13 : vector<128x128xi8> to vector<128x128xi32>
    %c0_i32_7 = arith.constant 0 : i32
    %15 = vector.broadcast %c0_i32_7 : i32 to vector<128x128xi32>
    %16 = arith.cmpi sgt, %14, %15 : vector<128x128xi32>
    %cst_8 = arith.constant -1.000000e+30 : f32
    %17 = vector.broadcast %cst_8 : f32 to vector<128x128xf32>
    %18 = arith.select %16, %12, %17 : vector<128x128xi1>, vector<128x128xf32>
    %c0_9 = arith.constant 0 : index
    %c0_10 = arith.constant 0 : index
    %19 = vector.load %arg10[%c0_9, %c0_10] : memref<128x1xf32, #tpu.memory_space<vmem>>, vector<128x1xf32>
    %cst_11 = arith.constant dense<0xFF800000> : vector<128xf32>
    %20 = vector.multi_reduction <maximumf>, %18, %cst_11 [1] : vector<128x128xf32> to vector<128xf32>
    %21 = vector.shape_cast %20 : vector<128xf32> to vector<128x1xf32>
    %22 = arith.maximumf %19, %21 : vector<128x1xf32>
    %c0_12 = arith.constant 0 : index
    %c0_13 = arith.constant 0 : index
    %23 = vector.load %arg10[%c0_12, %c0_13] : memref<128x1xf32, #tpu.memory_space<vmem>>, vector<128x1xf32>
    %24 = arith.subf %23, %22 : vector<128x1xf32>
    %25 = math.exp %24 : vector<128x1xf32>
    %26 = vector.broadcast %22 : vector<128x1xf32> to vector<128x128xf32>
    %27 = arith.subf %18, %26 : vector<128x128xf32>
    %28 = math.exp %27 : vector<128x128xf32>
    %cst_14 = arith.constant 0.000000e+00 : f32
    %29 = vector.broadcast %cst_14 : f32 to vector<128x128xf32>
    %30 = arith.select %16, %28, %29 : vector<128x128xi1>, vector<128x128xf32>
    %c0_15 = arith.constant 0 : index
    %c0_16 = arith.constant 0 : index
    %31 = vector.load %arg11[%c0_15, %c0_16] : memref<128x1xf32, #tpu.memory_space<vmem>>, vector<128x1xf32>
    %32 = arith.mulf %25, %31 : vector<128x1xf32>
    %cst_17 = arith.constant dense<0.000000e+00> : vector<128xf32>
    %33 = vector.multi_reduction <add>, %30, %cst_17 [1] : vector<128x128xf32> to vector<128xf32>
    %34 = vector.shape_cast %33 : vector<128xf32> to vector<128x1xf32>
    %35 = arith.addf %32, %34 : vector<128x1xf32>
    %c0_18 = arith.constant 0 : index
    %c0_19 = arith.constant 0 : index
    %36 = vector.load %arg11[%c0_18, %c0_19] : memref<128x1xf32, #tpu.memory_space<vmem>>, vector<128x1xf32>
    tpu.vector_store %arg11[%c0_18, %c0_19], %35 {strides = array<i32>} : memref<128x1xf32, #tpu.memory_space<vmem>>, vector<128x1xf32>,
    %c0_20 = arith.constant 0 : index
    %c0_21 = arith.constant 0 : index
    %37 = vector.load %arg12[%c0_20, %c0_21] : memref<128x128xf32, #tpu.memory_space<vmem>>, vector<128x128xf32>
    %38 = vector.broadcast %25 : vector<128x1xf32> to vector<128x128xf32>
    %39 = arith.mulf %38, %37 : vector<128x128xf32>
    %40 = arith.truncf %30 : vector<128x128xf32> to vector<128x128xbf16>
    %c0_22 = arith.constant 0 : index
    %c0_23 = arith.constant 0 : index
    %41 = vector.load %arg6[%c0_22, %c0_23] : memref<128x128xbf16, #tpu.memory_space<vmem>>, vector<128x128xbf16>
    %cst_24 = arith.constant dense<0.000000e+00> : vector<128x128xf32>
    %42 = tpu.matmul %40, %41, %cst_24 {dimension_numbers = #tpu.dot_dimension_numbers<[1], [0], [0], [1], [0, 0, 1, 1], [], []>} : vector<128x128xbf16>, vector<128x128xbf16>, vector<128x128xf32> -> vector<128x128xf32>
    %43 = arith.addf %39, %42 : vector<128x128xf32>
    %c0_25 = arith.constant 0 : index
    %c0_26 = arith.constant 0 : index
    %44 = vector.load %arg12[%c0_25, %c0_26] : memref<128x128xf32, #tpu.memory_space<vmem>>, vector<128x128xf32>
    tpu.vector_store %arg12[%c0_25, %c0_26], %43 {strides = array<i32>} : memref<128x128xf32, #tpu.memory_space<vmem>>, vector<128x128xf32>,
    %c0_27 = arith.constant 0 : index
    %c0_28 = arith.constant 0 : index
    %45 = vector.load %arg10[%c0_27, %c0_28] : memref<128x1xf32, #tpu.memory_space<vmem>>, vector<128x1xf32>
    tpu.vector_store %arg10[%c0_27, %c0_28], %22 {strides = array<i32>} : memref<128x1xf32, #tpu.memory_space<vmem>>, vector<128x1xf32>,
    %c1_i32 = arith.constant 1 : i32
    %46 = arith.cmpi eq, %arg1, %c1_i32 : i32
    %47 = arith.extui %46 : i1 to i32
    %c0_i32_29 = arith.constant 0 : i32
    %48 = arith.cmpi ne, %47, %c0_i32_29 : i32
    scf.if %48 {
      %c0_30 = arith.constant 0 : index
      %c0_31 = arith.constant 0 : index
      %49 = vector.load %arg11[%c0_30, %c0_31] : memref<128x1xf32, #tpu.memory_space<vmem>>, vector<128x1xf32>
      %cst_32 = arith.constant 0.000000e+00 : f32
      %50 = vector.broadcast %cst_32 : f32 to vector<128x1xf32>
      %51 = arith.cmpf ogt, %49, %50 : vector<128x1xf32>
      %cst_33 = arith.constant 1.000000e+00 : f32
      %52 = vector.broadcast %cst_33 : f32 to vector<128x1xf32>
      %53 = arith.select %51, %49, %52 : vector<128x1xi1>, vector<128x1xf32>
      %54 = tpu.reciprocal %53 {approx = true} : vector<128x1xf32> -> vector<128x1xf32>
      %c0_34 = arith.constant 0 : index
      %c0_35 = arith.constant 0 : index
      %55 = vector.load %arg12[%c0_34, %c0_35] : memref<128x128xf32, #tpu.memory_space<vmem>>, vector<128x128xf32>
      %56 = vector.broadcast %54 : vector<128x1xf32> to vector<128x128xf32>
      %57 = arith.mulf %55, %56 : vector<128x128xf32>
      %cst_36 = arith.constant 0.000000e+00 : f32
      %58 = vector.broadcast %cst_36 : f32 to vector<128x128xf32>
      %59 = arith.maximumf %57, %58 : vector<128x128xf32>
      %c0_37 = arith.constant 0 : index
      %c0_38 = arith.constant 0 : index
      %60 = vector.load %arg8[%c0_37, %c0_38] : memref<128x128xf32, #tpu.memory_space<vmem>>, vector<128x128xf32>
      tpu.vector_store %arg8[%c0_37, %c0_38], %59 {strides = array<i32>} : memref<128x128xf32, #tpu.memory_space<vmem>>, vector<128x128xf32>,
    } else {
    }
    return
  }
  func.func @transform_0(%arg0: i32, %arg1: i32) -> (i32, i32) {
    %c0_i32 = arith.constant 0 : i32
    %c0_i32_0 = arith.constant 0 : i32
    return %arg0, %c0_i32 : i32, i32
  }
  func.func @transform_1(%arg0: i32, %arg1: i32) -> (i32, i32) {
    %c0_i32 = arith.constant 0 : i32
    %c0_i32_0 = arith.constant 0 : i32
    %c0_i32_1 = arith.constant 0 : i32
    return %c0_i32, %c0_i32_0 : i32, i32
  }
  func.func @transform_2(%arg0: i32, %arg1: i32) -> (i32, i32) {
    %c0_i32 = arith.constant 0 : i32
    %c0_i32_0 = arith.constant 0 : i32
    %c0_i32_1 = arith.constant 0 : i32
    return %c0_i32, %c0_i32_0 : i32, i32
  }
  func.func @transform_3(%arg0: i32, %arg1: i32) -> (i32, i32) {
    %c0_i32 = arith.constant 0 : i32
    %c0_i32_0 = arith.constant 0 : i32
    return %c0_i32, %arg1 : i32, i32
  }
  func.func @transform_4(%arg0: i32, %arg1: i32) -> (i32, i32) {
    %c0_i32 = arith.constant 0 : i32
    %c0_i32_0 = arith.constant 0 : i32
    return %arg1, %c0_i32 : i32, i32
  }
  func.func @transform_5(%arg0: i32, %arg1: i32) -> (i32, i32) {
    %c0_i32 = arith.constant 0 : i32
    return %arg0, %arg1 : i32, i32
  }
  func.func @transform_6(%arg0: i32, %arg1: i32) -> (i32, i32) {
    %c0_i32 = arith.constant 0 : i32
    %c0_i32_0 = arith.constant 0 : i32
    return %arg0, %c0_i32 : i32, i32
  }
}

module attributes {stable_mosaic.version = 11 : i64} {
  func.func @predict_kernel(%arg0: memref<256x128xf32, #tpu.memory_space<vmem>>, %arg1: memref<256x128xf32, #tpu.memory_space<vmem>>, %arg2: memref<128x1xi32, #tpu.memory_space<vmem>>, %arg3: memref<128x1xi32, #tpu.memory_space<vmem>>, %arg4: memref<1x128xf32, #tpu.memory_space<vmem>>, %arg5: memref<1x1xf32, #tpu.memory_space<vmem>>, %arg6: memref<128x1xf32, #tpu.memory_space<vmem>>) attributes {dimension_semantics = [], scalar_prefetch = 0 : i64, scratch_operands = 0 : i64, tpu.core_type = #tpu.core_type<tc>} {
    %0 = tpu.iota {dimensions = array<i32: 1>} : vector<128x256xi32>
    %c0 = arith.constant 0 : index
    %c0_0 = arith.constant 0 : index
    %1 = vector.load %arg2[%c0, %c0_0] : memref<128x1xi32, #tpu.memory_space<vmem>>, vector<128x1xi32>
    %2 = vector.broadcast %1 : vector<128x1xi32> to vector<128x256xi32>
    %3 = arith.cmpi eq, %0, %2 : vector<128x256xi32>
    %4 = arith.extui %3 : vector<128x256xi1> to vector<128x256xi32>
    %5 = arith.sitofp %4 : vector<128x256xi32> to vector<128x256xf32>
    %6 = tpu.iota {dimensions = array<i32: 1>} : vector<128x256xi32>
    %c0_1 = arith.constant 0 : index
    %c0_2 = arith.constant 0 : index
    %7 = vector.load %arg3[%c0_1, %c0_2] : memref<128x1xi32, #tpu.memory_space<vmem>>, vector<128x1xi32>
    %8 = vector.broadcast %7 : vector<128x1xi32> to vector<128x256xi32>
    %9 = arith.cmpi eq, %6, %8 : vector<128x256xi32>
    %10 = arith.extui %9 : vector<128x256xi1> to vector<128x256xi32>
    %11 = arith.sitofp %10 : vector<128x256xi32> to vector<128x256xf32>
    %c0_3 = arith.constant 0 : index
    %c0_4 = arith.constant 0 : index
    %12 = vector.load %arg0[%c0_3, %c0_4] : memref<256x128xf32, #tpu.memory_space<vmem>>, vector<256x128xf32>
    %cst = arith.constant dense<0.000000e+00> : vector<128x128xf32>
    %13 = tpu.matmul %5, %12, %cst {dimension_numbers = #tpu.dot_dimension_numbers<[1], [0], [0], [1], [0, 0, 1, 1], [], []>} : vector<128x256xf32>, vector<256x128xf32>, vector<128x128xf32> -> vector<128x128xf32>
    %c0_5 = arith.constant 0 : index
    %c0_6 = arith.constant 0 : index
    %14 = vector.load %arg1[%c0_5, %c0_6] : memref<256x128xf32, #tpu.memory_space<vmem>>, vector<256x128xf32>
    %cst_7 = arith.constant dense<0.000000e+00> : vector<128x128xf32>
    %15 = tpu.matmul %11, %14, %cst_7 {dimension_numbers = #tpu.dot_dimension_numbers<[1], [0], [0], [1], [0, 0, 1, 1], [], []>} : vector<128x256xf32>, vector<256x128xf32>, vector<128x128xf32> -> vector<128x128xf32>
    %16 = arith.mulf %13, %15 : vector<128x128xf32>
    %c0_8 = arith.constant 0 : index
    %c0_9 = arith.constant 0 : index
    %17 = vector.load %arg4[%c0_8, %c0_9] : memref<1x128xf32, #tpu.memory_space<vmem>>, vector<1x128xf32>
    %18 = vector.broadcast %17 : vector<1x128xf32> to vector<128x128xf32>
    %19 = arith.mulf %16, %18 : vector<128x128xf32>
    %cst_10 = arith.constant dense<0.000000e+00> : vector<128xf32>
    %20 = vector.multi_reduction <add>, %19, %cst_10 [1] : vector<128x128xf32> to vector<128xf32>
    %21 = vector.shape_cast %20 : vector<128xf32> to vector<128x1xf32>
    %c0_11 = arith.constant 0 : index
    %c0_12 = arith.constant 0 : index
    %22 = vector.load %arg5[%c0_11, %c0_12] : memref<1x1xf32, #tpu.memory_space<vmem>>, vector<1x1xf32>
    %23 = vector.broadcast %22 : vector<1x1xf32> to vector<128x1xf32>
    %24 = arith.addf %21, %23 : vector<128x1xf32>
    %c0_13 = arith.constant 0 : index
    %c0_14 = arith.constant 0 : index
    %25 = vector.load %arg6[%c0_13, %c0_14] : memref<128x1xf32, #tpu.memory_space<vmem>>, vector<128x1xf32>
    tpu.vector_store %arg6[%c0_13, %c0_14], %24 {strides = array<i32>} : memref<128x1xf32, #tpu.memory_space<vmem>>, vector<128x1xf32>,
    return
  }
}

</mosaic_0001>

<bundles_post_ra>
// kernel: taobao_han_forward.5
= control target key start
LH: loop header
LB: loop body
LE: loop exit
PB: predicated region body
PF: predicated region fallthrough
CT: control target
= control target key end

     0   :  { %s1244_s27 = smov 0   ;;  %s1447_s0 = inlined_call_operand.vmem [shape: f32[256,128], index: 0, kind: input, shape index: {}]   ;;  %s1448_s1 = inlined_call_operand.vmem [shape: f32[128,128], index: 1, kind: input, shape index: {}]   ;;  %s1449_s2 = inlined_call_operand.vmem [shape: f32[1,128], index: 2, kind: input, shape index: {}]   ;;  %s1450_s3 = inlined_call_operand.vmem [shape: f32[1,128], index: 3, kind: input, shape index: {}]   ;;  %s1451_s4 = inlined_call_operand.vmem [shape: f32[128,128], index: 4, kind: input, shape index: {}]   ;;  %s1452_s5 = inlined_call_operand.vmem [shape: f32[1,128], index: 5, kind: input, shape index: {}]   ;;  %s1453_s6 = inlined_call_operand.vmem [shape: bf16[256,128], index: 6, kind: output, shape index: {0}]   ;;  %s1454_s7 = inlined_call_operand.vmem [shape: f32[1,256], index: 7, kind: output, shape index: {1}]   ;;  %s1455_s8 = inlined_call_operand.vmem [shape: f32[256,128], index: 8, kind: output, shape index: {2}]  }
   0x1 LB: > { %s1250_s28 = sadd.s32 4294967295, %s1194_s27   ;;  %p915_p0 = scmp.ge.s32.totalorder %s1194_s27, 1  ;;  %s1194_s27 = sphi %s1244_s27, %s19_s27  }
   0x2   : > { %p268_p1 = scmp.lt.s32.totalorder %s1194_s27, 3 }
   0x4   : > { %p269_p2 = pnand %p915_p0, %p268_p1 }
   0x5   : > { %v356_v0 = vld [vmem:[%s1448_s1] sm:$0xff] (!%p269_p2)  ;;  %v357_v1 = vld [vmem:[%s1448_s1 + $0x8] sm:$0xff] (!%p269_p2)  ;;  %v358_v2 = vld [vmem:[%s1448_s1 + $0x10] sm:$0xff] (!%p269_p2)  ;;  %s916_s13 = sshll.u32 (!%p269_p2), %s1250_s28, 4  ;;  %v1196_v53 = vmov (!%p269_p2), 0.0|0.0   ;;  %vm1197_vm0 = vmmov (!%p269_p2), 0  }
   0x6   : > { %272 = sbr.rel (%p269_p2) target bundleno = 535 (0x217), region = 44  ;;  %v372_v3 = vpack.c.bf16 (!%p269_p2), %v357_v1, %v356_v0  ;;  %v359_v4 = vld [vmem:[%s1448_s1 + $0x18] sm:$0xff] (!%p269_p2)  ;;  %p311_p3 = scmp.lt.s32.totalorder (!%p269_p2), %s916_s13, 31  ;;  %v360_v6 = vld [vmem:[%s1448_s1 + $0x20] sm:$0xff] (!%p269_p2)  ;;  %v361_v7 = vld [vmem:[%s1448_s1 + $0x28] sm:$0xff] (!%p269_p2)  ;;  %1153 = vmatprep.subr.bf16.mxu1 (!%p269_p2), %v1196_v53 }
   0x7   : > { %v373_v5 = vpack.c.bf16 (!%p269_p2), %v359_v4, %v358_v2  ;;  %v374_v8 = vpack.c.bf16 (!%p269_p2), %v361_v7, %v360_v6  ;;  %v362_v9 = vld [vmem:[%s1448_s1 + $0x30] sm:$0xff] (!%p269_p2)  ;;  %v363_v10 = vld [vmem:[%s1448_s1 + $0x38] sm:$0xff] (!%p269_p2)  ;;  %v364_v15 = vld [vmem:[%s1448_s1 + $0x40] sm:$0xff] (!%p269_p2)  ;;  %p322_p4 = scmp.lt.s32.totalorder (!%p269_p2), %s1250_s28, 1 }
   0x8   : > { %1054 = vmatprep.subr.bf16.mxu0 (!%p269_p2), %v372_v3  ;;  %v375_v14 = vpack.c.bf16 (!%p269_p2), %v363_v10, %v362_v9  ;;  %v365_v16 = vld [vmem:[%s1448_s1 + $0x48] sm:$0xff] (!%p269_p2)  ;;  %v366_v18 = vld [vmem:[%s1448_s1 + $0x50] sm:$0xff] (!%p269_p2)  ;;  %v367_v19 = vld [vmem:[%s1448_s1 + $0x58] sm:$0xff] (!%p269_p2)  ;;  %v1198_v9 = vmov (!%p269_p2), 0.0  }
   0x9   : > { %1055 = vmatpush3.bf16.msra.mxu0 (!%p269_p2), %v372_v3  ;;  %v376_v17 = vpack.c.bf16 (!%p269_p2), %v365_v16, %v364_v15  ;;  %v377_v20 = vpack.c.bf16 (!%p269_p2), %v367_v19, %v366_v18  ;;  %v368_v21 = vld [vmem:[%s1448_s1 + $0x60] sm:$0xff] (!%p269_p2)  ;;  %v369_v22 = vld [vmem:[%s1448_s1 + $0x68] sm:$0xff] (!%p269_p2)  ;;  %v370_v24 = vld [vmem:[%s1448_s1 + $0x70] sm:$0xff] (!%p269_p2)  ;;  %1118 = vmatprep.mubr.msk.f32.mxu1 (!%p269_p2), %vm1197_vm0, %v1198_v9 }
   0xa   : > { %1056 = vmatprep.subr.bf16.mxu0 (!%p269_p2), %v373_v5  ;;  %v378_v23 = vpack.c.bf16 (!%p269_p2), %v369_v22, %v368_v21  ;;  %v371_v25 = vld [vmem:[%s1448_s1 + $0x78] sm:$0xff] (!%p269_p2)  ;;  %v636_v48 = vld [vmem:[%s1451_s4] sm:$0xff] (!%p269_p2)  ;;  %v637_v49 = vld [vmem:[%s1451_s4 + $0x8] sm:$0xff] (!%p269_p2) }
   0xb   : > { %v379_v26 = vpack.c.bf16 (!%p269_p2), %v371_v25, %v370_v24  ;;  %v652_v50 = vpack.c.bf16 (!%p269_p2), %v637_v49, %v636_v48  ;;  %v638_v51 = vld [vmem:[%s1451_s4 + $0x10] sm:$0xff] (!%p269_p2)  ;;  %v639_v52 = vld [vmem:[%s1451_s4 + $0x18] sm:$0xff] (!%p269_p2)  ;;  %v640_v55 = vld [vmem:[%s1451_s4 + $0x20] sm:$0xff] (!%p269_p2) }
   0xc   : > { %v653_v54 = vpack.c.bf16 (!%p269_p2), %v639_v52, %v638_v51  ;;  %v641_v56 = vld [vmem:[%s1451_s4 + $0x28] sm:$0xff] (!%p269_p2)  ;;  %v642_v58 = vld [vmem:[%s1451_s4 + $0x30] sm:$0xff] (!%p269_p2)  ;;  %v643_v59 = vld [vmem:[%s1451_s4 + $0x38] sm:$0xff] (!%p269_p2) }
   0xd   : > { %s1457_s13 = smov (!%p311_p3, %s916_s13), 31  ;;  %1057 = vmatpush3.bf16.msra.mxu0 %v373_v5  ;;  %v654_v57 = vpack.c.bf16 %v641_v56, %v640_v55  ;;  %v655_v60 = vpack.c.bf16 %v643_v59, %v642_v58  ;;  %v644_v61 = vld [vmem:[%s1451_s4 + $0x40] sm:$0xff]  ;;  %v645_v62 = vld [vmem:[%s1451_s4 + $0x48] sm:$0xff]  ;;  %v646_v0 = vld [vmem:[%s1451_s4 + $0x50] sm:$0xff]  ;;  %s1459_s28 = smov (!%p322_p4, %s1250_s28), 1 }
   0xe   : > { %s917_s20 = sshll.u32 %s1457_s13, 3  ;;  %1058 = vmatprep.subr.bf16.mxu0 %v374_v8  ;;  %v656_v63 = vpack.c.bf16 %v645_v62, %v644_v61  ;;  %v647_v1 = vld [vmem:[%s1451_s4 + $0x58] sm:$0xff]  ;;  %v648_v3 = vld [vmem:[%s1451_s4 + $0x60] sm:$0xff]  ;;  %v649_v4 = vld [vmem:[%s1451_s4 + $0x68] sm:$0xff]  ;;  %s919_s24 = sshll.u32 %s1457_s13, 2 }
   0xf   : > { %s1287_s29 = scalar_lea.vmem %s1447_s0, %s917_s20  ;;  %v657_v2 = vpack.c.bf16 %v647_v1, %v646_v0  ;;  %v658_v5 = vpack.c.bf16 %v649_v4, %v648_v3  ;;  %v650_v6 = vld [vmem:[%s1451_s4 + $0x70] sm:$0xff]  ;;  %v651_v7 = vld [vmem:[%s1451_s4 + $0x78] sm:$0xff]  ;;  %s1393_s30 = scalar_lea.vmem %s1453_s6, %s919_s24  ;;  %v564_v51 = vld [vmem:[%s1450_s3] sm:$0x1] }
  0x10   : > { %v332_v11 = vld [vmem:[%s1287_s29] sm:$0xff]  ;;  %v333_v12 = vld [vmem:[%s1287_s29 + $0x8] sm:$0xff]  ;;  %v334_v27 = vld [vmem:[%s1287_s29 + $0x10] sm:$0xff]  ;;  %s1421_s15 = scalar_lea.vmem %s1455_s8, %s917_s20  ;;  %s324_s16 = scalar_lea.vmem %s1454_s7, %s1459_s28 }
  0x11   : > { %v348_v13 = vpack.c.bf16 %v333_v12, %v332_v11  ;;  %1059 = vmatpush3.bf16.msra.mxu0 %v374_v8  ;;  %v335_v28 = vld [vmem:[%s1287_s29 + $0x18] sm:$0xff]  ;;  %v336_v29 = vld [vmem:[%s1287_s29 + $0x20] sm:$0xff]  ;;  %v337_v30 = vld [vmem:[%s1287_s29 + $0x28] sm:$0xff]  ;;  %v659_v8 = vpack.c.bf16 %v651_v7, %v650_v6 }
  0x12   : > { %1060 = vmatprep.subr.bf16.mxu0 %v375_v14  ;;  %v1319_v31 = vpack.c.bf16 %v335_v28, %v334_v27  ;;  %v1321_v32 = vpack.c.bf16 %v337_v30, %v336_v29  ;;  %v338_v33 = vld [vmem:[%s1287_s29 + $0x30] sm:$0xff]  ;;  %v339_v34 = vld [vmem:[%s1287_s29 + $0x38] sm:$0xff]  ;;  %v340_v35 = vld [vmem:[%s1287_s29 + $0x40] sm:$0xff] }
  0x13   : > { %1070 = vmatprep.mubr.bf16.mxu0 %v348_v13  ;;  %v341_v36 = vld [vmem:[%s1287_s29 + $0x48] sm:$0xff]  ;;  %v351_v37 = vpack.c.bf16 %v339_v34, %v338_v33  ;;  %v342_v39 = vld [vmem:[%s1287_s29 + $0x50] sm:$0xff]  ;;  %v343_v40 = vld [vmem:[%s1287_s29 + $0x58] sm:$0xff] }
  0x14   : > { %v352_v38 = vpack.c.bf16 %v341_v36, %v340_v35  ;;  %v344_v41 = vld [vmem:[%s1287_s29 + $0x60] sm:$0xff]  ;;  %v345_v42 = vld [vmem:[%s1287_s29 + $0x68] sm:$0xff]  ;;  %v353_v43 = vpack.c.bf16 %v343_v40, %v342_v39  ;;  %v346_v45 = vld [vmem:[%s1287_s29 + $0x70] sm:$0xff] }
  0x15   : > { %1061 = vmatpush3.bf16.msra.mxu0 %v375_v14  ;;  %v354_v44 = vpack.c.bf16 %v345_v42, %v344_v41  ;;  %v347_v46 = vld [vmem:[%s1287_s29 + $0x78] sm:$0xff]  ;;  %v922_v11 = vld [vmem:[%s1449_s2] ss:$0 sm:$0xff] }
  0x16   : > { %1062 = vmatprep.subr.bf16.mxu0 %v376_v17  ;;  %v355_v47 = vpack.c.bf16 %v347_v46, %v346_v45  ;;  %v939_v52 = vld [vmem:[%s1452_s5] ss:$0 sm:$0xff] }
  0x19   : > { %1063 = vmatpush3.bf16.msra.mxu0 %v376_v17 }
  0x1a   : > { %1064 = vmatprep.subr.bf16.mxu0 %v377_v20 }
  0x1d   : > { %1065 = vmatpush3.bf16.msra.mxu0 %v377_v20 }
  0x1e   : > { %1066 = vmatprep.subr.bf16.mxu0 %v378_v23 }
  0x21   : > { %1067 = vmatpush3.bf16.msra.mxu0 %v378_v23 }
  0x22   : > { %1068 = vmatprep.subr.bf16.mxu0 %v379_v26 }
  0x25   : > { %1069 = vmatpush3.bf16.msra.mxu0 %v379_v26 }
  0x26   : > { %1121 = vmatprep.subr.bf16.mxu0 %v652_v50 }
  0x28   : > { %1071 = vmatmul.mubr.bf16.vlgmr.msra.gmra.mrb[0].mxu0 %v1319_v31 }
  0x29   : > { %1074 = vmatprep.mubr.bf16.mxu0 %v1321_v32  ;;  %1122 = vmatpush3.bf16.msra.mxu0 %v652_v50 }
  0x2a   : > { %1123 = vmatprep.subr.bf16.mxu0 %v653_v54 }
  0x2d   : > { %1124 = vmatpush3.bf16.msra.mxu0 %v653_v54 }
  0x2e   : > { %1125 = vmatprep.subr.bf16.mxu0 %v654_v57 }
  0x30   : > { %1075 = vmatmul.mubr.bf16.gmra.mrb[4].mxu0 %v351_v37 }
  0x31   : > { %1078 = vmatprep.mubr.bf16.mxu0 %v352_v38  ;;  %1126 = vmatpush3.bf16.msra.mxu0 %v654_v57 }
  0x32   : > { %1127 = vmatprep.subr.bf16.mxu0 %v655_v60 }
  0x35   : > { %1128 = vmatpush3.bf16.msra.mxu0 %v655_v60 }
  0x36   : > { %1129 = vmatprep.subr.bf16.mxu0 %v656_v63 }
  0x38   : > { %1079 = vmatmul.mubr.bf16.gmra.mrb[8].mxu0 %v353_v43 }
  0x39   : > { %1082 = vmatprep.mubr.bf16.mxu0 %v354_v44  ;;  %1130 = vmatpush3.bf16.msra.mxu0 %v656_v63 }
  0x3a   : > { %1131 = vmatprep.subr.bf16.mxu0 %v657_v2 }
  0x3d   : > { %1132 = vmatpush3.bf16.msra.mxu0 %v657_v2 }
  0x3e   : > { %1133 = vmatprep.subr.bf16.mxu0 %v658_v5 }
  0x40   : > { %1083 = vmatmul.mubr.bf16.gmra.mrb[12].mxu0 %v355_v47 }
  0x41   : > { %1137 = vmatprep.mubr.bf16.mxu0 %v348_v13  ;;  %1134 = vmatpush3.bf16.msra.mxu0 %v658_v5 }
  0x42   : > { %1135 = vmatprep.subr.bf16.mxu0 %v659_v8 }
  0x45   : > { %1136 = vmatpush3.bf16.msra.mxu0 %v659_v8 }
  0x48   : > { %1138 = vmatmul.mubr.bf16.vlgmr.msra.gmra.mrb[16].mxu0 %v1319_v31 }
  0x49   : > { %1141 = vmatprep.mubr.bf16.mxu0 %v1321_v32 }
  0x50   : > { %1142 = vmatmul.mubr.bf16.gmra.mrb[20].mxu0 %v351_v37 }
  0x51   : > { %1145 = vmatprep.mubr.bf16.mxu0 %v352_v38 }
  0x58   : > { %1146 = vmatmul.mubr.bf16.gmra.mrb[24].mxu0 %v353_v43 }
  0x59   : > { %1149 = vmatprep.mubr.bf16.mxu0 %v354_v44 }
  0x60   : > { %1150 = vmatmul.mubr.bf16.gmra.mrb[28].mxu0 %v355_v47 }
  0xfb   : > { %v1072_v10 = vpop.f32.mrb[0].mxu0 }
  0xfc   : > { %v421_v12 = vpop.f32.mrb[1].mxu0  ;;  %v430_v14 = vadd.f32 %v1072_v10, %v922_v11 }
  0xfd   : > { %v1073_v13 = vpop.f32.mrb[2].mxu0  ;;  %v422_v17 = vadd.f32 %v922_v11, %v421_v12 }
  0xfe   : > { %v433_v15 = vadd.f32 %v1073_v13, %v922_v11  ;;  %v424_v16 = vpop.f32.mrb[3].mxu0 }
  0xff   : > { %v425_v18 = vadd.f32 %v922_v11, %v424_v16 }
 0x100   : > { %v966_v19 = vpack.c.bf16 %v433_v15, %v430_v14 }
 0x101   : > { %v961_v20 = vpack.c.bf16 %v425_v18, %v422_v17 }
 0x102   : > { %998 = vst [vmem:[%s1393_s30 + $0x8] sm:$0xff] %v966_v19  }
 0x103   : > { %962 = vst [vmem:[%s1393_s30] sm:$0xff] %v961_v20   ;;  %1155 = vmatpush3.bf16.xpose.msra.mxu1 %v961_v20  ;;  %v1076_v21 = vpop.f32.mrb[4].mxu0 }
 0x104   : > { %v446_v22 = vadd.f32 %v1076_v21, %v922_v11  ;;  %v437_v23 = vpop.f32.mrb[5].mxu0  ;;  %1156 = vmatprep.subr.bf16.mxu1 %v1196_v53 }
 0x105   : > { %v438_v24 = vadd.f32 %v922_v11, %v437_v23  ;;  %v1077_v25 = vpop.f32.mrb[6].mxu0 }
 0x106   : > { %v449_v26 = vadd.f32 %v1077_v25, %v922_v11  ;;  %v440_v27 = vpop.f32.mrb[7].mxu0 }
 0x107   : > { %v441_v28 = vadd.f32 %v922_v11, %v440_v27 }
 0x108   : > { %v976_v29 = vpack.c.bf16 %v449_v26, %v446_v22 }
 0x109   : > { %v971_v30 = vpack.c.bf16 %v441_v28, %v438_v24 }
 0x10a   : > { %1000 = vst [vmem:[%s1393_s30 + $0x18] sm:$0xff] %v976_v29  }
 0x10b   : > { %999 = vst [vmem:[%s1393_s30 + $0x10] sm:$0xff] %v971_v30   ;;  %1158 = vmatpush3.bf16.xpose.msra.mxu1 %v966_v19  ;;  %v1080_v31 = vpop.f32.mrb[8].mxu0 }
 0x10c   : > { %1159 = vmatprep.subr.bf16.mxu1 %v1196_v53  ;;  %v462_v32 = vadd.f32 %v1080_v31, %v922_v11  ;;  %v453_v33 = vpop.f32.mrb[9].mxu0 }
 0x10d   : > { %v454_v34 = vadd.f32 %v922_v11, %v453_v33  ;;  %v1081_v35 = vpop.f32.mrb[10].mxu0 }
 0x10e   : > { %v465_v36 = vadd.f32 %v1081_v35, %v922_v11  ;;  %v456_v37 = vpop.f32.mrb[11].mxu0 }
 0x10f   : > { %v457_v38 = vadd.f32 %v922_v11, %v456_v37 }
 0x110   : > { %v986_v39 = vpack.c.bf16 %v465_v36, %v462_v32 }
 0x111   : > { %v981_v40 = vpack.c.bf16 %v457_v38, %v454_v34 }
 0x112   : > { %1002 = vst [vmem:[%s1393_s30 + $0x28] sm:$0xff] %v986_v39  }
 0x113   : > { %1161 = vmatpush3.bf16.xpose.msra.mxu1 %v971_v30  ;;  %1001 = vst [vmem:[%s1393_s30 + $0x20] sm:$0xff] %v981_v40   ;;  %v1084_v41 = vpop.f32.mrb[12].mxu0 }
 0x114   : > { %1162 = vmatprep.subr.bf16.mxu1 %v1196_v53  ;;  %v478_v42 = vadd.f32 %v1084_v41, %v922_v11  ;;  %v469_v43 = vpop.f32.mrb[13].mxu0 }
 0x115   : > { %v470_v44 = vadd.f32 %v922_v11, %v469_v43  ;;  %v1085_v45 = vpop.f32.mrb[14].mxu0 }
 0x116   : > { %v481_v46 = vadd.f32 %v1085_v45, %v922_v11  ;;  %v472_v47 = vpop.f32.mrb[15].mxu0 }
 0x117   : > { %v473_v48 = vadd.f32 %v922_v11, %v472_v47 }
 0x118   : > { %v996_v49 = vpack.c.bf16 %v481_v46, %v478_v42 }
 0x119   : > { %v991_v50 = vpack.c.bf16 %v473_v48, %v470_v44 }
 0x11a   : > { %1004 = vst [vmem:[%s1393_s30 + $0x38] sm:$0xff] %v996_v49  }
 0x11b   : > { %1164 = vmatpush3.bf16.xpose.msra.mxu1 %v976_v29  ;;  %1003 = vst [vmem:[%s1393_s30 + $0x30] sm:$0xff] %v991_v50   ;;  %v1139_v54 = vpop.f32.mrb[16].mxu0 }
 0x11c   : > { %1165 = vmatprep.subr.bf16.mxu1 %v1196_v53  ;;  %v710_v55 = vadd.f32 %v1139_v54, %v939_v52  ;;  %v701_v56 = vpop.f32.mrb[17].mxu0 }
 0x11d   : > { %v1140_v57 = vpop.f32.mrb[18].mxu0 }
 0x11e   : > { %v766_v58 = vmax.f32 %v710_v55, 0.0  ;;  %v713_v59 = vadd.f32 %v1140_v57, %v939_v52  ;;  %v704_v60 = vpop.f32.mrb[19].mxu0 }
 0x11f   : > { %v705_v62 = vadd.f32 %v939_v52, %v704_v60 }
 0x120   : > { %782 = vst [vmem:[%s1421_s15 + $0x10] sm:$0xff] %v766_v58  ;;  %v767_v63 = vmax.f32 %v713_v59, 0.0 }
 0x121   : > { %v765_v0 = vmax.f32 %v705_v62, 0.0 }
 0x122   : > { %783 = vst [vmem:[%s1421_s15 + $0x18] sm:$0xff] %v767_v63 }
 0x123   : > { %1167 = vmatpush3.bf16.xpose.msra.mxu1 %v981_v40  ;;  %781 = vst [vmem:[%s1421_s15 + $0x8] sm:$0xff] %v765_v0  ;;  %v1143_v1 = vpop.f32.mrb[20].mxu0 }
 0x124   : > { %1168 = vmatprep.subr.bf16.mxu1 %v1196_v53  ;;  %v726_v2 = vadd.f32 %v1143_v1, %v939_v52  ;;  %v717_v3 = vpop.f32.mrb[21].mxu0 }
 0x125   : > { %v718_v4 = vadd.f32 %v939_v52, %v717_v3  ;;  %v1144_v5 = vpop.f32.mrb[22].mxu0 }
 0x126   : > { %v770_v6 = vmax.f32 %v726_v2, 0.0  ;;  %v729_v7 = vadd.f32 %v1144_v5, %v939_v52  ;;  %v720_v8 = vpop.f32.mrb[23].mxu0 }
 0x127   : > { %v768_v9 = vmax.f32 %v718_v4, 0.0  ;;  %v721_v10 = vadd.f32 %v939_v52, %v720_v8 }
 0x128   : > { %786 = vst [vmem:[%s1421_s15 + $0x30] sm:$0xff] %v770_v6  ;;  %v771_v11 = vmax.f32 %v729_v7, 0.0 }
 0x129   : > { %784 = vst [vmem:[%s1421_s15 + $0x20] sm:$0xff] %v768_v9  ;;  %v769_v12 = vmax.f32 %v721_v10, 0.0 }
 0x12a   : > { %787 = vst [vmem:[%s1421_s15 + $0x38] sm:$0xff] %v771_v11 }
 0x12b   : > { %1170 = vmatpush3.bf16.xpose.msra.mxu1 %v986_v39  ;;  %785 = vst [vmem:[%s1421_s15 + $0x28] sm:$0xff] %v769_v12  ;;  %v1147_v13 = vpop.f32.mrb[24].mxu0 }
 0x12c   : > { %1171 = vmatprep.subr.bf16.mxu1 %v1196_v53  ;;  %v742_v14 = vadd.f32 %v1147_v13, %v939_v52  ;;  %v733_v15 = vpop.f32.mrb[25].mxu0 }
 0x12d   : > { %v734_v16 = vadd.f32 %v939_v52, %v733_v15  ;;  %v1148_v17 = vpop.f32.mrb[26].mxu0 }
 0x12e   : > { %v774_v18 = vmax.f32 %v742_v14, 0.0  ;;  %v745_v19 = vadd.f32 %v1148_v17, %v939_v52  ;;  %v736_v20 = vpop.f32.mrb[27].mxu0 }
 0x12f   : > { %v772_v21 = vmax.f32 %v734_v16, 0.0  ;;  %v737_v22 = vadd.f32 %v939_v52, %v736_v20 }
 0x130   : > { %790 = vst [vmem:[%s1421_s15 + $0x50] sm:$0xff] %v774_v18  ;;  %v775_v23 = vmax.f32 %v745_v19, 0.0 }
 0x131   : > { %788 = vst [vmem:[%s1421_s15 + $0x40] sm:$0xff] %v772_v21  ;;  %v773_v24 = vmax.f32 %v737_v22, 0.0 }
 0x132   : > { %791 = vst [vmem:[%s1421_s15 + $0x58] sm:$0xff] %v775_v23 }
 0x133   : > { %1173 = vmatpush3.bf16.xpose.msra.mxu1 %v991_v50  ;;  %789 = vst [vmem:[%s1421_s15 + $0x48] sm:$0xff] %v773_v24  ;;  %v1151_v25 = vpop.f32.mrb[28].mxu0 }
 0x134   : > { %1174 = vmatprep.subr.bf16.mxu1 %v1196_v53  ;;  %v702_v53 = vadd.f32 %v939_v52, %v701_v56  ;;  %v758_v26 = vadd.f32 %v1151_v25, %v939_v52  ;;  %v749_v27 = vpop.f32.mrb[29].mxu0 }
 0x135   : > { %v750_v28 = vadd.f32 %v939_v52, %v749_v27  ;;  %v1152_v29 = vpop.f32.mrb[30].mxu0 }
 0x136   : > { %v764_v61 = vmax.f32 %v702_v53, 0.0  ;;  %v778_v30 = vmax.f32 %v758_v26, 0.0  ;;  %v761_v31 = vadd.f32 %v1152_v29, %v939_v52  ;;  %v752_v32 = vpop.f32.mrb[31].mxu0 }
 0x137   : > { %v776_v33 = vmax.f32 %v750_v28, 0.0  ;;  %v753_v34 = vadd.f32 %v939_v52, %v752_v32 }
 0x138   : > { %780 = vst [vmem:[%s1421_s15] sm:$0xff] %v764_v61  ;;  %794 = vst [vmem:[%s1421_s15 + $0x70] sm:$0xff] %v778_v30  ;;  %v779_v35 = vmax.f32 %v761_v31, 0.0 }
 0x139   : > { %792 = vst [vmem:[%s1421_s15 + $0x60] sm:$0xff] %v776_v33  ;;  %v777_v36 = vmax.f32 %v753_v34, 0.0 }
 0x13a   : > { %795 = vst [vmem:[%s1421_s15 + $0x78] sm:$0xff] %v779_v35 }
 0x13b   : > { %1176 = vmatpush3.bf16.xpose.msra.mxu1 %v996_v49  ;;  %793 = vst [vmem:[%s1421_s15 + $0x68] sm:$0xff] %v777_v36 }
 0x142   : > { %1119 = vmatmul.mubr.f32.vlgmr.msra.gmra.mrb[0].mxu1 %v564_v51 }
 0x215   : > { %v631_v37 = vpop.f32.mrb[0].mxu1 }
 0x216   : > { %635 = vst [vmem:[%s324_s16] sm:$0x1] %v631_v37  ;;  %v1120_v38 = vpop.f32.mrb[1].mxu1 }
 0x217 PF: > { %s19_s27 = sadd.s32 1, %s1194_s27  }
 0x218   : > { %p16_p5 = scmp.ge.s32.totalorder %s19_s27, 4  }
 0x21a   :  { %18 = sbr.rel (!%p16_p5) target bundleno = 1 (0x1), region = 98 }

// kernel: taobao_han_forward.6
= control target key start
LH: loop header
LB: loop body
LE: loop exit
PB: predicated region body
PF: predicated region fallthrough
CT: control target
= control target key end

     0   :  { %s2904_s0 = inlined_call_operand.vmem [shape: f32[256,128], index: 0, kind: input, shape index: {}]   ;;  %s2905_s1 = inlined_call_operand.vmem [shape: f32[1,128], index: 1, kind: input, shape index: {}]   ;;  %s2906_s2 = inlined_call_operand.<no memory space> [shape: f32[1,1], index: 2, kind: input, shape index: {}]   ;;  %s2907_s3 = inlined_call_operand.vmem [shape: f32[1,256], index: 3, kind: input, shape index: {}]   ;;  %s2908_s4 = inlined_call_operand.vmem [shape: bf16[256,128], index: 4, kind: input, shape index: {}]   ;;  %s2909_s5 = inlined_call_operand.vmem [shape: s8[256,256], index: 5, kind: input, shape index: {}]   ;;  %s2910_s6 = inlined_call_operand.vmem [shape: f32[256,128], index: 6, kind: output, shape index: {}]  }
   0x1   :  { %v11_v0 = vstv %s2906_s2 }
   0x2   :  { %12 = vst [vmem:[#allocation6] sm:$0x1] %v11_v0 }
   0x3   :  { %s2149_s23 = smov 0   ;;  %s2151_s24 = smov 0  }
   0x4   :  { %s2153_s25 = smov 0   ;;  %s2155_s26 = smov 0  }
   0x5   :  { %s2157_s27 = smov 0   ;;  %s2159_s28 = smov 0  }
   0x6   :  { %s2161_s29 = smov 0  }
   0x7 LB: > { %s27_s2 = sadd.s32 1, %s2097_s27  ;;  %s30_s30 = sadd.s32 1, %s2101_s28  ;;  %s2105_s29 = sphi %s2161_s29, %s18_s29   ;;  %s2101_s28 = sphi %s2159_s28, %s2962_s28   ;;  %s2097_s27 = sphi %s2157_s27, %s2961_s27   ;;  %s2093_s26 = sphi %s2155_s26, %s2960_s26   ;;  %s2089_s25 = sphi %s2153_s25, %s2959_s25   ;;  %s2085_s24 = sphi %s2151_s24, %s2958_s24   ;;  %s2081_s23 = sphi %s2149_s23, %s2957_s23  }
   0x8   : > { %p28_p0 = scmp.ge.s32.totalorder %s27_s2, 2  ;;  %p166_p1 = scmp.ne.s32.totalorder %s2085_s24, %s2081_s23 }
   0x9   : > { %p167_p2 = scmp.eq.s32.totalorder %s2105_s29, 0  ;;  %s159_s10 = sadd.s32 1, %s2085_s24 }
   0xa   : > { %s2964_s2 = smov (%p28_p0, %s27_s2), 0  ;;  %s2966_s30 = smov (!%p28_p0, %s30_s30), %s2101_s28 }
   0xb   : > { %p168_p3 = por %p167_p2, %p166_p1  ;;  %p32_p4 = scmp.ge.s32.totalorder %s2966_s30, 2 }
   0xc   : > { %s155_s7 = ssub.s32 %s2097_s27, %s2964_s2  ;;  %p1766_p6 = scmp.ge.s32.totalorder %s2105_s29, 4 }
   0xd   : > { %s2968_s30 = smov (%p32_p4, %s2966_s30), 0 }
   0xe   : > { %s154_s8 = ssub.s32 %s2101_s28, %s2968_s30  ;;  %224 = sbr.rel (%p1766_p6) target bundleno = 29 (0x1d), region = 24 }
   0xf   : > { %s156_s9 = sor.u32 %s155_s7, %s154_s8 }
  0x10   : > { %p157_p5 = scmp.eq.s32.totalorder %s156_s9, 0 }
  0x12   : > { %s2200_s11 = scalar_select %p157_p5, %s2085_s24, %s159_s10  }
  0x15   : > { %251 = sbr.rel (!%p168_p3) target bundleno = 29 (0x1d), region = 40  ;;  %s253_s12 = sand.u32 (%p168_p3), 1, %s2085_s24  }
  0x16   : > { %s1818_s13 = sshll.u32 (%p168_p3), %s2101_s28, 3  ;;  %s1767_s14 = sshll.u32 (%p168_p3), %s253_s12, 5 }
  0x17   : > { %s258_s15 = sadd.s32 (%p168_p3), %s2097_s27, %s1818_s13  ;;  %s255_s20 = scalar_lea.vmem (%p168_p3), [#allocation7], %s1767_s14 }
  0x18   : > { %s1770_s16 = sshll.u32 (%p168_p3), %s258_s15, 3 }
  0x19   : > { %s260_s19 = scalar_lea.vmem (%p168_p3), %s2909_s5, %s1770_s16 }
  0x1a   : > { %v294_v1 = vld [vmem:[%s260_s19] sm:$0xff] (%p168_p3)  ;;  %v296_v2 = vld [vmem:[%s260_s19 + $0x10] sm:$0xff] (%p168_p3) }
  0x1b   : > { %v298_v3 = vld [vmem:[%s260_s19 + $0x20] sm:$0xff] (%p168_p3)  ;;  %295 = vst [vmem:[%s255_s20] sm:$0xff] (%p168_p3), %v294_v1  ;;  %297 = vst [vmem:[%s255_s20 + $0x8] sm:$0xff] (%p168_p3), %v296_v2  ;;  %v300_v4 = vld [vmem:[%s260_s19 + $0x30] sm:$0xff] (%p168_p3) }
  0x1c   : > { %299 = vst [vmem:[%s255_s20 + $0x10] sm:$0xff] %v298_v3  ;;  %301 = vst [vmem:[%s255_s20 + $0x18] sm:$0xff] %v300_v4 }
  0x1d PF: > { %p1771_p7 = scmp.ge.s32.totalorder %s2105_s29, 1  ;;  %p306_p8 = scmp.lt.s32.totalorder %s2105_s29, 5 }
  0x1f   : > { %p307_p9 = pnand %p1771_p7, %p306_p8 }
  0x21   : > { %310 = sbr.rel (%p307_p9) target bundleno = 1051 (0x41b), region = 78 }
  0x28   : > { %s313_s21 = sand.u32 1, %s2081_s23   ;;  %s1773_s22 = sshll.u32 %s2093_s26, 4 }
  0x29   : > { %s1772_s7 = sshll.u32 %s313_s21, 5  ;;  %p356_p10 = scmp.lt.s32.totalorder %s1773_s22, 31 }
  0x2a   : > { %p361_p11 = scmp.lt.s32.totalorder %s2089_s25, 1  ;;  %s1775_s10 = sshll.u32 %s2089_s25, 4 }
  0x2b   : > { %s2970_s22 = smov (!%p356_p10, %s1773_s22), 31  ;;  %p365_p12 = scmp.lt.s32.totalorder %s1775_s10, 31 }
  0x2c   : > { %s2215_s8 = scalar_select %p361_p11, %s2089_s25, 1 }
  0x2d   : > { %s1774_s9 = sshll.u32 %s2970_s22, 3  ;;  %s2972_s10 = smov (!%p365_p12, %s1775_s10), 31 }
  0x2e   : > { %s2221_s14 = scalar_lea.vmem %s2904_s0, %s1774_s9  ;;  %s363_s17 = scalar_lea.vmem %s2907_s3, %s2215_s8 }
  0x2f   : > { %s2230_s18 = scalar_lea.vmem %s2910_s6, %s1774_s9  ;;  %s1776_s19 = sshll.u32 %s2972_s10, 2 }
  0x30   : > { %s2235_s22 = scalar_lea.vmem %s2908_s4, %s1776_s19  ;;  %s2237_s12 = scalar_lea.vmem [#allocation7], %s1772_s7 }
  0x31   : > { %p1779_p13 = scmp.ne.s32.totalorder %s2089_s25, 0 }
  0x32   : > { %v384_v5 = vld [vmem:[%s2221_s14 + $0x10] sm:$0xff] (!%p1779_p13)  ;;  %v2244_v6 = vld [vmem:[%s2905_s1] ss:$0 sm:$0xff] (!%p1779_p13)  ;;  %vm476_vm0 = vcmask (!%p1779_p13), 7168   ;;  %v385_v10 = vld [vmem:[%s2221_s14 + $0x18] sm:$0xff] (!%p1779_p13)  ;;  %v2107_v12 = vmov (!%p1779_p13), 0.0  }
  0x33   : > { %381 = sbr.rel (%p1779_p13) target bundleno = 227 (0xe3), region = 86  ;;  %v382_v7 = vld [vmem:[%s2221_s14] sm:$0xff] (!%p1779_p13)  ;;  %v407_v8 = vmul.f32 (!%p1779_p13), %v2244_v6, %v384_v5  ;;  %v383_v11 = vld [vmem:[%s2221_s14 + $0x8] sm:$0xff] (!%p1779_p13)  ;;  %509 = vst.msk [vmem:[#allocation4] sm:$0xff] (!%p1779_p13), %vm476_vm0, %v2107_v12  ;;  %510 = vst.msk [vmem:[#allocation4 + $0x8] sm:$0xff] (!%p1779_p13), %vm476_vm0, %v2107_v12  ;;  %v408_v14 = vmul.f32 (!%p1779_p13), %v2244_v6, %v385_v10 }
  0x34   : > { %v405_v9 = vmul.f32 (!%p1779_p13), %v2244_v6, %v382_v7  ;;  %511 = vst.msk [vmem:[#allocation4 + $0x10] sm:$0xff] (!%p1779_p13), %vm476_vm0, %v2107_v12  ;;  %512 = vst.msk [vmem:[#allocation4 + $0x18] sm:$0xff] (!%p1779_p13), %vm476_vm0, %v2107_v12  ;;  %v2108_v13 = vmov (!%p1779_p13), -1e+30   ;;  %v406_v15 = vmul.f32 (!%p1779_p13), %v2244_v6, %v383_v11  ;;  %v387_v16 = vld [vmem:[%s2221_s14 + $0x28] sm:$0xff] (!%p1779_p13)  ;;  %v386_v17 = vld [vmem:[%s2221_s14 + $0x20] sm:$0xff] (!%p1779_p13) }
  0x35   : > { %513 = vst.msk [vmem:[#allocation4 + $0x20] sm:$0xff] (!%p1779_p13), %vm476_vm0, %v2107_v12  ;;  %514 = vst.msk [vmem:[#allocation4 + $0x28] sm:$0xff] (!%p1779_p13), %vm476_vm0, %v2107_v12  ;;  %425 = vadd.xlane.f32.xlu1 (!%p1779_p13), %v407_v8  ;;  %v410_v18 = vmul.f32 (!%p1779_p13), %v2244_v6, %v387_v16  ;;  %v409_v19 = vmul.f32 (!%p1779_p13), %v2244_v6, %v386_v17  ;;  %v389_v20 = vld [vmem:[%s2221_s14 + $0x38] sm:$0xff] (!%p1779_p13)  ;;  %v388_v21 = vld [vmem:[%s2221_s14 + $0x30] sm:$0xff] (!%p1779_p13) }
  0x36   : > { %515 = vst.msk [vmem:[#allocation4 + $0x30] sm:$0xff] (!%p1779_p13), %vm476_vm0, %v2107_v12  ;;  %516 = vst.msk [vmem:[#allocation4 + $0x38] sm:$0xff] (!%p1779_p13), %vm476_vm0, %v2107_v12  ;;  %421 = vadd.xlane.f32.xlu0 (!%p1779_p13), %v405_v9  ;;  %v412_v22 = vmul.f32 (!%p1779_p13), %v2244_v6, %v389_v20  ;;  %v411_v23 = vmul.f32 (!%p1779_p13), %v2244_v6, %v388_v21  ;;  %v391_v24 = vld [vmem:[%s2221_s14 + $0x48] sm:$0xff] (!%p1779_p13)  ;;  %v390_v25 = vld [vmem:[%s2221_s14 + $0x40] sm:$0xff] (!%p1779_p13) }
  0x37   : > { %517 = vst.msk [vmem:[#allocation4 + $0x40] sm:$0xff] (!%p1779_p13), %vm476_vm0, %v2107_v12  ;;  %518 = vst.msk [vmem:[#allocation4 + $0x48] sm:$0xff] (!%p1779_p13), %vm476_vm0, %v2107_v12  ;;  %v414_v26 = vmul.f32 (!%p1779_p13), %v2244_v6, %v391_v24  ;;  %v413_v27 = vmul.f32 (!%p1779_p13), %v2244_v6, %v390_v25  ;;  %v393_v28 = vld [vmem:[%s2221_s14 + $0x58] sm:$0xff] (!%p1779_p13)  ;;  %v392_v29 = vld [vmem:[%s2221_s14 + $0x50] sm:$0xff] (!%p1779_p13) }
  0x38   : > { %519 = vst.msk [vmem:[#allocation4 + $0x50] sm:$0xff] (!%p1779_p13), %vm476_vm0, %v2107_v12  ;;  %520 = vst.msk [vmem:[#allocation4 + $0x58] sm:$0xff] (!%p1779_p13), %vm476_vm0, %v2107_v12  ;;  %v416_v30 = vmul.f32 (!%p1779_p13), %v2244_v6, %v393_v28  ;;  %v415_v31 = vmul.f32 (!%p1779_p13), %v2244_v6, %v392_v29  ;;  %v395_v32 = vld [vmem:[%s2221_s14 + $0x68] sm:$0xff] (!%p1779_p13)  ;;  %v394_v33 = vld [vmem:[%s2221_s14 + $0x60] sm:$0xff] (!%p1779_p13) }
  0x39   : > { %521 = vst.msk [vmem:[#allocation4 + $0x60] sm:$0xff] (!%p1779_p13), %vm476_vm0, %v2107_v12  ;;  %522 = vst.msk [vmem:[#allocation4 + $0x68] sm:$0xff] (!%p1779_p13), %vm476_vm0, %v2107_v12  ;;  %427 = vadd.xlane.f32.xlu1 (!%p1779_p13), %v408_v14  ;;  %v418_v34 = vmul.f32 (!%p1779_p13), %v2244_v6, %v395_v32  ;;  %v417_v35 = vmul.f32 (!%p1779_p13), %v2244_v6, %v394_v33  ;;  %v397_v36 = vld [vmem:[%s2221_s14 + $0x78] sm:$0xff] (!%p1779_p13)  ;;  %v396_v37 = vld [vmem:[%s2221_s14 + $0x70] sm:$0xff] (!%p1779_p13) }
  0x3a   : > { %523 = vst.msk [vmem:[#allocation4 + $0x70] sm:$0xff] %vm476_vm0, %v2107_v12  ;;  %524 = vst.msk [vmem:[#allocation4 + $0x78] sm:$0xff] %vm476_vm0, %v2107_v12  ;;  %423 = vadd.xlane.f32.xlu0 %v406_v15  ;;  %v420_v38 = vmul.f32 %v2244_v6, %v397_v36  ;;  %v419_v39 = vmul.f32 %v2244_v6, %v396_v37  ;;  %v1781_v40 = vld [vmem:[#allocation6] ss:$0 sm:$0xff] }
  0x3b   : > { %525 = vst [vmem:[#allocation5] sm:$0xff] %v2107_v12  ;;  %526 = vst [vmem:[#allocation5 + $0x8] sm:$0xff] %v2107_v12 }
  0x3c   : > { %527 = vst [vmem:[#allocation5 + $0x10] sm:$0xff] %v2107_v12  ;;  %528 = vst [vmem:[#allocation5 + $0x18] sm:$0xff] %v2107_v12 }
  0x3d   : > { %529 = vst [vmem:[#allocation5 + $0x20] sm:$0xff] %v2107_v12  ;;  %530 = vst [vmem:[#allocation5 + $0x28] sm:$0xff] %v2107_v12  ;;  %431 = vadd.xlane.f32.xlu1 %v410_v18 }
  0x3e   : > { %531 = vst [vmem:[#allocation5 + $0x30] sm:$0xff] %v2107_v12  ;;  %532 = vst [vmem:[#allocation5 + $0x38] sm:$0xff] %v2107_v12  ;;  %429 = vadd.xlane.f32.xlu0 %v409_v19 }
  0x3f   : > { %533 = vst [vmem:[#allocation5 + $0x40] sm:$0xff] %v2107_v12  ;;  %534 = vst [vmem:[#allocation5 + $0x48] sm:$0xff] %v2107_v12 }
  0x40   : > { %535 = vst [vmem:[#allocation5 + $0x50] sm:$0xff] %v2107_v12  ;;  %536 = vst [vmem:[#allocation5 + $0x58] sm:$0xff] %v2107_v12 }
  0x41   : > { %537 = vst [vmem:[#allocation5 + $0x60] sm:$0xff] %v2107_v12  ;;  %538 = vst [vmem:[#allocation5 + $0x68] sm:$0xff] %v2107_v12  ;;  %435 = vadd.xlane.f32.xlu1 %v412_v22 }
  0x42   : > { %539 = vst [vmem:[#allocation5 + $0x70] sm:$0xff] %v2107_v12  ;;  %540 = vst [vmem:[#allocation5 + $0x78] sm:$0xff] %v2107_v12  ;;  %433 = vadd.xlane.f32.xlu0 %v411_v23 }
  0x43   : > { %493 = vst.msk [vmem:[#allocation3] sm:$0xff] %vm476_vm0, %v2108_v13  ;;  %494 = vst.msk [vmem:[#allocation3 + $0x8] sm:$0xff] %vm476_vm0, %v2108_v13 }
  0x44   : > { %495 = vst.msk [vmem:[#allocation3 + $0x10] sm:$0xff] %vm476_vm0, %v2108_v13  ;;  %496 = vst.msk [vmem:[#allocation3 + $0x18] sm:$0xff] %vm476_vm0, %v2108_v13 }
  0x45   : > { %497 = vst.msk [vmem:[#allocation3 + $0x20] sm:$0xff] %vm476_vm0, %v2108_v13  ;;  %498 = vst.msk [vmem:[#allocation3 + $0x28] sm:$0xff] %vm476_vm0, %v2108_v13  ;;  %439 = vadd.xlane.f32.xlu1 %v414_v26 }
  0x46   : > { %499 = vst.msk [vmem:[#allocation3 + $0x30] sm:$0xff] %vm476_vm0, %v2108_v13  ;;  %500 = vst.msk [vmem:[#allocation3 + $0x38] sm:$0xff] %vm476_vm0, %v2108_v13  ;;  %437 = vadd.xlane.f32.xlu0 %v413_v27 }
  0x47   : > { %501 = vst.msk [vmem:[#allocation3 + $0x40] sm:$0xff] %vm476_vm0, %v2108_v13  ;;  %502 = vst.msk [vmem:[#allocation3 + $0x48] sm:$0xff] %vm476_vm0, %v2108_v13 }
  0x48   : > { %503 = vst.msk [vmem:[#allocation3 + $0x50] sm:$0xff] %vm476_vm0, %v2108_v13  ;;  %504 = vst.msk [vmem:[#allocation3 + $0x58] sm:$0xff] %vm476_vm0, %v2108_v13 }
  0x49   : > { %505 = vst.msk [vmem:[#allocation3 + $0x60] sm:$0xff] %vm476_vm0, %v2108_v13  ;;  %506 = vst.msk [vmem:[#allocation3 + $0x68] sm:$0xff] %vm476_vm0, %v2108_v13  ;;  %443 = vadd.xlane.f32.xlu1 %v416_v30 }
  0x4a   : > { %507 = vst.msk [vmem:[#allocation3 + $0x70] sm:$0xff] %vm476_vm0, %v2108_v13  ;;  %508 = vst.msk [vmem:[#allocation3 + $0x78] sm:$0xff] %vm476_vm0, %v2108_v13  ;;  %441 = vadd.xlane.f32.xlu0 %v415_v31 }
  0x4d   : > { %447 = vadd.xlane.f32.xlu1 %v418_v34 }
  0x4e   : > { %445 = vadd.xlane.f32.xlu0 %v417_v35 }
  0x51   : > { %451 = vadd.xlane.f32.xlu1 %v420_v38 }
  0x52   : > { %449 = vadd.xlane.f32.xlu0 %v419_v39 }
  0xc2   : > { %v426_v41 = vpop.xlane.xlu1 %425 }
  0xc3   : > { %v422_v42 = vpop.xlane.xlu0 %421  ;;  %v462_v43 = vadd.f32 %v1781_v40, %v426_v41 }
  0xc4   : > { %v460_v44 = vadd.f32 %v1781_v40, %v422_v42 }
  0xc5   : > { %479 = vst.msk [vmem:[#allocation2 + $0x10] sm:$0xff] %vm476_vm0, %v462_v43 }
  0xc6   : > { %477 = vst.msk [vmem:[#allocation2] sm:$0xff] %vm476_vm0, %v460_v44  ;;  %v428_v45 = vpop.xlane.xlu1 %427 }
  0xc7   : > { %v424_v46 = vpop.xlane.xlu0 %423  ;;  %v463_v47 = vadd.f32 %v1781_v40, %v428_v45 }
  0xc8   : > { %v461_v48 = vadd.f32 %v1781_v40, %v424_v46 }
  0xc9   : > { %480 = vst.msk [vmem:[#allocation2 + $0x18] sm:$0xff] %vm476_vm0, %v463_v47 }
  0xca   : > { %478 = vst.msk [vmem:[#allocation2 + $0x8] sm:$0xff] %vm476_vm0, %v461_v48  ;;  %v432_v49 = vpop.xlane.xlu1 %431 }
  0xcb   : > { %v430_v50 = vpop.xlane.xlu0 %429  ;;  %v465_v51 = vadd.f32 %v1781_v40, %v432_v49 }
  0xcc   : > { %v464_v52 = vadd.f32 %v1781_v40, %v430_v50 }
  0xcd   : > { %482 = vst.msk [vmem:[#allocation2 + $0x28] sm:$0xff] %vm476_vm0, %v465_v51 }
  0xce   : > { %481 = vst.msk [vmem:[#allocation2 + $0x20] sm:$0xff] %vm476_vm0, %v464_v52  ;;  %v436_v53 = vpop.xlane.xlu1 %435 }
  0xcf   : > { %v434_v54 = vpop.xlane.xlu0 %433  ;;  %v467_v55 = vadd.f32 %v1781_v40, %v436_v53 }
  0xd0   : > { %v466_v56 = vadd.f32 %v1781_v40, %v434_v54 }
  0xd1   : > { %484 = vst.msk [vmem:[#allocation2 + $0x38] sm:$0xff] %vm476_vm0, %v467_v55 }
  0xd2   : > { %483 = vst.msk [vmem:[#allocation2 + $0x30] sm:$0xff] %vm476_vm0, %v466_v56  ;;  %v440_v57 = vpop.xlane.xlu1 %439 }
  0xd3   : > { %v438_v58 = vpop.xlane.xlu0 %437  ;;  %v469_v59 = vadd.f32 %v1781_v40, %v440_v57 }
  0xd4   : > { %v468_v60 = vadd.f32 %v1781_v40, %v438_v58 }
  0xd5   : > { %486 = vst.msk [vmem:[#allocation2 + $0x48] sm:$0xff] %vm476_vm0, %v469_v59 }
  0xd6   : > { %485 = vst.msk [vmem:[#allocation2 + $0x40] sm:$0xff] %vm476_vm0, %v468_v60  ;;  %v444_v61 = vpop.xlane.xlu1 %443 }
  0xd7   : > { %v442_v62 = vpop.xlane.xlu0 %441  ;;  %v471_v63 = vadd.f32 %v1781_v40, %v444_v61 }
  0xd8   : > { %v470_v0 = vadd.f32 %v1781_v40, %v442_v62 }
  0xd9   : > { %488 = vst.msk [vmem:[#allocation2 + $0x58] sm:$0xff] %vm476_vm0, %v471_v63 }
  0xda   : > { %487 = vst.msk [vmem:[#allocation2 + $0x50] sm:$0xff] %vm476_vm0, %v470_v0  ;;  %v448_v1 = vpop.xlane.xlu1 %447 }
  0xdb   : > { %v446_v2 = vpop.xlane.xlu0 %445  ;;  %v473_v3 = vadd.f32 %v1781_v40, %v448_v1 }
  0xdc   : > { %v472_v4 = vadd.f32 %v1781_v40, %v446_v2 }
  0xdd   : > { %490 = vst.msk [vmem:[#allocation2 + $0x68] sm:$0xff] %vm476_vm0, %v473_v3 }
  0xde   : > { %489 = vst.msk [vmem:[#allocation2 + $0x60] sm:$0xff] %vm476_vm0, %v472_v4  ;;  %v452_v5 = vpop.xlane.xlu1 %451 }
  0xdf   : > { %v450_v6 = vpop.xlane.xlu0 %449  ;;  %v475_v7 = vadd.f32 %v1781_v40, %v452_v5 }
  0xe0   : > { %v474_v8 = vadd.f32 %v1781_v40, %v450_v6 }
  0xe1   : > { %492 = vst.msk [vmem:[#allocation2 + $0x78] sm:$0xff] %vm476_vm0, %v475_v7 }
  0xe2   : > { %491 = vst.msk [vmem:[#allocation2 + $0x70] sm:$0xff] %vm476_vm0, %v474_v8 }
  0xe3 PF: > { %v549_v9 = vld [vmem:[#allocation2 + $0x40] sm:$0xff]  ;;  %v2109_v11 = vmov 0   ;;  %v550_v12 = vld [vmem:[#allocation2 + $0x48] sm:$0xff]  ;;  %v544_v14 = vld [vmem:[#allocation2 + $0x18] sm:$0xff]  ;;  %p1815_p0 = scmp.ne.s32.totalorder %s2089_s25, 1 }
  0xe4   : > { %v541_v10 = vld [vmem:[#allocation2] sm:$0xff]  ;;  %1944 = vset.pattern.permute.xlu1 %v2109_v11  ;;  %1943 = vset.pattern.permute.xlu0 %v2109_v11  ;;  %v542_v13 = vld [vmem:[#allocation2 + $0x8] sm:$0xff]  ;;  %v543_v15 = vld [vmem:[#allocation2 + $0x10] sm:$0xff] }
  0xe5   : > { %600 = vperm.xlu1 %1944, %v549_v9   ;;  %560 = vperm.xlu0 %1943, %v541_v10   ;;  %v552_v16 = vld [vmem:[#allocation2 + $0x58] sm:$0xff]  ;;  %v551_v17 = vld [vmem:[#allocation2 + $0x50] sm:$0xff]  ;;  %v546_v18 = vld [vmem:[#allocation2 + $0x28] sm:$0xff] }
  0xe6   : > { %v545_v19 = vld [vmem:[#allocation2 + $0x20] sm:$0xff]  ;;  %v554_v20 = vld [vmem:[#allocation2 + $0x68] sm:$0xff]  ;;  %v548_v22 = vld [vmem:[#allocation2 + $0x38] sm:$0xff] }
  0xe7   : > { %v553_v21 = vld [vmem:[#allocation2 + $0x60] sm:$0xff]  ;;  %v547_v23 = vld [vmem:[#allocation2 + $0x30] sm:$0xff] }
  0xe8   : > { %v556_v24 = vld [vmem:[#allocation2 + $0x78] sm:$0xff]  ;;  %v708_v26 = vld [vmem:[%s2237_s12] sm:$0xff]  ;;  %v2331_v27 = vld [vmem:[%s363_s17] ss:$0 sm:$0xff] }
  0xe9   : > { %605 = vperm.xlu1 %1944, %v550_v12   ;;  %565 = vperm.xlu0 %1943, %v542_v13   ;;  %v555_v25 = vld [vmem:[#allocation2 + $0x70] sm:$0xff]  ;;  %v712_v28 = vunpack.c.0.s8 %v708_v26  ;;  %v713_v35 = vunpack.c.1.s8 %v708_v26  ;;  %v714_v48 = vunpack.c.2.s8 %v708_v26  ;;  %v715_v58 = vunpack.c.3.s8 %v708_v26 }
  0xea   : > { %v2334_v29 = vld [vmem:[%s2237_s12 + $0x10] sm:$0xff]  ;;  %v2381_v2 = vld [vmem:[%s2237_s12 + $0x8] sm:$0xff] }
  0xeb   : > { %v720_v34 = vunpack.c.0.s8 %v2334_v29  ;;  %vm2339_vm2 = vcmp.gt.s32.totalorder %v712_v28, 0  ;;  %v721_v41 = vunpack.c.1.s8 %v2334_v29  ;;  %vm2354_vm5 = vcmp.gt.s32.totalorder %v713_v35, 0 }
  0xec   : > { %vm2373_vm9 = vcmp.gt.s32.totalorder %v714_v48, 0  ;;  %v722_v62 = vunpack.c.2.s8 %v2334_v29  ;;  %v723_v5 = vunpack.c.3.s8 %v2334_v29  ;;  %vm2386_vm12 = vcmp.gt.s32.totalorder %v715_v58, 0 }
  0xed   : > { %575 = vperm.xlu1 %1944, %v544_v14   ;;  %570 = vperm.xlu0 %1943, %v543_v15   ;;  %vm2350_vm4 = vcmp.gt.s32.totalorder %v720_v34, 0  ;;  %vm2359_vm8 = vcmp.gt.s32.totalorder %v721_v41, 0  ;;  %v716_v13 = vunpack.c.0.s8 %v2381_v2  ;;  %v719_v58 = vunpack.c.3.s8 %v2381_v2 }
  0xee   : > { %vm2398_vm13 = vcmp.gt.s32.totalorder %v722_v62, 0  ;;  %vm2408_vm0 = vcmp.gt.s32.totalorder %v723_v5, 0 }
  0xf1   : > { %615 = vperm.xlu1 %1944, %v552_v16   ;;  %610 = vperm.xlu0 %1943, %v551_v17   ;;  %v2406_v17 = vld [vmem:[%s2237_s12 + $0x18] sm:$0xff] }
  0xf2   : > { %v724_v29 = vunpack.c.0.s8 %v2406_v17  ;;  %v725_v35 = vunpack.c.1.s8 %v2406_v17 }
  0xf5   : > { %585 = vperm.xlu1 %1944, %v546_v18   ;;  %580 = vperm.xlu0 %1943, %v545_v19  }
  0xf9   : > { %625 = vperm.xlu1 %1944, %v554_v20   ;;  %620 = vperm.xlu0 %1943, %v553_v21  }
  0xfd   : > { %595 = vperm.xlu1 %1944, %v548_v22   ;;  %590 = vperm.xlu0 %1943, %v547_v23  }
 0x101   : > { %635 = vperm.xlu1 %1944, %v556_v24   ;;  %630 = vperm.xlu0 %1943, %v555_v25   ;;  %v717_v24 = vunpack.c.1.s8 %v2381_v2 }
 0x164   : > { %v601_v30 = vpop.permute.xlu1 %600  ;;  %v561_v31 = vpop.permute.xlu0 %560 }
 0x165   : > { %v652_v32 = vadd.f32 %v2331_v27, %v601_v30  ;;  %v644_v33 = vadd.f32 %v2331_v27, %v561_v31 }
 0x167   : > { %v684_v36 = vmul.f32 0.2, %v652_v32  ;;  %v676_v37 = vmul.f32 0.2, %v644_v33  ;;  %vm660_vm1 = vcmp.ge.f32.partialorder %v644_v33, 0.0  ;;  %vm668_vm3 = vcmp.ge.f32.partialorder %v652_v32, 0.0 }
 0x168   : > { %v606_v39 = vpop.permute.xlu1 %605  ;;  %v566_v40 = vpop.permute.xlu0 %565 }
 0x169   : > { %v653_v42 = vadd.f32 %v2331_v27, %v606_v39  ;;  %v645_v43 = vadd.f32 %v2331_v27, %v566_v40  ;;  %v692_v44 = vsel %vm660_vm1, %v644_v33, %v676_v37  ;;  %v700_v51 = vsel %vm668_vm3, %v652_v32, %v684_v36 }
 0x16a   : > { %v2348_v45 = vsel %vm2339_vm2, %v692_v44, -1e+30  ;;  %v2367_v59 = vsel %vm2350_vm4, %v700_v51, -1e+30  ;;  %vm2423_vm1 = vcmp.gt.s32.totalorder %v716_v13, 0  ;;  %v718_v44 = vunpack.c.2.s8 %v2381_v2 }
 0x16b   : > { %v685_v49 = vmul.f32 0.2, %v653_v42  ;;  %v677_v50 = vmul.f32 0.2, %v645_v43  ;;  %776 = vmax.xlane.f32.xlu0 %v2348_v45  ;;  %vm661_vm6 = vcmp.ge.f32.partialorder %v645_v43, 0.0  ;;  %vm669_vm7 = vcmp.ge.f32.partialorder %v653_v42, 0.0 }
 0x16c   : > { %v576_v52 = vpop.permute.xlu1 %575  ;;  %v571_v53 = vpop.permute.xlu0 %570 }
 0x16d   : > { %v647_v55 = vadd.f32 %v2331_v27, %v576_v52  ;;  %v646_v56 = vadd.f32 %v2331_v27, %v571_v53  ;;  %v693_v57 = vsel %vm661_vm6, %v645_v43, %v677_v50  ;;  %v701_v1 = vsel %vm669_vm7, %v653_v42, %v685_v49 }
 0x16e   : > { %v2371_v60 = vsel %vm2354_vm5, %v693_v57, -1e+30  ;;  %v2392_v10 = vsel %vm2359_vm8, %v701_v1, -1e+30  ;;  %vm2433_vm7 = vcmp.gt.s32.totalorder %v717_v24, 0  ;;  %v2938_v43 = vmov 0 }
 0x16f   : > { %v679_v63 = vmul.f32 0.2, %v647_v55  ;;  %v678_v0 = vmul.f32 0.2, %v646_v56  ;;  %792 = vmax.xlane.f32.xlu0 %v2367_v59  ;;  %778 = vmax.xlane.f32.xlu1 %v2371_v60  ;;  %vm662_vm10 = vcmp.ge.f32.partialorder %v646_v56, 0.0  ;;  %vm663_vm11 = vcmp.ge.f32.partialorder %v647_v55, 0.0 }
 0x170   : > { %v616_v3 = vpop.permute.xlu1 %615  ;;  %v611_v4 = vpop.permute.xlu0 %610  ;;  %v2940_v53 = vmov 0  ;;  %v726_v1 = vunpack.c.2.s8 %v2406_v17 }
 0x171   : > { %v655_v6 = vadd.f32 %v2331_v27, %v616_v3  ;;  %v654_v7 = vadd.f32 %v2331_v27, %v611_v4  ;;  %v694_v8 = vsel %vm662_vm10, %v646_v56, %v678_v0  ;;  %v695_v16 = vsel %vm663_vm11, %v647_v55, %v679_v63 }
 0x172   : > { %v2396_v11 = vsel %vm2373_vm9, %v694_v8, -1e+30  ;;  %v2417_v25 = vsel %vm2386_vm12, %v695_v16, -1e+30  ;;  %vm2445_vm10 = vcmp.gt.s32.totalorder %v724_v29, 0  ;;  %v2942_v0 = vmov 0 }
 0x173   : > { %v687_v14 = vmul.f32 0.2, %v655_v6  ;;  %v686_v15 = vmul.f32 0.2, %v654_v7  ;;  %794 = vmax.xlane.f32.xlu0 %v2392_v10  ;;  %780 = vmax.xlane.f32.xlu1 %v2396_v11  ;;  %vm670_vm14 = vcmp.ge.f32.partialorder %v654_v7, 0.0  ;;  %vm671_vm15 = vcmp.ge.f32.partialorder %v655_v6, 0.0 }
 0x174   : > { %v586_v18 = vpop.permute.xlu1 %585  ;;  %v581_v19 = vpop.permute.xlu0 %580  ;;  %v2939_v43 = vsel %vm2445_vm10, 4294967295, %v2938_v43 }
 0x175   : > { %v649_v21 = vadd.f32 %v2331_v27, %v586_v18  ;;  %v648_v22 = vadd.f32 %v2331_v27, %v581_v19  ;;  %v702_v23 = vsel %vm670_vm14, %v654_v7, %v686_v15  ;;  %v703_v32 = vsel %vm671_vm15, %v655_v6, %v687_v14 }
 0x176   : > { %v2421_v26 = vsel %vm2398_vm13, %v702_v23, -1e+30  ;;  %v2439_v41 = vsel %vm2408_vm0, %v703_v32, -1e+30  ;;  %vm2452_vm15 = vcmp.gt.s32.totalorder %v725_v35, 0  ;;  %v727_v19 = vunpack.c.3.s8 %v2406_v17  ;;  %v1945_v32 = vld [vmem:[%s2235_s22] sm:$0xff]  }
 0x177   : > { %v681_v30 = vmul.f32 0.2, %v649_v21  ;;  %v680_v31 = vmul.f32 0.2, %v648_v22  ;;  %782 = vmax.xlane.f32.xlu0 %v2417_v25  ;;  %796 = vmax.xlane.f32.xlu1 %v2421_v26  ;;  %vm664_vm3 = vcmp.ge.f32.partialorder %v648_v22, 0.0  ;;  %vm665_vm6 = vcmp.ge.f32.partialorder %v649_v21, 0.0 }
 0x178   : > { %v626_v33 = vpop.permute.xlu1 %625  ;;  %v621_v34 = vpop.permute.xlu0 %620  ;;  %v2941_v53 = vsel %vm2452_vm15, 4294967295, %v2940_v53  ;;  %1835 = vmatprep.subr.bf16.mxu0 %v1945_v32  ;;  %1867 = vmatprep.subr.bf16.mxu1 %v1945_v32 }
 0x179   : > { %v657_v36 = vadd.f32 %v2331_v27, %v626_v33  ;;  %v656_v37 = vadd.f32 %v2331_v27, %v621_v34  ;;  %v696_v39 = vsel %vm664_vm3, %v648_v22, %v680_v31  ;;  %v697_v50 = vsel %vm665_vm6, %v649_v21, %v681_v30  ;;  %1836 = vmatpush3.bf16.msra.mxu0 %v1945_v32  ;;  %v2515_v33 = vld [vmem:[#allocation3] sm:$0xff] }
 0x17a   : > { %v2443_v42 = vsel %vm2423_vm1, %v696_v39, -1e+30  ;;  %v2461_v62 = vsel %vm2433_vm7, %v697_v50, -1e+30  ;;  %vm2467_vm3 = vcmp.gt.s32.totalorder %v718_v44, 0  ;;  %1875 = vmatpush3.bf16.msra.mxu1 %v1945_v32  ;;  %v1946_v39 = vld [vmem:[%s2235_s22 + $0x8] sm:$0xff]  }
 0x17b   : > { %v689_v48 = vmul.f32 0.2, %v657_v36  ;;  %v688_v49 = vmul.f32 0.2, %v656_v37  ;;  %798 = vmax.xlane.f32.xlu0 %v2439_v41  ;;  %784 = vmax.xlane.f32.xlu1 %v2443_v42  ;;  %vm672_vm11 = vcmp.ge.f32.partialorder %v656_v37, 0.0  ;;  %vm673_vm14 = vcmp.ge.f32.partialorder %v657_v36, 0.0 }
 0x17c   : > { %v596_v51 = vpop.permute.xlu1 %595  ;;  %v591_v52 = vpop.permute.xlu0 %590  ;;  %v2943_v0 = vsel %vm2467_vm3, 4294967295, %v2942_v0  ;;  %1837 = vmatprep.subr.bf16.mxu0 %v1946_v39  ;;  %1868 = vmatprep.subr.bf16.mxu1 %v1946_v39 }
 0x17d   : > { %v651_v55 = vadd.f32 %v2331_v27, %v596_v51  ;;  %v650_v56 = vadd.f32 %v2331_v27, %v591_v52  ;;  %v704_v57 = vsel %vm672_vm11, %v656_v37, %v688_v49  ;;  %v705_v2 = vsel %vm673_vm14, %v657_v36, %v689_v48  ;;  %v2520_v36 = vld [vmem:[#allocation3 + $0x8] sm:$0xff]  ;;  %v2522_v37 = vld [vmem:[#allocation3 + $0x40] sm:$0xff]  ;;  %v2532_v51 = vld [vmem:[#allocation3 + $0x10] sm:$0xff]  ;;  %1838 = vmatpush3.bf16.msra.mxu0 %v1946_v39 }
 0x17e   : > { %v2465_v63 = vsel %vm2445_vm10, %v704_v57, -1e+30  ;;  %vm2476_vm10 = vcmp.gt.s32.totalorder %v719_v58, 0  ;;  %v2482_v15 = vsel %vm2452_vm15, %v705_v2, -1e+30  ;;  %vm2488_vm14 = vcmp.gt.s32.totalorder %v726_v1, 0  ;;  %1876 = vmatpush3.bf16.msra.mxu1 %v1946_v39 }
 0x17f   : > { %v683_v3 = vmul.f32 0.2, %v651_v55  ;;  %v682_v4 = vmul.f32 0.2, %v650_v56  ;;  %786 = vmax.xlane.f32.xlu0 %v2461_v62  ;;  %800 = vmax.xlane.f32.xlu1 %v2465_v63  ;;  %vm666_vm6 = vcmp.ge.f32.partialorder %v650_v56, 0.0  ;;  %vm667_vm11 = vcmp.ge.f32.partialorder %v651_v55, 0.0 }
 0x180   : > { %v636_v5 = vpop.permute.xlu1 %635  ;;  %v631_v6 = vpop.permute.xlu0 %630  ;;  %v2534_v52 = vld [vmem:[#allocation3 + $0x48] sm:$0xff]  ;;  %v1948_v2 = vld [vmem:[%s2235_s22 + $0x18] sm:$0xff]  }
 0x181   : > { %v659_v7 = vadd.f32 %v2331_v27, %v636_v5  ;;  %v658_v8 = vadd.f32 %v2331_v27, %v631_v6  ;;  %v698_v13 = vsel %vm666_vm6, %v650_v56, %v682_v4  ;;  %v699_v22 = vsel %vm667_vm11, %v651_v55, %v683_v3  ;;  %v1947_v55 = vld [vmem:[%s2235_s22 + $0x10] sm:$0xff]   ;;  %v2549_v4 = vld [vmem:[#allocation3 + $0x18] sm:$0xff]  ;;  %v2579_v39 = vld [vmem:[#allocation3 + $0x28] sm:$0xff] }
 0x182   : > { %v2486_v16 = vsel %vm2467_vm3, %v698_v13, -1e+30  ;;  %v2497_v24 = vsel %vm2476_vm10, %v699_v22, -1e+30  ;;  %vm2505_vm3 = vcmp.gt.s32.totalorder %v727_v19, 0  ;;  %vm1096_vm11 = vcmask 7168   ;;  %1839 = vmatprep.subr.bf16.mxu0 %v1947_v55  ;;  %1869 = vmatprep.subr.bf16.mxu1 %v1947_v55 }
 0x183   : > { %v691_v27 = vmul.f32 0.2, %v659_v7  ;;  %v690_v21 = vmul.f32 0.2, %v658_v8  ;;  %802 = vmax.xlane.f32.xlu0 %v2482_v15  ;;  %788 = vmax.xlane.f32.xlu1 %v2486_v16  ;;  %vm674_vm6 = vcmp.ge.f32.partialorder %v658_v8, 0.0  ;;  %vm675_vm15 = vcmp.ge.f32.partialorder %v659_v7, 0.0 }
 0x184   : > { %v2547_v3 = vld [vmem:[#allocation3 + $0x50] sm:$0xff]  ;;  %1840 = vmatpush3.bf16.msra.mxu0 %v1947_v55  ;;  %1877 = vmatpush3.bf16.msra.mxu1 %v1947_v55  ;;  %v764_v13 = vld [vmem:[#allocation3 + $0x20] sm:$0xff]  ;;  %v2564_v19 = vld [vmem:[#allocation3 + $0x58] sm:$0xff] }
 0x185   : > { %v706_v23 = vsel %vm674_vm6, %v658_v8, %v690_v21  ;;  %v707_v17 = vsel %vm675_vm15, %v659_v7, %v691_v27  ;;  %1841 = vmatprep.subr.bf16.mxu0 %v1948_v2  ;;  %1870 = vmatprep.subr.bf16.mxu1 %v1948_v2  ;;  %v1949_v27 = vld [vmem:[%s2235_s22 + $0x20] sm:$0xff]   ;;  %vm1791_vm15 = vmpackc.low %vm2354_vm5, %vm2339_vm2 }
 0x186   : > { %v2501_v29 = vsel %vm2488_vm14, %v706_v23, -1e+30  ;;  %v2511_v31 = vsel %vm2505_vm3, %v707_v17, -1e+30  ;;  %vm1803_vm6 = vmpackc.low %vm2359_vm8, %vm2350_vm4 }
 0x187   : > { %790 = vmax.xlane.f32.xlu0 %v2497_v24  ;;  %804 = vmax.xlane.f32.xlu1 %v2501_v29 }
 0x188   : > { %1842 = vmatpush3.bf16.msra.mxu0 %v1948_v2  ;;  %1878 = vmatpush3.bf16.msra.mxu1 %v1948_v2 }
 0x189   : > { %1843 = vmatprep.subr.bf16.mxu0 %v1949_v27  ;;  %1871 = vmatprep.subr.bf16.mxu1 %v1949_v27 }
 0x18b   : > { %806 = vmax.xlane.f32.xlu0 %v2511_v31 }
 0x18c   : > { %1844 = vmatpush3.bf16.msra.mxu0 %v1949_v27  ;;  %1879 = vmatpush3.bf16.msra.mxu1 %v1949_v27 }
 0x1f8   : > { %v777_v34 = vpop.xlane.xlu0 %776 }
 0x1f9   : > { %v2518_v35 = vmax.f32 %v2515_v33, %v777_v34  ;;  %v2577_v34 = vld [vmem:[#allocation3 + $0x60] sm:$0xff] }
 0x1fb   : > { %1426 = vst.msk [vmem:[#allocation3] sm:$0xff] %vm1096_vm11, %v2518_v35  ;;  %874 = vperm.xlu1 %1944, %v2518_v35  }
 0x1fc   : > { %v779_v44 = vpop.xlane.xlu1 %778  ;;  %v793_v48 = vpop.xlane.xlu0 %792 }
 0x1fd   : > { %v809_v49 = vmax.f32 %v2520_v36, %v779_v44  ;;  %v2530_v50 = vmax.f32 %v2522_v37, %v793_v48  ;;  %v824_v44 = vsub.f32 %v2515_v33, %v2518_v35  ;;  %v766_v33 = vld [vmem:[#allocation3 + $0x30] sm:$0xff]  ;;  %v2594_v35 = vld [vmem:[#allocation3 + $0x68] sm:$0xff] }
 0x1ff   : > { %1427 = vst.msk [vmem:[#allocation3 + $0x8] sm:$0xff] %vm1096_vm11, %v809_v49  ;;  %1434 = vst.msk [vmem:[#allocation3 + $0x40] sm:$0xff] %vm1096_vm11, %v2530_v50  ;;  %879 = vperm.xlu0 %1943, %v809_v49   ;;  %914 = vperm.xlu1 %1944, %v2530_v50   ;;  %v825_v21 = vsub.f32 %v2520_v36, %v809_v49  ;;  %v1950_v36 = vld [vmem:[%s2235_s22 + $0x28] sm:$0xff]  }
 0x200   : > { %v781_v56 = vpop.xlane.xlu1 %780  ;;  %v795_v57 = vpop.xlane.xlu0 %794  ;;  %1845 = vmatprep.subr.bf16.mxu0 %v1950_v36  ;;  %1872 = vmatprep.subr.bf16.mxu1 %v1950_v36 }
 0x201   : > { %v2542_v58 = vmax.f32 %v2532_v51, %v781_v56  ;;  %v2545_v1 = vmax.f32 %v2534_v52, %v795_v57  ;;  %v842_v48 = vmul.f32 1.442695, %v825_v21  ;;  %1846 = vmatpush3.bf16.msra.mxu0 %v1950_v36  ;;  %1880 = vmatpush3.bf16.msra.mxu1 %v1950_v36  ;;  %v767_v36 = vld [vmem:[#allocation3 + $0x38] sm:$0xff] }
 0x203   : > { %1428 = vst.msk [vmem:[#allocation3 + $0x10] sm:$0xff] %vm1096_vm11, %v2542_v58  ;;  %1435 = vst.msk [vmem:[#allocation3 + $0x48] sm:$0xff] %vm1096_vm11, %v2545_v1  ;;  %884 = vperm.xlu0 %1943, %v2542_v58   ;;  %919 = vperm.xlu1 %1944, %v2545_v1   ;;  %1953 = vpow2.f32 %v842_v48  ;;  %v832_v48 = vsub.f32 %v2522_v37, %v2530_v50 }
 0x204   : > { %v797_v5 = vpop.xlane.xlu1 %796  ;;  %v783_v6 = vpop.xlane.xlu0 %782 }
 0x205   : > { %v2559_v7 = vmax.f32 %v2547_v3, %v797_v5  ;;  %v2562_v8 = vmax.f32 %v2549_v4, %v783_v6  ;;  %v840_v5 = vmul.f32 1.442695, %v824_v44  ;;  %v1951_v6 = vld [vmem:[%s2235_s22 + $0x30] sm:$0xff]  }
 0x206   : > { %1847 = vmatprep.subr.bf16.mxu0 %v1951_v6  ;;  %1873 = vmatprep.subr.bf16.mxu1 %v1951_v6  ;;  %v2608_v44 = vld [vmem:[#allocation3 + $0x70] sm:$0xff] }
 0x207   : > { %1436 = vst.msk [vmem:[#allocation3 + $0x50] sm:$0xff] %vm1096_vm11, %v2559_v7  ;;  %1429 = vst.msk [vmem:[#allocation3 + $0x18] sm:$0xff] %vm1096_vm11, %v2562_v8  ;;  %924 = vperm.xlu0 %1943, %v2559_v7   ;;  %889 = vperm.xlu1 %1944, %v2562_v8   ;;  %1955 = vpow2.f32 %v840_v5  ;;  %v1952_v5 = vld [vmem:[%s2235_s22 + $0x38] sm:$0xff]  }
 0x208   : > { %v785_v22 = vpop.xlane.xlu1 %784  ;;  %v799_v23 = vpop.xlane.xlu0 %798  ;;  %1848 = vmatpush3.bf16.msra.mxu0 %v1951_v6  ;;  %1881 = vmatpush3.bf16.msra.mxu1 %v1951_v6 }
 0x209   : > { %v812_v17 = vmax.f32 %v764_v13, %v785_v22  ;;  %v2575_v32 = vmax.f32 %v2564_v19, %v799_v23  ;;  %1849 = vmatprep.subr.bf16.mxu0 %v1952_v5  ;;  %1874 = vmatprep.subr.bf16.mxu1 %v1952_v5 }
 0x20b   : > { %1430 = vst.msk [vmem:[#allocation3 + $0x20] sm:$0xff] %vm1096_vm11, %v812_v17  ;;  %1437 = vst.msk [vmem:[#allocation3 + $0x58] sm:$0xff] %vm1096_vm11, %v2575_v32  ;;  %894 = vperm.xlu0 %1943, %v812_v17   ;;  %929 = vperm.xlu1 %1944, %v2575_v32   ;;  %v828_v49 = vsub.f32 %v764_v13, %v812_v17  ;;  %v826_v13 = vsub.f32 %v2532_v51, %v2542_v58 }
 0x20c   : > { %v801_v55 = vpop.xlane.xlu1 %800  ;;  %v787_v56 = vpop.xlane.xlu0 %786  ;;  %1850 = vmatpush3.bf16.msra.mxu0 %v1952_v5  ;;  %1882 = vmatpush3.bf16.msra.mxu1 %v1952_v5 }
 0x20d   : > { %v2589_v57 = vmax.f32 %v2577_v34, %v801_v55  ;;  %v2592_v2 = vmax.f32 %v2579_v39, %v787_v56  ;;  %v848_v27 = vmul.f32 1.442695, %v828_v49  ;;  %v844_v58 = vmul.f32 1.442695, %v826_v13 }
 0x20e   : > { %v827_v49 = vsub.f32 %v2549_v4, %v2562_v8  ;;  %v834_v13 = vsub.f32 %v2547_v3, %v2559_v7  ;;  %v2637_v7 = vpop.eup %1953 }
 0x20f   : > { %1438 = vst.msk [vmem:[#allocation3 + $0x60] sm:$0xff] %vm1096_vm11, %v2589_v57  ;;  %1431 = vst.msk [vmem:[#allocation3 + $0x28] sm:$0xff] %vm1096_vm11, %v2592_v2  ;;  %934 = vperm.xlu0 %1943, %v2589_v57   ;;  %899 = vperm.xlu1 %1944, %v2592_v2   ;;  %1957 = vpow2.f32 %v848_v27  ;;  %v829_v27 = vsub.f32 %v2579_v39, %v2592_v2 }
 0x210   : > { %v789_v21 = vpop.xlane.xlu1 %788  ;;  %v803_v22 = vpop.xlane.xlu0 %802  ;;  %v846_v8 = vmul.f32 1.442695, %v827_v49 }
 0x211   : > { %v814_v23 = vmax.f32 %v766_v33, %v789_v21  ;;  %v2606_v17 = vmax.f32 %v2594_v35, %v803_v22  ;;  %v856_v21 = vmul.f32 1.442695, %v832_v48  ;;  %v836_v48 = vsub.f32 %v2577_v34, %v2589_v57 }
 0x212   : > { %v850_v39 = vmul.f32 1.442695, %v829_v27  ;;  %v833_v34 = vsub.f32 %v2534_v52, %v2545_v1 }
 0x213   : > { %v830_v51 = vsub.f32 %v766_v33, %v814_v23  ;;  %1432 = vst.msk [vmem:[#allocation3 + $0x30] sm:$0xff] %vm1096_vm11, %v814_v23  ;;  %1439 = vst.msk [vmem:[#allocation3 + $0x68] sm:$0xff] %vm1096_vm11, %v2606_v17  ;;  %904 = vperm.xlu0 %1943, %v814_v23   ;;  %939 = vperm.xlu1 %1944, %v2606_v17   ;;  %v2622_v33 = vld [vmem:[#allocation3 + $0x78] sm:$0xff]  ;;  %v860_v23 = vmul.f32 1.442695, %v834_v13  ;;  %v837_v1 = vsub.f32 %v2594_v35, %v2606_v17 }
 0x214   : > { %v805_v55 = vpop.xlane.xlu1 %804  ;;  %v791_v56 = vpop.xlane.xlu0 %790 }
 0x215   : > { %v852_v6 = vmul.f32 1.442695, %v830_v51  ;;  %v2620_v37 = vmax.f32 %v2608_v44, %v805_v55  ;;  %v815_v50 = vmax.f32 %v767_v36, %v791_v56  ;;  %v864_v55 = vmul.f32 1.442695, %v836_v48 }
 0x217   : > { %1959 = vpow2.f32 %v852_v6  ;;  %1440 = vst.msk [vmem:[#allocation3 + $0x70] sm:$0xff] %vm1096_vm11, %v2620_v37  ;;  %1433 = vst.msk [vmem:[#allocation3 + $0x38] sm:$0xff] %vm1096_vm11, %v815_v50  ;;  %944 = vperm.xlu0 %1943, %v2620_v37   ;;  %909 = vperm.xlu1 %1944, %v815_v50   ;;  %v831_v2 = vsub.f32 %v767_v36, %v815_v50  ;;  %v858_v36 = vmul.f32 1.442695, %v833_v34 }
 0x218   : > { %1961 = vpow2.f32 %v844_v58  ;;  %v807_v22 = vpop.xlane.xlu0 %806  ;;  %v2647_v58 = vpop.eup %1955  ;;  %v835_v6 = vsub.f32 %v2564_v19, %v2575_v32  ;;  %v866_v19 = vmul.f32 1.442695, %v837_v1 }
 0x219   : > { %v2635_v3 = vmax.f32 %v2622_v33, %v807_v22  ;;  %1963 = vpow2.f32 %v856_v21  ;;  %v2649_v49 = vpop.eup %1957  ;;  %v854_v57 = vmul.f32 1.442695, %v831_v2 }
 0x21a   : > { %1965 = vpow2.f32 %v846_v8  ;;  %v862_v52 = vmul.f32 1.442695, %v835_v6 }
 0x21b   : > { %1441 = vst.msk [vmem:[#allocation3 + $0x78] sm:$0xff] %vm1096_vm11, %v2635_v3  ;;  %1136 = vperm.xlu0 %1943, %v2637_v7   ;;  %949 = vperm.xlu1 %1944, %v2635_v3   ;;  %1967 = vpow2.f32 %v860_v23  ;;  %v2954_v12 = vsub.f32 %v2622_v33, %v2635_v3 }
 0x21c   : > { %1969 = vpow2.f32 %v850_v39 }
 0x21d   : > { %1971 = vpow2.f32 %v864_v55 }
 0x21e   : > { %1973 = vpow2.f32 %v854_v57 }
 0x21f   : > { %1151 = vperm.xlu0 %1943, %v2649_v49   ;;  %1131 = vperm.xlu1 %1944, %v2647_v58   ;;  %1975 = vpow2.f32 %v858_v36 }
 0x220   : > { %1977 = vpow2.f32 %v862_v52 }
 0x221   : > { %v2655_v56 = vpop.eup %1959  ;;  %1979 = vpow2.f32 %v866_v19 }
 0x222   : > { %v2657_v5 = vpop.eup %1961 }
 0x223   : > { %1161 = vperm.xlu0 %1943, %v2655_v56   ;;  %1141 = vperm.xlu1 %1944, %v2657_v5   ;;  %v2663_v50 = vpop.eup %1963 }
 0x224   : > { %v2665_v21 = vpop.eup %1965 }
 0x225   : > { %v2671_v13 = vpop.eup %1967 }
 0x226   : > { %v2673_v8 = vpop.eup %1969 }
 0x227   : > { %1171 = vperm.xlu0 %1943, %v2663_v50   ;;  %1146 = vperm.xlu1 %1944, %v2665_v21   ;;  %v2677_v32 = vpop.eup %1971 }
 0x228   : > { %v2679_v27 = vpop.eup %1973 }
 0x229   : > { %v2683_v35 = vpop.eup %1975 }
 0x22a   : > { %v2686_v17 = vpop.eup %1977 }
 0x22b   : > { %1181 = vperm.xlu0 %1943, %v2671_v13   ;;  %1156 = vperm.xlu1 %1944, %v2673_v8   ;;  %v2689_v22 = vpop.eup %1979 }
 0x22c   : > { %2950 = vst [vmem:[#allocation8_spill] sm:$0xff] %v2689_v22 }
 0x22f   : > { %1191 = vperm.xlu0 %1943, %v2677_v32   ;;  %1166 = vperm.xlu1 %1944, %v2679_v27  }
 0x233   : > { %1176 = vperm.xlu1 %1944, %v2683_v35  }
 0x237   : > { %1186 = vperm.xlu1 %1944, %v2686_v17  }
 0x23b   : > { %1196 = vperm.xlu1 %1944, %v2689_v22  }
 0x27a   : > { %v875_v23 = vpop.permute.xlu1 %874 }
 0x27b   : > { %v952_v48 = vsub.f32 %v2348_v45, %v875_v23 }
 0x27d   : > { %v968_v39 = vmul.f32 1.442695, %v952_v48 }
 0x27e   : > { %v915_v2 = vpop.permute.xlu1 %914  ;;  %v880_v55 = vpop.permute.xlu0 %879 }
 0x27f   : > { %1981 = vpow2.f32 %v968_v39  ;;  %v960_v34 = vsub.f32 %v2367_v59, %v915_v2  ;;  %v953_v57 = vsub.f32 %v2371_v60, %v880_v55 }
 0x281   : > { %v970_v36 = vmul.f32 1.442695, %v953_v57  ;;  %v984_v6 = vmul.f32 1.442695, %v960_v34 }
 0x282   : > { %v920_v52 = vpop.permute.xlu1 %919  ;;  %v885_v1 = vpop.permute.xlu0 %884 }
 0x283   : > { %v961_v19 = vsub.f32 %v2392_v10, %v920_v52  ;;  %v954_v4 = vsub.f32 %v2396_v11, %v885_v1  ;;  %1983 = vpow2.f32 %v970_v36 }
 0x284   : > { %1985 = vpow2.f32 %v984_v6 }
 0x285   : > { %v986_v51 = vmul.f32 1.442695, %v961_v19  ;;  %v972_v22 = vmul.f32 1.442695, %v954_v4 }
 0x286   : > { %v890_v45 = vpop.permute.xlu1 %889  ;;  %v925_v23 = vpop.permute.xlu0 %924 }
 0x287   : > { %1987 = vpow2.f32 %v986_v51  ;;  %v955_v48 = vsub.f32 %v2417_v25, %v890_v45  ;;  %v962_v59 = vsub.f32 %v2421_v26, %v925_v23 }
 0x288   : > { %1989 = vpow2.f32 %v972_v22 }
 0x289   : > { %v1982_v60 = vpop.eup %1981  ;;  %v974_v39 = vmul.f32 1.442695, %v955_v48  ;;  %v988_v2 = vmul.f32 1.442695, %v962_v59 }
 0x28a   : > { %v930_v55 = vpop.permute.xlu1 %929  ;;  %v895_v34 = vpop.permute.xlu0 %894  ;;  %v1000_v10 = vsel %vm2339_vm2, %v1982_v60, 0.0  ;;  %vm1794_vm2 = vmpackc.low %vm2386_vm12, %vm2373_vm9 }
 0x28b   : > { %1991 = vpow2.f32 %v974_v39  ;;  %v963_v11 = vsub.f32 %v2439_v41, %v930_v55  ;;  %v956_v4 = vsub.f32 %v2443_v42, %v895_v34  ;;  %1048 = vadd.xlane.f32.xlu0 %v1000_v10 }
 0x28c   : > { %1993 = vpow2.f32 %v988_v2 }
 0x28d   : > { %v990_v51 = vmul.f32 1.442695, %v963_v11  ;;  %v976_v57 = vmul.f32 1.442695, %v956_v4  ;;  %v1984_v25 = vpop.eup %1983 }
 0x28e   : > { %v900_v26 = vpop.permute.xlu1 %899  ;;  %v935_v22 = vpop.permute.xlu0 %934  ;;  %v1001_v52 = vsel %vm2354_vm5, %v1984_v25, 0.0  ;;  %v1792_v42 = vpack.c.bf16 %v1984_v25, %v1982_v60  ;;  %vm1806_vm5 = vmpackc.low %vm2408_vm0, %vm2398_vm13 }
 0x28f   : > { %1995 = vpow2.f32 %v990_v51  ;;  %v957_v36 = vsub.f32 %v2461_v62, %v900_v26  ;;  %v964_v6 = vsub.f32 %v2465_v63, %v935_v22  ;;  %v2711_v41 = vpop.eup %1985  ;;  %1050 = vadd.xlane.f32.xlu1 %v1001_v52 }
 0x290   : > { %1997 = vpow2.f32 %v976_v57  ;;  %1851 = vmatprep.mubr.msk.bf16.mxu0 %vm1791_vm15, %v1792_v42  ;;  %vm2952_vm15 = vnez %v2941_v53 }
 0x291   : > { %v2713_v1 = vpop.eup %1987  ;;  %v978_v19 = vmul.f32 1.442695, %v957_v36  ;;  %v992_v63 = vmul.f32 1.442695, %v964_v6 }
 0x292   : > { %v1990_v62 = vpop.eup %1989  ;;  %v940_v38 = vpop.permute.xlu1 %939  ;;  %v1804_v47 = vpack.c.bf16 %v2713_v1, %v2711_v41 }
 0x293   : > { %v905_v45 = vpop.permute.xlu0 %904  ;;  %1999 = vpow2.f32 %v978_v19  ;;  %v965_v23 = vsub.f32 %v2482_v15, %v940_v38  ;;  %v1002_v59 = vsel %vm2373_vm9, %v1990_v62, 0.0  ;;  %vm1797_vm9 = vmpackc.low %vm2433_vm7, %vm2423_vm1 }
 0x294   : > { %v958_v48 = vsub.f32 %v2486_v16, %v905_v45  ;;  %1052 = vadd.xlane.f32.xlu0 %v1002_v59  ;;  %1859 = vmatprep.mubr.msk.bf16.mxu1 %vm1803_vm6, %v1804_v47  ;;  %2001 = vpow2.f32 %v992_v63  ;;  %v1008_v45 = vsel %vm2350_vm4, %v2711_v41, 0.0 }
 0x295   : > { %v1992_v60 = vpop.eup %1991  ;;  %v994_v39 = vmul.f32 1.442695, %v965_v23 }
 0x296   : > { %v980_v2 = vmul.f32 1.442695, %v958_v48  ;;  %v910_v55 = vpop.permute.xlu1 %909  ;;  %v1003_v15 = vsel %vm2386_vm12, %v1992_v60, 0.0  ;;  %v1795_v16 = vpack.c.bf16 %v1992_v60, %v1990_v62  ;;  %v1994_v4 = vpop.eup %1993  ;;  %vm2951_vm12 = vnez %v2939_v43 }
 0x297   : > { %v945_v34 = vpop.permute.xlu0 %944  ;;  %2003 = vpow2.f32 %v994_v39  ;;  %v959_v10 = vsub.f32 %v2497_v24, %v910_v55  ;;  %vm1809_vm6 = vmpackc.low %vm2952_vm15, %vm2951_vm12  ;;  %v1010_v48 = vsel %vm2398_vm13, %v1994_v4, 0.0  ;;  %v2955_v43 = vsub.f32 %v2608_v44, %v2620_v37 }
 0x298   : > { %v966_v11 = vsub.f32 %v2501_v29, %v945_v34  ;;  %2005 = vpow2.f32 %v980_v2  ;;  %1054 = vadd.xlane.f32.xlu0 %v1003_v15  ;;  %1852 = vmatmul.mubr.msk.bf16.vlgmr.msra.gmra.mrb[0].mxu0 %vm1794_vm2, %v1795_v16  ;;  %vm2953_vm2 = vnez %v2943_v0  ;;  %v1009_v0 = vsel %vm2359_vm8, %v2713_v1, 0.0 }
 0x299   : > { %v1996_v61 = vpop.eup %1995  ;;  %v982_v51 = vmul.f32 1.442695, %v959_v10  ;;  %v870_v1 = vmul.f32 1.442695, %v2954_v12  ;;  %v868_v60 = vmul.f32 1.442695, %v2955_v43 }
 0x29a   : > { %v1998_v57 = vpop.eup %1997  ;;  %v996_v9 = vmul.f32 1.442695, %v966_v11  ;;  %v950_v25 = vpop.permute.xlu1 %949  ;;  %v1807_v26 = vpack.c.bf16 %v1996_v61, %v1994_v4  ;;  %v1011_v46 = vsel %vm2408_vm0, %v1996_v61, 0.0  ;;  %v1016_v4 = vld [vmem:[#allocation4] sm:$0xff]  ;;  %v1026_v12 = vld [vmem:[#allocation4 + $0x50] sm:$0xff] }
 0x29b   : > { %2007 = vpow2.f32 %v982_v51  ;;  %v967_v24 = vsub.f32 %v2511_v31, %v950_v25  ;;  %v1004_v29 = vsel %vm2423_vm1, %v1998_v57, 0.0  ;;  %vm1800_vm1 = vmpackc.low %vm2476_vm10, %vm2953_vm2  ;;  %v2796_v30 = vpop.permute.xlu0 %1136  ;;  %v1032_v61 = vmul.f32 %v2647_v58, %v1016_v4  ;;  %v1017_v25 = vld [vmem:[#allocation4 + $0x8] sm:$0xff] }
 0x29c   : > { %1056 = vadd.xlane.f32.xlu1 %v1004_v29  ;;  %1860 = vmatmul.mubr.msk.bf16.vlgmr.msra.gmra.mrb[0].mxu1 %vm1806_vm5, %v1807_v26  ;;  %2009 = vpow2.f32 %v996_v9  ;;  %v1033_v26 = vmul.f32 %v2637_v7, %v1017_v25  ;;  %v1018_v29 = vld [vmem:[#allocation4 + $0x10] sm:$0xff] }
 0x29d   : > { %v2000_v22 = vpop.eup %1999  ;;  %v998_v36 = vmul.f32 1.442695, %v967_v24 }
 0x29e   : > { %v1005_v6 = vsel %vm2433_vm7, %v2000_v22, 0.0  ;;  %v1798_v52 = vpack.c.bf16 %v2000_v22, %v1998_v57  ;;  %v2002_v31 = vpop.eup %2001  ;;  %vm1812_vm7 = vmpackc.low %vm2505_vm3, %vm2488_vm14  ;;  %v2792_v33 = vpop.permute.xlu1 %1131 }
 0x29f   : > { %2011 = vpow2.f32 %v998_v36  ;;  %1058 = vadd.xlane.f32.xlu0 %v1005_v6  ;;  %v1012_v41 = vsel %vm2951_vm12, %v2002_v31, 0.0  ;;  %v2800_v2 = vpop.permute.xlu0 %1151  ;;  %v1034_v36 = vmul.f32 %v2657_v5, %v1018_v29  ;;  %v1030_v29 = vld [vmem:[#allocation4 + $0x70] sm:$0xff] }
 0x2a0   : > { %1855 = vmatprep.mubr.msk.bf16.mxu0 %vm1797_vm9, %v1798_v52  ;;  %2013 = vpow2.f32 %v870_v1  ;;  %v1019_v52 = vld [vmem:[#allocation4 + $0x18] sm:$0xff] }
 0x2a1   : > { %v2004_v42 = vpop.eup %2003  ;;  %2015 = vpow2.f32 %v868_v60  ;;  %v1035_v58 = vmul.f32 %v2665_v21, %v1019_v52 }
 0x2a2   : > { %v2006_v19 = vpop.eup %2005  ;;  %v1810_v28 = vpack.c.bf16 %v2004_v42, %v2002_v31  ;;  %v1013_v59 = vsel %vm2952_vm15, %v2004_v42, 0.0  ;;  %v2794_v3 = vpop.permute.xlu1 %1141 }
 0x2a3   : > { %v1006_v62 = vsel %vm2953_vm2, %v2006_v19, 0.0  ;;  %v2804_v37 = vpop.permute.xlu0 %1161 }
 0x2a4   : > { %1060 = vadd.xlane.f32.xlu1 %v1006_v62  ;;  %1863 = vmatprep.mubr.msk.bf16.mxu1 %vm1809_vm6, %v1810_v28  ;;  %v1021_v62 = vld [vmem:[#allocation4 + $0x28] sm:$0xff] }
 0x2a5   : > { %v2008_v40 = vpop.eup %2007 }
 0x2a6   : > { %v1007_v63 = vsel %vm2476_vm10, %v2008_v40, 0.0  ;;  %v1801_v38 = vpack.c.bf16 %v2008_v40, %v2006_v19  ;;  %v2010_v47 = vpop.eup %2009  ;;  %v2798_v39 = vpop.permute.xlu1 %1146  ;;  %v1020_v19 = vld [vmem:[#allocation4 + $0x20] sm:$0xff] }
 0x2a7   : > { %1062 = vadd.xlane.f32.xlu0 %v1007_v63  ;;  %v1014_v54 = vsel %vm2488_vm14, %v2010_v47, 0.0  ;;  %v2808_v34 = vpop.permute.xlu0 %1171  ;;  %v1036_v7 = vmul.f32 %v2649_v49, %v1020_v19 }
 0x2a8   : > { %1064 = vadd.xlane.f32.xlu1 %v1008_v45  ;;  %1856 = vmatmul.mubr.msk.bf16.gmra.mrb[4].mxu0 %vm1800_vm1, %v1801_v38  ;;  %v1037_v38 = vmul.f32 %v2673_v8, %v1021_v62  ;;  %v1113_v62 = vld [vmem:[#allocation5] sm:$0xff] }
 0x2a9   : > { %v2012_v23 = vpop.eup %2011 }
 0x2aa   : > { %v1813_v14 = vpack.c.bf16 %v2012_v23, %v2010_v47  ;;  %v1015_v20 = vsel %vm2505_vm3, %v2012_v23, 0.0  ;;  %v2786_v53 = vpop.eup %2013  ;;  %v2802_v44 = vpop.permute.xlu1 %1156  ;;  %v1022_v47 = vld [vmem:[#allocation4 + $0x30] sm:$0xff]  ;;  %v1023_v23 = vld [vmem:[#allocation4 + $0x38] sm:$0xff] }
 0x2ab   : > { %1066 = vadd.xlane.f32.xlu0 %v1009_v0  ;;  %v2789_v18 = vpop.eup %2015  ;;  %v2812_v16 = vpop.permute.xlu0 %1181  ;;  %v1038_v21 = vmul.f32 %v2655_v56, %v1022_v47  ;;  %v1039_v49 = vmul.f32 %v2679_v27, %v1023_v23  ;;  %v1027_v27 = vld [vmem:[#allocation4 + $0x58] sm:$0xff] }
 0x2ac   : > { %1068 = vadd.xlane.f32.xlu1 %v1010_v48  ;;  %1864 = vmatmul.mubr.msk.bf16.gmra.mrb[4].mxu1 %vm1812_vm7, %v1813_v14  ;;  %v1024_v14 = vld [vmem:[#allocation4 + $0x40] sm:$0xff] }
 0x2ae   : > { %v2806_v55 = vpop.permute.xlu1 %1166 }
 0x2af   : > { %1070 = vadd.xlane.f32.xlu0 %v1011_v46  ;;  %v2816_v11 = vpop.permute.xlu0 %1191  ;;  %v1040_v46 = vmul.f32 %v2663_v50, %v1024_v14  ;;  %v1124_v14 = vld [vmem:[#allocation5 + $0x58] sm:$0xff] }
 0x2b0   : > { %1072 = vadd.xlane.f32.xlu1 %v1012_v41  ;;  %v1025_v41 = vld [vmem:[#allocation4 + $0x48] sm:$0xff] }
 0x2b1   : > { %v1041_v56 = vmul.f32 %v2683_v35, %v1025_v41  ;;  %v1029_v35 = vld [vmem:[#allocation4 + $0x68] sm:$0xff] }
 0x2b2   : > { %v2810_v15 = vpop.permute.xlu1 %1176 }
 0x2b3   : > { %1074 = vadd.xlane.f32.xlu0 %v1013_v59 }
 0x2b4   : > { %1076 = vadd.xlane.f32.xlu1 %v1014_v54 }
 0x2b6   : > { %v2814_v10 = vpop.permute.xlu1 %1186 }
 0x2b7   : > { %1078 = vadd.xlane.f32.xlu0 %v1015_v20  ;;  %v1042_v20 = vmul.f32 %v2671_v13, %v1026_v12 }
 0x2ba   : > { %v2819_v57 = vpop.permute.xlu1 %1196 }
 0x2c5   : > { %1206 = vperm.xlu1 %1944, %v2786_v53  }
 0x2cd   : > { %1201 = vperm.xlu0 %1943, %v2789_v18  }
 0x318   : > { %v1049_v51 = vpop.xlane.xlu0 %1048 }
 0x319   : > { %v1080_v9 = vadd.f32 %v1049_v51, %v1032_v61  ;;  %v1028_v61 = vld [vmem:[#allocation4 + $0x60] sm:$0xff]  ;;  %v1043_v51 = vmul.f32 %v2686_v17, %v1027_v27  ;;  %v1031_v17 = vld [vmem:[#allocation4 + $0x78] sm:$0xff] }
 0x31b   : > { %1097 = vst.msk [vmem:[#allocation4] sm:$0xff] %vm1096_vm11, %v1080_v9  ;;  %v1044_v9 = vmul.f32 %v2677_v32, %v1028_v61  ;;  %v1047_v32 = vmul.f32 %v2786_v53, %v1031_v17  ;;  %v1118_v61 = vld [vmem:[#allocation5 + $0x28] sm:$0xff] }
 0x31c   : > { %v1051_v24 = vpop.xlane.xlu1 %1050 }
 0x31d   : > { %v1081_v22 = vadd.f32 %v1051_v24, %v1033_v26 }
 0x31f   : > { %1098 = vst.msk [vmem:[#allocation4 + $0x8] sm:$0xff] %vm1096_vm11, %v1081_v22  ;;  %v2956_v22 = vld [vmem:[#allocation8_spill] sm:$0xff] }
 0x321   : > { %v1053_v6 = vpop.xlane.xlu0 %1052 }
 0x322   : > { %v1082_v31 = vadd.f32 %v1053_v6, %v1034_v36  ;;  %v1045_v36 = vmul.f32 %v2956_v22, %v1029_v35  ;;  %v1046_v6 = vmul.f32 %v2789_v18, %v1030_v29  ;;  %v1125_v35 = vld [vmem:[#allocation5 + $0x60] sm:$0xff]  ;;  %v1214_v29 = vmul.f32 %v2802_v44, %v1118_v61 }
 0x324   : > { %1099 = vst.msk [vmem:[#allocation4 + $0x10] sm:$0xff] %vm1096_vm11, %v1082_v31 }
 0x325   : > { %v1055_v42 = vpop.xlane.xlu0 %1054 }
 0x326   : > { %v1083_v28 = vadd.f32 %v1055_v42, %v1035_v58 }
 0x328   : > { %1100 = vst.msk [vmem:[#allocation4 + $0x18] sm:$0xff] %vm1096_vm11, %v1083_v28 }
 0x329   : > { %v1057_v40 = vpop.xlane.xlu1 %1056 }
 0x32a   : > { %v1084_v63 = vadd.f32 %v1057_v40, %v1036_v7  ;;  %v1115_v7 = vld [vmem:[#allocation5 + $0x10] sm:$0xff]  ;;  %v1116_v40 = vld [vmem:[#allocation5 + $0x18] sm:$0xff] }
 0x32b   : > { %v1211_v18 = vmul.f32 %v2794_v3, %v1115_v7  ;;  %v1212_v47 = vmul.f32 %v2798_v39, %v1116_v40  ;;  %v1220_v39 = vmul.f32 %v2814_v10, %v1124_v14 }
 0x32c   : > { %1101 = vst.msk [vmem:[#allocation4 + $0x20] sm:$0xff] %vm1096_vm11, %v1084_v63  ;;  %v1059_v5 = vpop.xlane.xlu0 %1058  ;;  %v1114_v63 = vld [vmem:[#allocation5 + $0x8] sm:$0xff] }
 0x32d   : > { %v1085_v45 = vadd.f32 %v1059_v5, %v1037_v38  ;;  %v1209_v38 = vmul.f32 %v2792_v33, %v1113_v62  ;;  %v1123_v5 = vld [vmem:[#allocation5 + $0x50] sm:$0xff] }
 0x32f   : > { %1102 = vst.msk [vmem:[#allocation4 + $0x28] sm:$0xff] %vm1096_vm11, %v1085_v45 }
 0x331   : > { %v1061_v0 = vpop.xlane.xlu1 %1060 }
 0x332   : > { %v1086_v48 = vadd.f32 %v1061_v0, %v1038_v21  ;;  %v1121_v21 = vld [vmem:[#allocation5 + $0x40] sm:$0xff]  ;;  %v1210_v0 = vmul.f32 %v2796_v30, %v1114_v63 }
 0x333   : > { %v1217_v33 = vmul.f32 %v2808_v34, %v1121_v21  ;;  %v1119_v34 = vld [vmem:[#allocation5 + $0x30] sm:$0xff] }
 0x334   : > { %1103 = vst.msk [vmem:[#allocation4 + $0x30] sm:$0xff] %vm1096_vm11, %v1086_v48  ;;  %v1063_v8 = vpop.xlane.xlu0 %1062  ;;  %v1215_v10 = vmul.f32 %v2804_v37, %v1119_v34 }
 0x335   : > { %v1065_v59 = vpop.xlane.xlu1 %1064  ;;  %v1087_v54 = vadd.f32 %v1063_v8, %v1039_v49  ;;  %v1122_v8 = vld [vmem:[#allocation5 + $0x48] sm:$0xff] }
 0x336   : > { %v1088_v1 = vadd.f32 %v1065_v59, %v1040_v46  ;;  %v1219_v46 = vmul.f32 %v2812_v16, %v1123_v5  ;;  %v1218_v30 = vmul.f32 %v2810_v15, %v1122_v8  ;;  %v2110_v5 = vmov (!%p1815_p0), 0  }
 0x337   : > { %1104 = vst.msk [vmem:[#allocation4 + $0x38] sm:$0xff] %vm1096_vm11, %v1087_v54  ;;  %2018 = vset.pattern.permute.xlu1 (!%p1815_p0), %v2110_v5  ;;  %2017 = vset.pattern.permute.xlu0 (!%p1815_p0), %v2110_v5 }
 0x338   : > { %1105 = vst.msk [vmem:[#allocation4 + $0x40] sm:$0xff] %vm1096_vm11, %v1088_v1  ;;  %v1067_v43 = vpop.xlane.xlu0 %1066 }
 0x339   : > { %v1069_v60 = vpop.xlane.xlu1 %1068  ;;  %v1089_v4 = vadd.f32 %v1067_v43, %v1041_v56 }
 0x33a   : > { %v1090_v50 = vadd.f32 %v1069_v60, %v1042_v20  ;;  %v1117_v60 = vld [vmem:[#allocation5 + $0x20] sm:$0xff] }
 0x33b   : > { %1106 = vst.msk [vmem:[#allocation4 + $0x48] sm:$0xff] %vm1096_vm11, %v1089_v4  ;;  %v1120_v4 = vld [vmem:[#allocation5 + $0x38] sm:$0xff] }
 0x33c   : > { %1107 = vst.msk [vmem:[#allocation4 + $0x50] sm:$0xff] %vm1096_vm11, %v1090_v50  ;;  %v1071_v25 = vpop.xlane.xlu0 %1070  ;;  %v1213_v50 = vmul.f32 %v2800_v2, %v1117_v60  ;;  %v1221_v2 = vmul.f32 %v2816_v11, %v1125_v35  ;;  %v1448_v11 = vld [vmem:[#allocation4 + $0x10] sm:$0xff] (!%p1815_p0) }
 0x33d   : > { %v1073_v26 = vpop.xlane.xlu1 %1072  ;;  %v1091_v24 = vadd.f32 %v1071_v25, %v1043_v51  ;;  %v1127_v51 = vld [vmem:[#allocation5 + $0x70] sm:$0xff]  ;;  %v1216_v25 = vmul.f32 %v2806_v55, %v1120_v4  ;;  %vm1464_vm4 = vcmp.gt.f32.partialorder (!%p1815_p0), %v1448_v11, 0.0 }
 0x33e   : > { %v1092_v13 = vadd.f32 %v1073_v26, %v1044_v9  ;;  %v1480_v21 = vsel (!%p1815_p0), %vm1464_vm4, %v1448_v11, 1.0  ;;  %v1453_v14 = vld [vmem:[#allocation4 + $0x38] sm:$0xff] (!%p1815_p0) }
 0x33f   : > { %1108 = vst.msk [vmem:[#allocation4 + $0x58] sm:$0xff] %vm1096_vm11, %v1091_v24  ;;  %2019 = vrcp.f32 (!%p1815_p0), %v1480_v21  ;;  %vm1469_vm14 = vcmp.gt.f32.partialorder (!%p1815_p0), %v1453_v14, 0.0 }
 0x340   : > { %1109 = vst.msk [vmem:[#allocation4 + $0x60] sm:$0xff] %vm1096_vm11, %v1092_v13  ;;  %v1075_v52 = vpop.xlane.xlu0 %1074  ;;  %v1128_v13 = vld [vmem:[#allocation5 + $0x78] sm:$0xff] }
 0x341   : > { %v1077_v31 = vpop.xlane.xlu1 %1076  ;;  %v1093_v58 = vadd.f32 %v1075_v52, %v1045_v36  ;;  %v1126_v52 = vld [vmem:[#allocation5 + $0x68] sm:$0xff] }
 0x342   : > { %v1094_v42 = vadd.f32 %v1077_v31, %v1046_v6  ;;  %v1222_v44 = vmul.f32 %v2819_v57, %v1126_v52  ;;  %v1447_v57 = vld [vmem:[#allocation4 + $0x8] sm:$0xff] (!%p1815_p0) }
 0x343   : > { %1110 = vst.msk [vmem:[#allocation4 + $0x68] sm:$0xff] %vm1096_vm11, %v1093_v58  ;;  %vm1463_vm0 = vcmp.gt.f32.partialorder (!%p1815_p0), %v1447_v57, 0.0  ;;  %v1455_v8 = vld [vmem:[#allocation4 + $0x48] sm:$0xff] (!%p1815_p0) }
 0x344   : > { %1111 = vst.msk [vmem:[#allocation4 + $0x70] sm:$0xff] %vm1096_vm11, %v1094_v42  ;;  %v1079_v19 = vpop.xlane.xlu0 %1078  ;;  %vm1471_vm5 = vcmp.gt.f32.partialorder (!%p1815_p0), %v1455_v8, 0.0 }
 0x345   : > { %v1095_v28 = vadd.f32 %v1079_v19, %v1047_v32  ;;  %v1207_v22 = vpop.permute.xlu1 %1206 }
 0x346   : > { %v1224_v55 = vmul.f32 %v1207_v22, %v1128_v13 }
 0x347   : > { %1112 = vst.msk [vmem:[#allocation4 + $0x78] sm:$0xff] %vm1096_vm11, %v1095_v28 }
 0x34b   : > { %v1460_v61 = vld [vmem:[#allocation4 + $0x70] sm:$0xff] (!%p1815_p0) }
 0x34c   : > { %v1202_v15 = vpop.permute.xlu0 %1201  ;;  %vm1476_vm7 = vcmp.gt.f32.partialorder (!%p1815_p0), %v1460_v61, 0.0 }
 0x34d   : > { %v1223_v17 = vmul.f32 %v1202_v15, %v1127_v51 }
 0x36b   : > { %v1853_v45 = vpop.f32.mrb[0].mxu0 }
 0x36c   : > { %v1396_v53 = vadd.f32 %v1853_v45, %v1211_v18  ;;  %v1331_v23 = vpop.f32.mrb[1].mxu0  ;;  %v1446_v18 = vld [vmem:[#allocation4] sm:$0xff] (!%p1815_p0)  ;;  %v1451_v45 = vld [vmem:[#allocation4 + $0x28] sm:$0xff] (!%p1815_p0) }
 0x36d   : > { %v1394_v48 = vadd.f32 %v1331_v23, %v1209_v38  ;;  %v1854_v49 = vpop.f32.mrb[2].mxu0  ;;  %v1449_v38 = vld [vmem:[#allocation4 + $0x18] sm:$0xff] (!%p1815_p0)  ;;  %vm1462_vm8 = vcmp.gt.f32.partialorder (!%p1815_p0), %v1446_v18, 0.0  ;;  %vm1467_vm10 = vcmp.gt.f32.partialorder (!%p1815_p0), %v1451_v45, 0.0 }
 0x36e   : > { %1412 = vst [vmem:[#allocation5 + $0x10] sm:$0xff] %v1396_v53  ;;  %v1397_v41 = vadd.f32 %v1854_v49, %v1212_v47  ;;  %v1334_v3 = vpop.f32.mrb[3].mxu0  ;;  %vm1465_vm13 = vcmp.gt.f32.partialorder (!%p1815_p0), %v1449_v38, 0.0  ;;  %v1450_v47 = vld [vmem:[#allocation4 + $0x20] sm:$0xff] (!%p1815_p0)  ;;  %v1478_v53 = vsel (!%p1815_p0), %vm1462_vm8, %v1446_v18, 1.0  ;;  %v1483_v49 = vsel (!%p1815_p0), %vm1467_vm10, %v1451_v45, 1.0 }
 0x36f   : > { %1410 = vst [vmem:[#allocation5] sm:$0xff] %v1394_v48  ;;  %v1395_v59 = vadd.f32 %v1334_v3, %v1210_v0  ;;  %v1861_v54 = vpop.f32.mrb[0].mxu1  ;;  %v1481_v23 = vsel (!%p1815_p0), %vm1465_vm13, %v1449_v38, 1.0  ;;  %v1479_v0 = vsel (!%p1815_p0), %vm1463_vm0, %v1447_v57, 1.0  ;;  %2021 = vrcp.f32 (!%p1815_p0), %v1478_v53  ;;  %v1452_v48 = vld [vmem:[#allocation4 + $0x30] sm:$0xff] (!%p1815_p0) }
 0x370   : > { %1413 = vst [vmem:[#allocation5 + $0x18] sm:$0xff] %v1397_v41  ;;  %v1404_v12 = vadd.f32 %v1861_v54, %v1219_v46  ;;  %v1363_v1 = vpop.f32.mrb[1].mxu1  ;;  %vm1466_vm3 = vcmp.gt.f32.partialorder (!%p1815_p0), %v1450_v47, 0.0  ;;  %2023 = vrcp.f32 (!%p1815_p0), %v1481_v23  ;;  %vm1468_vm11 = vcmp.gt.f32.partialorder (!%p1815_p0), %v1452_v48, 0.0  ;;  %v1454_v41 = vld [vmem:[#allocation4 + $0x40] sm:$0xff] (!%p1815_p0)  ;;  %v2020_v54 = vpop.eup (!%p1815_p0), %2019 }
 0x371   : > { %1411 = vst [vmem:[#allocation5 + $0x8] sm:$0xff] %v1395_v59  ;;  %v1402_v56 = vadd.f32 %v1363_v1, %v1217_v33  ;;  %v1862_v20 = vpop.f32.mrb[2].mxu1  ;;  %2025 = vrcp.f32 (!%p1815_p0), %v1479_v0  ;;  %v1482_v46 = vsel (!%p1815_p0), %vm1466_vm3, %v1450_v47, 1.0  ;;  %v1485_v3 = vsel (!%p1815_p0), %vm1469_vm14, %v1453_v14, 1.0  ;;  %v1457_v59 = vld [vmem:[#allocation4 + $0x58] sm:$0xff] (!%p1815_p0)  ;;  %1538 = vperm.xlu1 (!%p1815_p0), %2018, %v2020_v54  }
 0x372   : > { %1420 = vst [vmem:[#allocation5 + $0x50] sm:$0xff] %v1404_v12  ;;  %v1405_v16 = vadd.f32 %v1862_v20, %v1220_v39  ;;  %v1366_v43 = vpop.f32.mrb[3].mxu1  ;;  %2027 = vrcp.f32 (!%p1815_p0), %v1483_v49  ;;  %v1484_v33 = vsel (!%p1815_p0), %vm1468_vm11, %v1452_v48, 1.0  ;;  %vm1470_vm9 = vcmp.gt.f32.partialorder (!%p1815_p0), %v1454_v41, 0.0  ;;  %v1456_v39 = vld [vmem:[#allocation4 + $0x50] sm:$0xff] (!%p1815_p0) }
 0x373   : > { %1418 = vst [vmem:[#allocation5 + $0x40] sm:$0xff] %v1402_v56  ;;  %v1403_v27 = vadd.f32 %v1366_v43, %v1218_v30  ;;  %2029 = vrcp.f32 (!%p1815_p0), %v1482_v46  ;;  %v1487_v1 = vsel (!%p1815_p0), %vm1471_vm5, %v1455_v8, 1.0  ;;  %v1486_v56 = vsel (!%p1815_p0), %vm1470_vm9, %v1454_v41, 1.0  ;;  %v1458_v43 = vld [vmem:[#allocation4 + $0x60] sm:$0xff] (!%p1815_p0) }
 0x374   : > { %1421 = vst [vmem:[#allocation5 + $0x58] sm:$0xff] %v1405_v16  ;;  %2031 = vrcp.f32 (!%p1815_p0), %v1485_v3  ;;  %vm1473_vm12 = vcmp.gt.f32.partialorder (!%p1815_p0), %v1457_v59, 0.0  ;;  %vm1472_vm15 = vcmp.gt.f32.partialorder (!%p1815_p0), %v1456_v39, 0.0  ;;  %v1459_v16 = vld [vmem:[#allocation4 + $0x68] sm:$0xff] (!%p1815_p0)  ;;  %vm1474_vm2 = vcmp.gt.f32.partialorder (!%p1815_p0), %v1458_v43, 0.0 }
 0x375   : > { %1419 = vst [vmem:[#allocation5 + $0x48] sm:$0xff] %v1403_v27  ;;  %2033 = vrcp.f32 (!%p1815_p0), %v1484_v33  ;;  %v1489_v27 = vsel (!%p1815_p0), %vm1473_vm12, %v1457_v59, 1.0  ;;  %v1488_v60 = vsel (!%p1815_p0), %vm1472_vm15, %v1456_v39, 1.0  ;;  %vm1475_vm6 = vcmp.gt.f32.partialorder (!%p1815_p0), %v1459_v16, 0.0 }
 0x376   : > { %2035 = vrcp.f32 (!%p1815_p0), %v1487_v1  ;;  %v1490_v15 = vsel (!%p1815_p0), %vm1474_vm2, %v1458_v43, 1.0 }
 0x377   : > { %2037 = vrcp.f32 (!%p1815_p0), %v1486_v56 }
 0x378   : > { %2039 = vrcp.f32 (!%p1815_p0), %v1489_v27 }
 0x379   : > { %v2022_v12 = vpop.eup (!%p1815_p0), %2021  ;;  %2041 = vrcp.f32 (!%p1815_p0), %v1488_v60  ;;  %v1520_v56 = vld [vmem:[#allocation5 + $0x50] sm:$0xff] (!%p1815_p0) }
 0x37a   : > { %v2024_v30 = vpop.eup (!%p1815_p0), %2023  ;;  %1528 = vperm.xlu0 (!%p1815_p0), %2017, %v2022_v12   ;;  %v1518_v3 = vld [vmem:[#allocation5 + $0x40] sm:$0xff] (!%p1815_p0) }
 0x37b   : > { %v1857_v9 = vpop.f32.mrb[4].mxu0  ;;  %v2026_v20 = vpop.eup (!%p1815_p0), %2025  ;;  %1543 = vperm.xlu1 (!%p1815_p0), %2018, %v2024_v30   ;;  %v1521_v1 = vld [vmem:[#allocation5 + $0x58] sm:$0xff] (!%p1815_p0) }
 0x37c   : > { %v1400_v26 = vadd.f32 %v1857_v9, %v1215_v10  ;;  %v1347_v24 = vpop.f32.mrb[5].mxu0  ;;  %v2028_v34 = vpop.eup (!%p1815_p0), %2027  ;;  %v1461_v10 = vld [vmem:[#allocation4 + $0x78] sm:$0xff] (!%p1815_p0)  ;;  %v1519_v8 = vld [vmem:[#allocation5 + $0x48] sm:$0xff] (!%p1815_p0) }
 0x37d   : > { %v1398_v36 = vadd.f32 %v1347_v24, %v1213_v50  ;;  %v1858_v6 = vpop.f32.mrb[6].mxu0  ;;  %v2030_v4 = vpop.eup (!%p1815_p0), %2029  ;;  %v1491_v50 = vsel (!%p1815_p0), %vm1475_vm6, %v1459_v16, 1.0  ;;  %vm1477_vm1 = vcmp.gt.f32.partialorder (!%p1815_p0), %v1461_v10, 0.0 }
 0x37e   : > { %1416 = vst [vmem:[#allocation5 + $0x30] sm:$0xff] %v1400_v26  ;;  %v1401_v37 = vadd.f32 %v1858_v6, %v1216_v25  ;;  %v1350_v31 = vpop.f32.mrb[7].mxu0  ;;  %1533 = vperm.xlu0 (!%p1815_p0), %2017, %v2026_v20   ;;  %v2032_v51 = vpop.eup (!%p1815_p0), %2031  ;;  %2043 = vrcp.f32 (!%p1815_p0), %v1491_v50  ;;  %v1493_v25 = vsel (!%p1815_p0), %vm1477_vm1, %v1461_v10, 1.0  ;;  %v1492_v26 = vsel (!%p1815_p0), %vm1476_vm7, %v1460_v61, 1.0 }
 0x37f   : > { %1414 = vst [vmem:[#allocation5 + $0x20] sm:$0xff] %v1398_v36  ;;  %v1399_v58 = vadd.f32 %v1350_v31, %v1214_v29  ;;  %v1865_v42 = vpop.f32.mrb[4].mxu1  ;;  %1445 = sbr.rel (%p1815_p0) target bundleno = 1051 (0x41b), region = 90  ;;  %1553 = vperm.xlu1 (!%p1815_p0), %2018, %v2028_v34   ;;  %v2034_v9 = vpop.eup (!%p1815_p0), %2033  ;;  %2045 = vrcp.f32 (!%p1815_p0), %v1490_v15 }
 0x380   : > { %1417 = vst [vmem:[#allocation5 + $0x38] sm:$0xff] %v1401_v37  ;;  %v1408_v32 = vadd.f32 %v1865_v42, %v1223_v17  ;;  %v1379_v19 = vpop.f32.mrb[5].mxu1  ;;  %v2036_v35 = vpop.eup (!%p1815_p0), %2035  ;;  %2047 = vrcp.f32 (!%p1815_p0), %v1493_v25  ;;  %v1512_v17 = vld [vmem:[#allocation5 + $0x10] sm:$0xff] (!%p1815_p0)  ;;  %v1510_v37 = vld [vmem:[#allocation5] sm:$0xff] (!%p1815_p0) }
 0x381   : > { %1415 = vst [vmem:[#allocation5 + $0x28] sm:$0xff] %v1399_v58  ;;  %v1406_v28 = vadd.f32 %v1379_v19, %v1221_v2  ;;  %v1866_v7 = vpop.f32.mrb[6].mxu1  ;;  %v2038_v24 = vpop.eup (!%p1815_p0), %2037  ;;  %2049 = vrcp.f32 (!%p1815_p0), %v1492_v26  ;;  %v1511_v19 = vld [vmem:[#allocation5 + $0x8] sm:$0xff] (!%p1815_p0) }
 0x382   : > { %1424 = vst [vmem:[#allocation5 + $0x70] sm:$0xff] %v1408_v32  ;;  %v1409_v62 = vadd.f32 %v1866_v7, %v1224_v55  ;;  %v1382_v40 = vpop.f32.mrb[7].mxu1  ;;  %1548 = vperm.xlu0 (!%p1815_p0), %2017, %v2030_v4   ;;  %v2040_v29 = vpop.eup (!%p1815_p0), %2039  ;;  %v1513_v55 = vld [vmem:[#allocation5 + $0x18] sm:$0xff] (!%p1815_p0) }
 0x383   : > { %1422 = vst [vmem:[#allocation5 + $0x60] sm:$0xff] %v1406_v28  ;;  %v1407_v63 = vadd.f32 %v1382_v40, %v1222_v44  ;;  %1563 = vperm.xlu1 (!%p1815_p0), %2018, %v2032_v51   ;;  %v2042_v13 = vpop.eup (!%p1815_p0), %2041 }
 0x384   : > { %1425 = vst [vmem:[#allocation5 + $0x78] sm:$0xff] %v1409_v62 }
 0x385   : > { %1423 = vst [vmem:[#allocation5 + $0x68] sm:$0xff] %v1407_v63  ;;  %v1516_v23 = vld [vmem:[#allocation5 + $0x30] sm:$0xff] (!%p1815_p0) }
 0x386   : > { %1558 = vperm.xlu0 %2017, %v2034_v9   ;;  %v1514_v18 = vld [vmem:[#allocation5 + $0x20] sm:$0xff] }
 0x387   : > { %1573 = vperm.xlu1 %2018, %v2036_v35   ;;  %v1517_v21 = vld [vmem:[#allocation5 + $0x38] sm:$0xff] }
 0x388   : > { %v2044_v22 = vpop.eup %2043  ;;  %v1515_v63 = vld [vmem:[#allocation5 + $0x28] sm:$0xff] }
 0x389   : > { %v2046_v36 = vpop.eup %2045  ;;  %v1524_v26 = vld [vmem:[#allocation5 + $0x70] sm:$0xff] }
 0x38a   : > { %1568 = vperm.xlu0 %2017, %v2038_v24   ;;  %v2048_v6 = vpop.eup %2047  ;;  %v1522_v10 = vld [vmem:[#allocation5 + $0x60] sm:$0xff] }
 0x38b   : > { %1583 = vperm.xlu1 %2018, %v2040_v29   ;;  %v2050_v52 = vpop.eup %2049  ;;  %v1525_v25 = vld [vmem:[#allocation5 + $0x78] sm:$0xff] }
 0x38c   : > { %v1523_v60 = vld [vmem:[#allocation5 + $0x68] sm:$0xff] }
 0x38e   : > { %1578 = vperm.xlu0 %2017, %v2042_v13  }
 0x38f   : > { %1593 = vperm.xlu1 %2018, %v2044_v22  }
 0x392   : > { %1588 = vperm.xlu0 %2017, %v2046_v36  }
 0x393   : > { %1603 = vperm.xlu1 %2018, %v2048_v6  }
 0x396   : > { %1598 = vperm.xlu0 %2017, %v2050_v52  }
 0x3f0   : > { %v1539_v31 = vpop.permute.xlu1 %1538 }
 0x3f1   : > { %v1608_v2 = vmul.f32 %v1539_v31, %v1512_v17 }
 0x3f3   : > { %v1624_v32 = vmax.f32 %v1608_v2, 0.0 }
 0x3f5   : > { %1640 = vst [vmem:[%s2230_s18 + $0x10] sm:$0xff] %v1624_v32 }
 0x3f9   : > { %v1529_v58 = vpop.permute.xlu0 %1528 }
 0x3fa   : > { %v1606_v42 = vmul.f32 %v1529_v58, %v1510_v37  ;;  %v1544_v28 = vpop.permute.xlu1 %1543 }
 0x3fb   : > { %v1609_v7 = vmul.f32 %v1544_v28, %v1513_v55 }
 0x3fc   : > { %v1622_v44 = vmax.f32 %v1606_v42, 0.0 }
 0x3fd   : > { %v1534_v62 = vpop.permute.xlu0 %1533  ;;  %v1625_v11 = vmax.f32 %v1609_v7, 0.0 }
 0x3fe   : > { %1638 = vst [vmem:[%s2230_s18] sm:$0xff] %v1622_v44  ;;  %v1607_v40 = vmul.f32 %v1534_v62, %v1511_v19  ;;  %v1554_v5 = vpop.permute.xlu1 %1553 }
 0x3ff   : > { %1641 = vst [vmem:[%s2230_s18 + $0x18] sm:$0xff] %v1625_v11  ;;  %v1611_v57 = vmul.f32 %v1554_v5, %v1515_v63 }
 0x400   : > { %v1623_v38 = vmax.f32 %v1607_v40, 0.0 }
 0x401   : > { %v1549_v45 = vpop.permute.xlu0 %1548  ;;  %v1627_v53 = vmax.f32 %v1611_v57, 0.0 }
 0x402   : > { %1639 = vst [vmem:[%s2230_s18 + $0x8] sm:$0xff] %v1623_v38  ;;  %v1610_v47 = vmul.f32 %v1549_v45, %v1514_v18  ;;  %v1564_v14 = vpop.permute.xlu1 %1563 }
 0x403   : > { %1643 = vst [vmem:[%s2230_s18 + $0x28] sm:$0xff] %v1627_v53  ;;  %v1613_v48 = vmul.f32 %v1564_v14, %v1517_v21 }
 0x404   : > { %v1626_v0 = vmax.f32 %v1610_v47, 0.0 }
 0x405   : > { %v1559_v49 = vpop.permute.xlu0 %1558  ;;  %v1629_v41 = vmax.f32 %v1613_v48, 0.0 }
 0x406   : > { %1642 = vst [vmem:[%s2230_s18 + $0x20] sm:$0xff] %v1626_v0  ;;  %v1612_v46 = vmul.f32 %v1559_v49, %v1516_v23  ;;  %v1574_v59 = vpop.permute.xlu1 %1573 }
 0x407   : > { %1645 = vst [vmem:[%s2230_s18 + $0x38] sm:$0xff] %v1629_v41  ;;  %v1615_v54 = vmul.f32 %v1574_v59, %v1519_v8 }
 0x408   : > { %v1628_v33 = vmax.f32 %v1612_v46, 0.0 }
 0x409   : > { %v1569_v39 = vpop.permute.xlu0 %1568  ;;  %v1631_v30 = vmax.f32 %v1615_v54, 0.0 }
 0x40a   : > { %1644 = vst [vmem:[%s2230_s18 + $0x30] sm:$0xff] %v1628_v33  ;;  %v1614_v12 = vmul.f32 %v1569_v39, %v1518_v3  ;;  %v1584_v16 = vpop.permute.xlu1 %1583 }
 0x40b   : > { %1647 = vst [vmem:[%s2230_s18 + $0x48] sm:$0xff] %v1631_v30  ;;  %v1617_v43 = vmul.f32 %v1584_v16, %v1521_v1 }
 0x40c   : > { %v1630_v20 = vmax.f32 %v1614_v12, 0.0 }
 0x40d   : > { %v1579_v27 = vpop.permute.xlu0 %1578  ;;  %v1633_v4 = vmax.f32 %v1617_v43, 0.0 }
 0x40e   : > { %1646 = vst [vmem:[%s2230_s18 + $0x40] sm:$0xff] %v1630_v20  ;;  %v1616_v34 = vmul.f32 %v1579_v27, %v1520_v56  ;;  %v1594_v50 = vpop.permute.xlu1 %1593 }
 0x40f   : > { %1649 = vst [vmem:[%s2230_s18 + $0x58] sm:$0xff] %v1633_v4  ;;  %v1619_v51 = vmul.f32 %v1594_v50, %v1523_v60 }
 0x410   : > { %v1632_v61 = vmax.f32 %v1616_v34, 0.0 }
 0x411   : > { %v1589_v15 = vpop.permute.xlu0 %1588  ;;  %v1635_v35 = vmax.f32 %v1619_v51, 0.0 }
 0x412   : > { %1648 = vst [vmem:[%s2230_s18 + $0x50] sm:$0xff] %v1632_v61  ;;  %v1618_v9 = vmul.f32 %v1589_v15, %v1522_v10  ;;  %v1604_v29 = vpop.permute.xlu1 %1603 }
 0x413   : > { %1651 = vst [vmem:[%s2230_s18 + $0x68] sm:$0xff] %v1635_v35  ;;  %v1621_v13 = vmul.f32 %v1604_v29, %v1525_v25 }
 0x414   : > { %v1634_v24 = vmax.f32 %v1618_v9, 0.0 }
 0x415   : > { %v1599_v22 = vpop.permute.xlu0 %1598  ;;  %v1637_v6 = vmax.f32 %v1621_v13, 0.0 }
 0x416   : > { %1650 = vst [vmem:[%s2230_s18 + $0x60] sm:$0xff] %v1634_v24  ;;  %v1620_v36 = vmul.f32 %v1599_v22, %v1524_v26 }
 0x417   : > { %1653 = vst [vmem:[%s2230_s18 + $0x78] sm:$0xff] %v1637_v6 }
 0x418   : > { %v1636_v52 = vmax.f32 %v1620_v36, 0.0 }
 0x41a   : > { %1652 = vst [vmem:[%s2230_s18 + $0x70] sm:$0xff] %v1636_v52 }
 0x41b PF: > { %s18_s29 = sadd.s32 1, %s2105_s29   ;;  %s2957_s23 = smov %s2085_s24 }
 0x41c   : > { %p15_p1 = scmp.ge.s32.totalorder %s18_s29, 6   ;;  %s2958_s24 = smov %s2200_s11 }
 0x41d   : > { %s2959_s25 = smov %s2097_s27  ;;  %s2960_s26 = smov %s2101_s28 }
 0x41e   : > { %s2961_s27 = smov %s2964_s2  ;;  %s2962_s28 = smov %s2968_s30 }
 0x41f   :  { %17 = sbr.rel (!%p15_p1) target bundleno = 7 (0x7), region = 134 }

// kernel: taobao_han_forward.9
= control target key start
LH: loop header
LB: loop body
LE: loop exit
PB: predicated region body
PF: predicated region fallthrough
CT: control target
= control target key end

     0   :  { %v1175_v0 = vmov 0   ;;  %s1721_s2 = inlined_call_operand.vmem [shape: s32[128,1], index: 2, kind: input, shape index: {}]   ;;  %s1722_s3 = inlined_call_operand.vmem [shape: s32[128,1], index: 3, kind: input, shape index: {}]   ;;  %s1723_s0 = inlined_call_operand.vmem [shape: f32[256,128], index: 0, kind: input, shape index: {}]   ;;  %s1724_s1 = inlined_call_operand.vmem [shape: f32[256,128], index: 1, kind: input, shape index: {}]   ;;  %s1725_s5 = inlined_call_operand.<no memory space> [shape: f32[1,1], index: 5, kind: input, shape index: {}]   ;;  %s1726_s4 = inlined_call_operand.vmem [shape: f32[1,128], index: 4, kind: input, shape index: {}]   ;;  %s1727_s6 = inlined_call_operand.vmem [shape: f32[128,1], index: 6, kind: output, shape index: {}]  }
   0x1   :  { %1174 = vset.pattern.permute.xlu1 %v1175_v0  ;;  %1173 = vset.pattern.permute.xlu0 %v1175_v0  ;;  %v29_v1 = vld [vmem:[%s1721_s2 + $0x8] sm:$0xff]  ;;  %v28_v2 = vld [vmem:[%s1721_s2] sm:$0xff]  ;;  %v190_v5 = vld [vmem:[%s1722_s3 + $0x10] sm:$0xff] }
   0x2   :  { %48 = vperm.xlu1 %1174, %v29_v1   ;;  %45 = vperm.xlu0 %1173, %v28_v2   ;;  %v189_v3 = vld [vmem:[%s1722_s3 + $0x8] sm:$0xff]  ;;  %v188_v4 = vld [vmem:[%s1722_s3] sm:$0xff]  ;;  %v30_v6 = vld [vmem:[%s1721_s2 + $0x10] sm:$0xff] }
   0x3   :  { %v191_v7 = vld [vmem:[%s1722_s3 + $0x18] sm:$0xff]  ;;  %v364_v9 = vld [vmem:[%s1723_s0 + $0x80] sm:$0xff]  ;;  %v365_v10 = vld [vmem:[%s1723_s0 + $0x88] sm:$0xff] }
   0x4   :  { %v31_v8 = vld [vmem:[%s1721_s2 + $0x18] sm:$0xff]  ;;  %v348_v11 = vld [vmem:[%s1723_s0] sm:$0xff]  ;;  %v349_v12 = vld [vmem:[%s1723_s0 + $0x8] sm:$0xff]  ;;  %v1107_v15 = vpack.c.bf16 %v365_v10, %v364_v9 }
   0x5   :  { %v192_v13 = vld [vmem:[%s1722_s3 + $0x20] sm:$0xff]  ;;  %v1109_v16 = vpack.c.bf16 %v349_v12, %v348_v11  ;;  %v366_v17 = vld [vmem:[%s1723_s0 + $0x90] sm:$0xff]  ;;  %v367_v18 = vld [vmem:[%s1723_s0 + $0x98] sm:$0xff] }
   0x6   :  { %208 = vperm.xlu1 %1174, %v189_v3   ;;  %205 = vperm.xlu0 %1173, %v188_v4   ;;  %v32_v14 = vld [vmem:[%s1721_s2 + $0x20] sm:$0xff]  ;;  %v1111_v20 = vpack.c.bf16 %v367_v18, %v366_v17  ;;  %v542_v21 = vld [vmem:[%s1724_s1 + $0x88] sm:$0xff]  ;;  %v350_v22 = vld [vmem:[%s1723_s0 + $0x10] sm:$0xff] }
   0x7   :  { %v541_v19 = vld [vmem:[%s1724_s1 + $0x80] sm:$0xff]  ;;  %v351_v23 = vld [vmem:[%s1723_s0 + $0x18] sm:$0xff]  ;;  %1108 = vmatprep.subr.bf16.mxu0 %v1107_v15  ;;  %v526_v26 = vld [vmem:[%s1724_s1 + $0x8] sm:$0xff] }
   0x8   :  { %v1139_v24 = vpack.c.bf16 %v542_v21, %v541_v19  ;;  %v525_v25 = vld [vmem:[%s1724_s1] sm:$0xff]  ;;  %1110 = vmatpush3.bf16.msra.mxu0 %v1109_v16  ;;  %v1113_v28 = vpack.c.bf16 %v351_v23, %v350_v22  ;;  %v369_v30 = vld [vmem:[%s1723_s0 + $0xa8] sm:$0xff]  ;;  %v543_v31 = vld [vmem:[%s1724_s1 + $0x90] sm:$0xff] }
   0x9   :  { %v368_v27 = vld [vmem:[%s1723_s0 + $0xa0] sm:$0xff]  ;;  %v1141_v29 = vpack.c.bf16 %v526_v26, %v525_v25  ;;  %v544_v32 = vld [vmem:[%s1724_s1 + $0x98] sm:$0xff]  ;;  %v193_v33 = vld [vmem:[%s1722_s3 + $0x28] sm:$0xff]  ;;  %1112 = vmatprep.subr.bf16.mxu0 %v1111_v20 }
   0xa   :  { %211 = vperm.xlu1 %1174, %v190_v5   ;;  %51 = vperm.xlu0 %1173, %v30_v6   ;;  %v1115_v34 = vpack.c.bf16 %v369_v30, %v368_v27  ;;  %v1143_v35 = vpack.c.bf16 %v544_v32, %v543_v31  ;;  %v352_v36 = vld [vmem:[%s1723_s0 + $0x20] sm:$0xff]  ;;  %v353_v37 = vld [vmem:[%s1723_s0 + $0x28] sm:$0xff]  ;;  %v527_v38 = vld [vmem:[%s1724_s1 + $0x10] sm:$0xff] }
   0xb   :  { %1140 = vmatprep.subr.bf16.mxu1 %v1139_v24  ;;  %v528_v39 = vld [vmem:[%s1724_s1 + $0x18] sm:$0xff]  ;;  %v370_v40 = vld [vmem:[%s1723_s0 + $0xb0] sm:$0xff]  ;;  %v33_v42 = vld [vmem:[%s1721_s2 + $0x28] sm:$0xff]  ;;  %v1117_v46 = vpack.c.bf16 %v353_v37, %v352_v36 }
   0xc   :  { %v371_v41 = vld [vmem:[%s1723_s0 + $0xb8] sm:$0xff]  ;;  %1142 = vmatpush3.bf16.msra.mxu1 %v1141_v29  ;;  %v1145_v43 = vpack.c.bf16 %v528_v39, %v527_v38  ;;  %v545_v44 = vld [vmem:[%s1724_s1 + $0xa0] sm:$0xff]  ;;  %v546_v45 = vld [vmem:[%s1724_s1 + $0xa8] sm:$0xff]  ;;  %1114 = vmatpush3.bf16.msra.mxu0 %v1113_v28 }
   0xd   :  { %1144 = vmatprep.subr.bf16.mxu1 %v1143_v35  ;;  %v1147_v47 = vpack.c.bf16 %v546_v45, %v545_v44  ;;  %v529_v48 = vld [vmem:[%s1724_s1 + $0x20] sm:$0xff]  ;;  %v530_v49 = vld [vmem:[%s1724_s1 + $0x28] sm:$0xff]  ;;  %1116 = vmatprep.subr.bf16.mxu0 %v1115_v34  ;;  %v1119_v50 = vpack.c.bf16 %v371_v41, %v370_v40  ;;  %v354_v51 = vld [vmem:[%s1723_s0 + $0x30] sm:$0xff] }
   0xe   :  { %214 = vperm.xlu1 %1174, %v191_v7   ;;  %54 = vperm.xlu0 %1173, %v31_v8   ;;  %v355_v52 = vld [vmem:[%s1723_s0 + $0x38] sm:$0xff]  ;;  %v547_v53 = vld [vmem:[%s1724_s1 + $0xb0] sm:$0xff]  ;;  %v372_v54 = vld [vmem:[%s1723_s0 + $0xc0] sm:$0xff]  ;;  %v1149_v59 = vpack.c.bf16 %v530_v49, %v529_v48 }
   0xf   :  { %v373_v55 = vld [vmem:[%s1723_s0 + $0xc8] sm:$0xff]  ;;  %v548_v56 = vld [vmem:[%s1724_s1 + $0xb8] sm:$0xff]  ;;  %v194_v57 = vld [vmem:[%s1722_s3 + $0x30] sm:$0xff]  ;;  %v1121_v60 = vpack.c.bf16 %v355_v52, %v354_v51 }
  0x10   :  { %v34_v58 = vld [vmem:[%s1721_s2 + $0x30] sm:$0xff]  ;;  %1146 = vmatpush3.bf16.msra.mxu1 %v1145_v43  ;;  %1118 = vmatpush3.bf16.msra.mxu0 %v1117_v46  ;;  %v1151_v61 = vpack.c.bf16 %v548_v56, %v547_v53  ;;  %v356_v62 = vld [vmem:[%s1723_s0 + $0x40] sm:$0xff]  ;;  %v532_v0 = vld [vmem:[%s1724_s1 + $0x38] sm:$0xff]  ;;  %v1123_v1 = vpack.c.bf16 %v373_v55, %v372_v54 }
  0x11   :  { %1148 = vmatprep.subr.bf16.mxu1 %v1147_v47  ;;  %v531_v63 = vld [vmem:[%s1724_s1 + $0x30] sm:$0xff]  ;;  %1120 = vmatprep.subr.bf16.mxu0 %v1119_v50  ;;  %v357_v2 = vld [vmem:[%s1723_s0 + $0x48] sm:$0xff]  ;;  %v549_v3 = vld [vmem:[%s1724_s1 + $0xc0] sm:$0xff] }
  0x12   :  { %217 = vperm.xlu1 %1174, %v192_v13   ;;  %57 = vperm.xlu0 %1173, %v32_v14   ;;  %v550_v4 = vld [vmem:[%s1724_s1 + $0xc8] sm:$0xff]  ;;  %v374_v5 = vld [vmem:[%s1723_s0 + $0xd0] sm:$0xff]  ;;  %v375_v6 = vld [vmem:[%s1723_s0 + $0xd8] sm:$0xff]  ;;  %v1153_v9 = vpack.c.bf16 %v532_v0, %v531_v63  ;;  %v1125_v10 = vpack.c.bf16 %v357_v2, %v356_v62 }
  0x13   :  { %v195_v7 = vld [vmem:[%s1722_s3 + $0x38] sm:$0xff]  ;;  %v1155_v11 = vpack.c.bf16 %v550_v4, %v549_v3  ;;  %v358_v12 = vld [vmem:[%s1723_s0 + $0x50] sm:$0xff]  ;;  %v533_v13 = vld [vmem:[%s1724_s1 + $0x40] sm:$0xff]  ;;  %v1127_v15 = vpack.c.bf16 %v375_v6, %v374_v5  ;;  %v1176_v6 = vmov 1.0  }
  0x14   :  { %v35_v8 = vld [vmem:[%s1721_s2 + $0x38] sm:$0xff]  ;;  %1150 = vmatpush3.bf16.msra.mxu1 %v1149_v59  ;;  %1122 = vmatpush3.bf16.msra.mxu0 %v1121_v60  ;;  %v534_v14 = vld [vmem:[%s1724_s1 + $0x48] sm:$0xff]  ;;  %v551_v17 = vld [vmem:[%s1724_s1 + $0xd0] sm:$0xff] }
  0x15   :  { %1152 = vmatprep.subr.bf16.mxu1 %v1151_v61  ;;  %1124 = vmatprep.subr.bf16.mxu0 %v1123_v1  ;;  %v359_v16 = vld [vmem:[%s1723_s0 + $0x58] sm:$0xff]  ;;  %v376_v19 = vld [vmem:[%s1723_s0 + $0xe0] sm:$0xff]  ;;  %v377_v20 = vld [vmem:[%s1723_s0 + $0xe8] sm:$0xff]  ;;  %v1157_v23 = vpack.c.bf16 %v534_v14, %v533_v13  ;;  %v25_v1 = vlaneseq }
  0x16   :  { %220 = vperm.xlu1 %1174, %v193_v33   ;;  %60 = vperm.xlu0 %1173, %v33_v42   ;;  %v552_v18 = vld [vmem:[%s1724_s1 + $0xd8] sm:$0xff]  ;;  %v196_v21 = vld [vmem:[%s1722_s3 + $0x40] sm:$0xff]  ;;  %v1129_v24 = vpack.c.bf16 %v359_v16, %v358_v12  ;;  %v535_v27 = vld [vmem:[%s1724_s1 + $0x50] sm:$0xff]  ;;  %v1131_v29 = vpack.c.bf16 %v377_v20, %v376_v19 }
  0x17   :  { %v36_v22 = vld [vmem:[%s1721_s2 + $0x40] sm:$0xff]  ;;  %v1159_v25 = vpack.c.bf16 %v552_v18, %v551_v17  ;;  %v536_v28 = vld [vmem:[%s1724_s1 + $0x58] sm:$0xff]  ;;  %v361_v30 = vld [vmem:[%s1723_s0 + $0x68] sm:$0xff]  ;;  %v1500_v2 = vand.u32 127, %v25_v1 }
  0x18   :  { %1154 = vmatpush3.bf16.msra.mxu1 %v1153_v9  ;;  %1126 = vmatpush3.bf16.msra.mxu0 %v1125_v10  ;;  %v360_v26 = vld [vmem:[%s1723_s0 + $0x60] sm:$0xff]  ;;  %v554_v32 = vld [vmem:[%s1724_s1 + $0xe8] sm:$0xff]  ;;  %v378_v33 = vld [vmem:[%s1723_s0 + $0xf0] sm:$0xff]  ;;  %v1161_v37 = vpack.c.bf16 %v536_v28, %v535_v27 }
  0x19   :  { %1156 = vmatprep.subr.bf16.mxu1 %v1155_v11  ;;  %1128 = vmatprep.subr.bf16.mxu0 %v1127_v15  ;;  %v553_v31 = vld [vmem:[%s1724_s1 + $0xe0] sm:$0xff]  ;;  %v379_v34 = vld [vmem:[%s1723_s0 + $0xf8] sm:$0xff]  ;;  %v197_v35 = vld [vmem:[%s1722_s3 + $0x48] sm:$0xff]  ;;  %v1133_v38 = vpack.c.bf16 %v361_v30, %v360_v26  ;;  %v1503_v3 = vadd.s32 128, %v1500_v2 }
  0x1a   :  { %223 = vperm.xlu1 %1174, %v194_v57   ;;  %63 = vperm.xlu0 %1173, %v34_v58   ;;  %v37_v36 = vld [vmem:[%s1721_s2 + $0x48] sm:$0xff]  ;;  %v1163_v39 = vpack.c.bf16 %v554_v32, %v553_v31  ;;  %v362_v40 = vld [vmem:[%s1723_s0 + $0x70] sm:$0xff]  ;;  %v537_v41 = vld [vmem:[%s1724_s1 + $0x60] sm:$0xff]  ;;  %v1135_v43 = vpack.c.bf16 %v379_v34, %v378_v33 }
  0x1b   :  { %v538_v42 = vld [vmem:[%s1724_s1 + $0x68] sm:$0xff]  ;;  %v363_v44 = vld [vmem:[%s1723_s0 + $0x78] sm:$0xff]  ;;  %v555_v45 = vld [vmem:[%s1724_s1 + $0xf0] sm:$0xff] }
  0x1c   :  { %1158 = vmatpush3.bf16.msra.mxu1 %v1157_v23  ;;  %1130 = vmatpush3.bf16.msra.mxu0 %v1129_v24  ;;  %v556_v46 = vld [vmem:[%s1724_s1 + $0xf8] sm:$0xff]  ;;  %v198_v47 = vld [vmem:[%s1722_s3 + $0x50] sm:$0xff]  ;;  %v1165_v49 = vpack.c.bf16 %v538_v42, %v537_v41  ;;  %v1137_v50 = vpack.c.bf16 %v363_v44, %v362_v40  ;;  %v200_v57 = vld [vmem:[%s1722_s3 + $0x60] sm:$0xff] }
  0x1d   :  { %1160 = vmatprep.subr.bf16.mxu1 %v1159_v25  ;;  %1132 = vmatprep.subr.bf16.mxu0 %v1131_v29  ;;  %v38_v48 = vld [vmem:[%s1721_s2 + $0x50] sm:$0xff]  ;;  %v1167_v51 = vpack.c.bf16 %v556_v46, %v555_v45  ;;  %v540_v53 = vld [vmem:[%s1724_s1 + $0x78] sm:$0xff]  ;;  %v40_v58 = vld [vmem:[%s1721_s2 + $0x60] sm:$0xff] }
  0x1e   :  { %226 = vperm.xlu1 %1174, %v195_v7   ;;  %66 = vperm.xlu0 %1173, %v35_v8   ;;  %v539_v52 = vld [vmem:[%s1724_s1 + $0x70] sm:$0xff]  ;;  %v199_v54 = vld [vmem:[%s1722_s3 + $0x58] sm:$0xff]  ;;  %v201_v59 = vld [vmem:[%s1722_s3 + $0x68] sm:$0xff] }
  0x1f   :  { %v39_v55 = vld [vmem:[%s1721_s2 + $0x58] sm:$0xff]  ;;  %v1169_v56 = vpack.c.bf16 %v540_v53, %v539_v52  ;;  %v41_v60 = vld [vmem:[%s1721_s2 + $0x68] sm:$0xff]  ;;  %v202_v61 = vld [vmem:[%s1722_s3 + $0x70] sm:$0xff] }
  0x20   :  { %1162 = vmatpush3.bf16.msra.mxu1 %v1161_v37  ;;  %1134 = vmatpush3.bf16.msra.mxu0 %v1133_v38  ;;  %v42_v62 = vld [vmem:[%s1721_s2 + $0x70] sm:$0xff]  ;;  %v203_v63 = vld [vmem:[%s1722_s3 + $0x78] sm:$0xff]  ;;  %v11_v37 = vstv %s1725_s5 }
  0x21   :  { %1164 = vmatprep.subr.bf16.mxu1 %v1163_v39  ;;  %1136 = vmatprep.subr.bf16.mxu0 %v1135_v43  ;;  %v43_v0 = vld [vmem:[%s1721_s2 + $0x78] sm:$0xff]  ;;  %12 = vst [vmem:[#allocation2] sm:$0x1] %v11_v37 }
  0x22   :  { %229 = vperm.xlu1 %1174, %v196_v21   ;;  %69 = vperm.xlu0 %1173, %v36_v22  }
  0x24   :  { %1166 = vmatpush3.bf16.msra.mxu1 %v1165_v49  ;;  %1138 = vmatpush3.bf16.msra.mxu0 %v1137_v50 }
  0x25   :  { %1168 = vmatprep.subr.bf16.mxu1 %v1167_v51 }
  0x26   :  { %232 = vperm.xlu1 %1174, %v197_v35   ;;  %72 = vperm.xlu0 %1173, %v37_v36  }
  0x28   :  { %1170 = vmatpush3.bf16.msra.mxu1 %v1169_v56 }
  0x2a   :  { %235 = vperm.xlu1 %1174, %v198_v47   ;;  %75 = vperm.xlu0 %1173, %v38_v48   ;;  %v1639_v47 = vld [vmem:[%s1726_s4] ss:$0 sm:$0xff] }
  0x2e   :  { %238 = vperm.xlu1 %1174, %v199_v54   ;;  %78 = vperm.xlu0 %1173, %v39_v55  }
  0x32   :  { %241 = vperm.xlu1 %1174, %v200_v57   ;;  %81 = vperm.xlu0 %1173, %v40_v58  }
  0x36   :  { %244 = vperm.xlu1 %1174, %v201_v59   ;;  %84 = vperm.xlu0 %1173, %v41_v60  }
  0x3a   :  { %247 = vperm.xlu1 %1174, %v202_v61   ;;  %87 = vperm.xlu0 %1173, %v42_v62  }
  0x3e   :  { %250 = vperm.xlu1 %1174, %v203_v63   ;;  %90 = vperm.xlu0 %1173, %v43_v0  }
  0x81   :  { %v49_v4 = vpop.permute.xlu1 %48  ;;  %v46_v5 = vpop.permute.xlu0 %45 }
  0x82   :  { %vm95_vm0 = vcmp.eq.s32.totalorder %v1503_v3, %v49_v4  ;;  %vm92_vm1 = vcmp.eq.s32.totalorder %v1500_v2, %v46_v5  ;;  %vm93_vm2 = vcmp.eq.s32.totalorder %v1503_v3, %v46_v5  ;;  %vm94_vm3 = vcmp.eq.s32.totalorder %v1500_v2, %v49_v4 }
  0x83   :  { %881 = vmatprep.mubr.msk.f32.mxu0 %vm93_vm2, %v1176_v6 }
  0x84   :  { %882 = vmatmul.mubr.msk.f32.vlgmr.msra.gmra.mrb[0].mxu0 %vm92_vm1, %v1176_v6 }
  0x85   :  { %v209_v7 = vpop.permute.xlu1 %208  ;;  %v206_v8 = vpop.permute.xlu0 %205  ;;  %883 = vmatprep.mubr.msk.f32.mxu0 %vm95_vm0, %v1176_v6 }
  0x86   :  { %vm252_vm4 = vcmp.eq.s32.totalorder %v1500_v2, %v206_v8  ;;  %vm253_vm5 = vcmp.eq.s32.totalorder %v1503_v3, %v206_v8  ;;  %vm255_vm6 = vcmp.eq.s32.totalorder %v1503_v3, %v209_v7  ;;  %vm254_vm9 = vcmp.eq.s32.totalorder %v1500_v2, %v209_v7 }
  0x87   :  { %913 = vmatprep.mubr.msk.f32.mxu1 %vm253_vm5, %v1176_v6 }
  0x88   :  { %884 = vmatmul.mubr.msk.f32.gmra.mrb[2].mxu0 %vm94_vm3, %v1176_v6  ;;  %914 = vmatmul.mubr.msk.f32.vlgmr.msra.gmra.mrb[0].mxu1 %vm252_vm4, %v1176_v6 }
  0x89   :  { %v212_v9 = vpop.permute.xlu1 %211  ;;  %v52_v10 = vpop.permute.xlu0 %51  ;;  %915 = vmatprep.mubr.msk.f32.mxu1 %vm255_vm6, %v1176_v6 }
  0x8a   :  { %vm96_vm7 = vcmp.eq.s32.totalorder %v1500_v2, %v52_v10  ;;  %vm97_vm8 = vcmp.eq.s32.totalorder %v1503_v3, %v52_v10  ;;  %vm257_vm10 = vcmp.eq.s32.totalorder %v1503_v3, %v212_v9  ;;  %vm256_vm13 = vcmp.eq.s32.totalorder %v1500_v2, %v212_v9 }
  0x8b   :  { %885 = vmatprep.mubr.msk.f32.mxu0 %vm97_vm8, %v1176_v6 }
  0x8c   :  { %886 = vmatmul.mubr.msk.f32.gmra.mrb[4].mxu0 %vm96_vm7, %v1176_v6  ;;  %916 = vmatmul.mubr.msk.f32.gmra.mrb[2].mxu1 %vm254_vm9, %v1176_v6 }
  0x8d   :  { %v215_v11 = vpop.permute.xlu1 %214  ;;  %v55_v12 = vpop.permute.xlu0 %54  ;;  %917 = vmatprep.mubr.msk.f32.mxu1 %vm257_vm10, %v1176_v6 }
  0x8e   :  { %vm98_vm11 = vcmp.eq.s32.totalorder %v1500_v2, %v55_v12  ;;  %vm99_vm12 = vcmp.eq.s32.totalorder %v1503_v3, %v55_v12  ;;  %vm259_vm14 = vcmp.eq.s32.totalorder %v1503_v3, %v215_v11  ;;  %vm258_vm1 = vcmp.eq.s32.totalorder %v1500_v2, %v215_v11 }
  0x8f   :  { %887 = vmatprep.mubr.msk.f32.mxu0 %vm99_vm12, %v1176_v6 }
  0x90   :  { %888 = vmatmul.mubr.msk.f32.gmra.mrb[6].mxu0 %vm98_vm11, %v1176_v6  ;;  %918 = vmatmul.mubr.msk.f32.gmra.mrb[4].mxu1 %vm256_vm13, %v1176_v6 }
  0x91   :  { %v218_v13 = vpop.permute.xlu1 %217  ;;  %v58_v14 = vpop.permute.xlu0 %57  ;;  %919 = vmatprep.mubr.msk.f32.mxu1 %vm259_vm14, %v1176_v6 }
  0x92   :  { %vm100_vm15 = vcmp.eq.s32.totalorder %v1500_v2, %v58_v14  ;;  %vm101_vm0 = vcmp.eq.s32.totalorder %v1503_v3, %v58_v14  ;;  %vm261_vm2 = vcmp.eq.s32.totalorder %v1503_v3, %v218_v13  ;;  %vm260_vm5 = vcmp.eq.s32.totalorder %v1500_v2, %v218_v13 }
  0x93   :  { %889 = vmatprep.mubr.msk.f32.mxu0 %vm101_vm0, %v1176_v6 }
  0x94   :  { %890 = vmatmul.mubr.msk.f32.gmra.mrb[8].mxu0 %vm100_vm15, %v1176_v6  ;;  %920 = vmatmul.mubr.msk.f32.gmra.mrb[6].mxu1 %vm258_vm1, %v1176_v6 }
  0x95   :  { %v221_v15 = vpop.permute.xlu1 %220  ;;  %v61_v16 = vpop.permute.xlu0 %60  ;;  %921 = vmatprep.mubr.msk.f32.mxu1 %vm261_vm2, %v1176_v6 }
  0x96   :  { %vm102_vm3 = vcmp.eq.s32.totalorder %v1500_v2, %v61_v16  ;;  %vm103_vm4 = vcmp.eq.s32.totalorder %v1503_v3, %v61_v16  ;;  %vm263_vm6 = vcmp.eq.s32.totalorder %v1503_v3, %v221_v15  ;;  %vm262_vm9 = vcmp.eq.s32.totalorder %v1500_v2, %v221_v15 }
  0x97   :  { %891 = vmatprep.mubr.msk.f32.mxu0 %vm103_vm4, %v1176_v6 }
  0x98   :  { %892 = vmatmul.mubr.msk.f32.gmra.mrb[10].mxu0 %vm102_vm3, %v1176_v6  ;;  %922 = vmatmul.mubr.msk.f32.gmra.mrb[8].mxu1 %vm260_vm5, %v1176_v6 }
  0x99   :  { %v224_v17 = vpop.permute.xlu1 %223  ;;  %v64_v18 = vpop.permute.xlu0 %63  ;;  %923 = vmatprep.mubr.msk.f32.mxu1 %vm263_vm6, %v1176_v6 }
  0x9a   :  { %vm104_vm7 = vcmp.eq.s32.totalorder %v1500_v2, %v64_v18  ;;  %vm105_vm8 = vcmp.eq.s32.totalorder %v1503_v3, %v64_v18  ;;  %vm265_vm10 = vcmp.eq.s32.totalorder %v1503_v3, %v224_v17  ;;  %vm264_vm13 = vcmp.eq.s32.totalorder %v1500_v2, %v224_v17 }
  0x9b   :  { %893 = vmatprep.mubr.msk.f32.mxu0 %vm105_vm8, %v1176_v6 }
  0x9c   :  { %894 = vmatmul.mubr.msk.f32.gmra.mrb[12].mxu0 %vm104_vm7, %v1176_v6  ;;  %924 = vmatmul.mubr.msk.f32.gmra.mrb[10].mxu1 %vm262_vm9, %v1176_v6 }
  0x9d   :  { %v227_v19 = vpop.permute.xlu1 %226  ;;  %v67_v20 = vpop.permute.xlu0 %66  ;;  %925 = vmatprep.mubr.msk.f32.mxu1 %vm265_vm10, %v1176_v6 }
  0x9e   :  { %vm106_vm11 = vcmp.eq.s32.totalorder %v1500_v2, %v67_v20  ;;  %vm107_vm12 = vcmp.eq.s32.totalorder %v1503_v3, %v67_v20  ;;  %vm267_vm14 = vcmp.eq.s32.totalorder %v1503_v3, %v227_v19  ;;  %vm266_vm1 = vcmp.eq.s32.totalorder %v1500_v2, %v227_v19 }
  0x9f   :  { %895 = vmatprep.mubr.msk.f32.mxu0 %vm107_vm12, %v1176_v6 }
  0xa0   :  { %896 = vmatmul.mubr.msk.f32.gmra.mrb[14].mxu0 %vm106_vm11, %v1176_v6  ;;  %926 = vmatmul.mubr.msk.f32.gmra.mrb[12].mxu1 %vm264_vm13, %v1176_v6 }
  0xa1   :  { %v230_v21 = vpop.permute.xlu1 %229  ;;  %v70_v22 = vpop.permute.xlu0 %69  ;;  %927 = vmatprep.mubr.msk.f32.mxu1 %vm267_vm14, %v1176_v6 }
  0xa2   :  { %vm108_vm15 = vcmp.eq.s32.totalorder %v1500_v2, %v70_v22  ;;  %vm109_vm0 = vcmp.eq.s32.totalorder %v1503_v3, %v70_v22  ;;  %vm269_vm2 = vcmp.eq.s32.totalorder %v1503_v3, %v230_v21  ;;  %vm268_vm5 = vcmp.eq.s32.totalorder %v1500_v2, %v230_v21 }
  0xa3   :  { %897 = vmatprep.mubr.msk.f32.mxu0 %vm109_vm0, %v1176_v6 }
  0xa4   :  { %898 = vmatmul.mubr.msk.f32.gmra.mrb[16].mxu0 %vm108_vm15, %v1176_v6  ;;  %928 = vmatmul.mubr.msk.f32.gmra.mrb[14].mxu1 %vm266_vm1, %v1176_v6 }
  0xa5   :  { %v233_v23 = vpop.permute.xlu1 %232  ;;  %v73_v24 = vpop.permute.xlu0 %72  ;;  %929 = vmatprep.mubr.msk.f32.mxu1 %vm269_vm2, %v1176_v6 }
  0xa6   :  { %vm110_vm3 = vcmp.eq.s32.totalorder %v1500_v2, %v73_v24  ;;  %vm111_vm4 = vcmp.eq.s32.totalorder %v1503_v3, %v73_v24  ;;  %vm271_vm6 = vcmp.eq.s32.totalorder %v1503_v3, %v233_v23  ;;  %vm270_vm9 = vcmp.eq.s32.totalorder %v1500_v2, %v233_v23 }
  0xa7   :  { %899 = vmatprep.mubr.msk.f32.mxu0 %vm111_vm4, %v1176_v6 }
  0xa8   :  { %900 = vmatmul.mubr.msk.f32.gmra.mrb[18].mxu0 %vm110_vm3, %v1176_v6  ;;  %930 = vmatmul.mubr.msk.f32.gmra.mrb[16].mxu1 %vm268_vm5, %v1176_v6 }
  0xa9   :  { %v236_v25 = vpop.permute.xlu1 %235  ;;  %v76_v26 = vpop.permute.xlu0 %75  ;;  %931 = vmatprep.mubr.msk.f32.mxu1 %vm271_vm6, %v1176_v6 }
  0xaa   :  { %vm112_vm7 = vcmp.eq.s32.totalorder %v1500_v2, %v76_v26  ;;  %vm113_vm8 = vcmp.eq.s32.totalorder %v1503_v3, %v76_v26  ;;  %vm273_vm10 = vcmp.eq.s32.totalorder %v1503_v3, %v236_v25  ;;  %vm272_vm13 = vcmp.eq.s32.totalorder %v1500_v2, %v236_v25 }
  0xab   :  { %901 = vmatprep.mubr.msk.f32.mxu0 %vm113_vm8, %v1176_v6 }
  0xac   :  { %902 = vmatmul.mubr.msk.f32.gmra.mrb[20].mxu0 %vm112_vm7, %v1176_v6  ;;  %932 = vmatmul.mubr.msk.f32.gmra.mrb[18].mxu1 %vm270_vm9, %v1176_v6 }
  0xad   :  { %v239_v27 = vpop.permute.xlu1 %238  ;;  %v79_v28 = vpop.permute.xlu0 %78  ;;  %933 = vmatprep.mubr.msk.f32.mxu1 %vm273_vm10, %v1176_v6 }
  0xae   :  { %vm114_vm11 = vcmp.eq.s32.totalorder %v1500_v2, %v79_v28  ;;  %vm115_vm12 = vcmp.eq.s32.totalorder %v1503_v3, %v79_v28  ;;  %vm275_vm14 = vcmp.eq.s32.totalorder %v1503_v3, %v239_v27  ;;  %vm274_vm1 = vcmp.eq.s32.totalorder %v1500_v2, %v239_v27 }
  0xaf   :  { %903 = vmatprep.mubr.msk.f32.mxu0 %vm115_vm12, %v1176_v6 }
  0xb0   :  { %904 = vmatmul.mubr.msk.f32.gmra.mrb[22].mxu0 %vm114_vm11, %v1176_v6  ;;  %934 = vmatmul.mubr.msk.f32.gmra.mrb[20].mxu1 %vm272_vm13, %v1176_v6 }
  0xb1   :  { %v242_v29 = vpop.permute.xlu1 %241  ;;  %v82_v30 = vpop.permute.xlu0 %81  ;;  %935 = vmatprep.mubr.msk.f32.mxu1 %vm275_vm14, %v1176_v6 }
  0xb2   :  { %vm116_vm15 = vcmp.eq.s32.totalorder %v1500_v2, %v82_v30  ;;  %vm117_vm0 = vcmp.eq.s32.totalorder %v1503_v3, %v82_v30  ;;  %vm277_vm2 = vcmp.eq.s32.totalorder %v1503_v3, %v242_v29  ;;  %vm276_vm5 = vcmp.eq.s32.totalorder %v1500_v2, %v242_v29 }
  0xb3   :  { %905 = vmatprep.mubr.msk.f32.mxu0 %vm117_vm0, %v1176_v6  ;;  %vm796_vm0 = vcmask 7168  }
  0xb4   :  { %906 = vmatmul.mubr.msk.f32.gmra.mrb[24].mxu0 %vm116_vm15, %v1176_v6  ;;  %936 = vmatmul.mubr.msk.f32.gmra.mrb[22].mxu1 %vm274_vm1, %v1176_v6 }
  0xb5   :  { %v245_v31 = vpop.permute.xlu1 %244  ;;  %v85_v32 = vpop.permute.xlu0 %84  ;;  %937 = vmatprep.mubr.msk.f32.mxu1 %vm277_vm2, %v1176_v6 }
  0xb6   :  { %vm118_vm3 = vcmp.eq.s32.totalorder %v1500_v2, %v85_v32  ;;  %vm119_vm4 = vcmp.eq.s32.totalorder %v1503_v3, %v85_v32  ;;  %vm279_vm6 = vcmp.eq.s32.totalorder %v1503_v3, %v245_v31  ;;  %vm278_vm9 = vcmp.eq.s32.totalorder %v1500_v2, %v245_v31 }
  0xb7   :  { %907 = vmatprep.mubr.msk.f32.mxu0 %vm119_vm4, %v1176_v6 }
  0xb8   :  { %908 = vmatmul.mubr.msk.f32.gmra.mrb[26].mxu0 %vm118_vm3, %v1176_v6  ;;  %938 = vmatmul.mubr.msk.f32.gmra.mrb[24].mxu1 %vm276_vm5, %v1176_v6 }
  0xb9   :  { %v248_v33 = vpop.permute.xlu1 %247  ;;  %v88_v34 = vpop.permute.xlu0 %87  ;;  %939 = vmatprep.mubr.msk.f32.mxu1 %vm279_vm6, %v1176_v6 }
  0xba   :  { %vm120_vm7 = vcmp.eq.s32.totalorder %v1500_v2, %v88_v34  ;;  %vm121_vm8 = vcmp.eq.s32.totalorder %v1503_v3, %v88_v34  ;;  %vm281_vm10 = vcmp.eq.s32.totalorder %v1503_v3, %v248_v33  ;;  %vm280_vm13 = vcmp.eq.s32.totalorder %v1500_v2, %v248_v33 }
  0xbb   :  { %909 = vmatprep.mubr.msk.f32.mxu0 %vm121_vm8, %v1176_v6 }
  0xbc   :  { %910 = vmatmul.mubr.msk.f32.gmra.mrb[28].mxu0 %vm120_vm7, %v1176_v6  ;;  %940 = vmatmul.mubr.msk.f32.gmra.mrb[26].mxu1 %vm278_vm9, %v1176_v6 }
  0xbd   :  { %v251_v35 = vpop.permute.xlu1 %250  ;;  %v91_v36 = vpop.permute.xlu0 %90  ;;  %941 = vmatprep.mubr.msk.f32.mxu1 %vm281_vm10, %v1176_v6 }
  0xbe   :  { %vm122_vm11 = vcmp.eq.s32.totalorder %v1500_v2, %v91_v36  ;;  %vm123_vm12 = vcmp.eq.s32.totalorder %v1503_v3, %v91_v36  ;;  %vm283_vm14 = vcmp.eq.s32.totalorder %v1503_v3, %v251_v35  ;;  %vm282_vm15 = vcmp.eq.s32.totalorder %v1500_v2, %v251_v35 }
  0xbf   :  { %911 = vmatprep.mubr.msk.f32.mxu0 %vm123_vm12, %v1176_v6 }
  0xc0   :  { %912 = vmatmul.mubr.msk.f32.gmra.mrb[30].mxu0 %vm122_vm11, %v1176_v6  ;;  %942 = vmatmul.mubr.msk.f32.gmra.mrb[28].mxu1 %vm280_vm13, %v1176_v6 }
  0xc1   :  { %943 = vmatprep.mubr.msk.f32.mxu1 %vm283_vm14, %v1176_v6 }
  0xc4   :  { %944 = vmatmul.mubr.msk.f32.gmra.mrb[30].mxu1 %vm282_vm15, %v1176_v6 }
 0x157   :  { %v979_v38 = vpop.f32.mrb[0].mxu0 }
 0x158   :  { %v980_v39 = vpop.f32.mrb[1].mxu0 }
 0x159   :  { %v981_v40 = vadd.f32 %v980_v39, %v979_v38 }
 0x15b   :  { %v982_v41 = vpop.f32.mrb[2].mxu0  ;;  %v1059_v42 = vpop.f32.mrb[0].mxu1 }
 0x15c   :  { %v983_v43 = vpop.f32.mrb[3].mxu0  ;;  %v1060_v44 = vpop.f32.mrb[1].mxu1 }
 0x15d   :  { %v984_v45 = vadd.f32 %v983_v43, %v982_v41  ;;  %v1061_v46 = vadd.f32 %v1060_v44, %v1059_v42 }
 0x15f   :  { %v702_v48 = vmul.f32 %v1061_v46, %v981_v40  ;;  %v985_v49 = vpop.f32.mrb[4].mxu0  ;;  %v1062_v50 = vpop.f32.mrb[2].mxu1 }
 0x160   :  { %v986_v51 = vpop.f32.mrb[5].mxu0  ;;  %v1063_v52 = vpop.f32.mrb[3].mxu1 }
 0x161   :  { %v987_v53 = vadd.f32 %v986_v51, %v985_v49  ;;  %v1064_v54 = vadd.f32 %v1063_v52, %v1062_v50  ;;  %v725_v55 = vmul.f32 %v1639_v47, %v702_v48 }
 0x163   :  { %v703_v56 = vmul.f32 %v1064_v54, %v984_v45  ;;  %v988_v57 = vpop.f32.mrb[6].mxu0  ;;  %v1065_v58 = vpop.f32.mrb[4].mxu1  ;;  %741 = vadd.xlane.f32.xlu0 %v725_v55 }
 0x164   :  { %v989_v59 = vpop.f32.mrb[7].mxu0  ;;  %v1066_v60 = vpop.f32.mrb[5].mxu1 }
 0x165   :  { %v990_v61 = vadd.f32 %v989_v59, %v988_v57  ;;  %v1067_v62 = vadd.f32 %v1066_v60, %v1065_v58  ;;  %v726_v63 = vmul.f32 %v1639_v47, %v703_v56 }
 0x167   :  { %v704_v0 = vmul.f32 %v1067_v62, %v987_v53  ;;  %v991_v1 = vpop.f32.mrb[8].mxu0  ;;  %v1068_v2 = vpop.f32.mrb[6].mxu1  ;;  %743 = vadd.xlane.f32.xlu1 %v726_v63 }
 0x168   :  { %v992_v3 = vpop.f32.mrb[9].mxu0  ;;  %v1069_v4 = vpop.f32.mrb[7].mxu1 }
 0x169   :  { %v993_v5 = vadd.f32 %v992_v3, %v991_v1  ;;  %v1070_v6 = vadd.f32 %v1069_v4, %v1068_v2  ;;  %v727_v7 = vmul.f32 %v1639_v47, %v704_v0 }
 0x16b   :  { %v705_v8 = vmul.f32 %v1070_v6, %v990_v61  ;;  %v994_v9 = vpop.f32.mrb[10].mxu0  ;;  %v1071_v10 = vpop.f32.mrb[8].mxu1  ;;  %745 = vadd.xlane.f32.xlu0 %v727_v7 }
 0x16c   :  { %v995_v11 = vpop.f32.mrb[11].mxu0  ;;  %v1072_v12 = vpop.f32.mrb[9].mxu1 }
 0x16d   :  { %v996_v13 = vadd.f32 %v995_v11, %v994_v9  ;;  %v1073_v14 = vadd.f32 %v1072_v12, %v1071_v10  ;;  %v728_v15 = vmul.f32 %v1639_v47, %v705_v8 }
 0x16f   :  { %v706_v16 = vmul.f32 %v1073_v14, %v993_v5  ;;  %v997_v17 = vpop.f32.mrb[12].mxu0  ;;  %v1074_v18 = vpop.f32.mrb[10].mxu1  ;;  %747 = vadd.xlane.f32.xlu0 %v728_v15 }
 0x170   :  { %v998_v19 = vpop.f32.mrb[13].mxu0  ;;  %v1075_v20 = vpop.f32.mrb[11].mxu1 }
 0x171   :  { %v999_v21 = vadd.f32 %v998_v19, %v997_v17  ;;  %v1076_v22 = vadd.f32 %v1075_v20, %v1074_v18  ;;  %v729_v23 = vmul.f32 %v1639_v47, %v706_v16 }
 0x173   :  { %v707_v24 = vmul.f32 %v1076_v22, %v996_v13  ;;  %v1000_v25 = vpop.f32.mrb[14].mxu0  ;;  %v1077_v26 = vpop.f32.mrb[12].mxu1  ;;  %749 = vadd.xlane.f32.xlu1 %v729_v23 }
 0x174   :  { %v1001_v27 = vpop.f32.mrb[15].mxu0  ;;  %v1078_v28 = vpop.f32.mrb[13].mxu1 }
 0x175   :  { %v1002_v29 = vadd.f32 %v1001_v27, %v1000_v25  ;;  %v1079_v30 = vadd.f32 %v1078_v28, %v1077_v26  ;;  %v730_v31 = vmul.f32 %v1639_v47, %v707_v24 }
 0x177   :  { %v708_v32 = vmul.f32 %v1079_v30, %v999_v21  ;;  %v1003_v33 = vpop.f32.mrb[16].mxu0  ;;  %v1080_v34 = vpop.f32.mrb[14].mxu1  ;;  %751 = vadd.xlane.f32.xlu0 %v730_v31 }
 0x178   :  { %v1004_v35 = vpop.f32.mrb[17].mxu0  ;;  %v1081_v36 = vpop.f32.mrb[15].mxu1 }
 0x179   :  { %v1005_v37 = vadd.f32 %v1004_v35, %v1003_v33  ;;  %v1082_v38 = vadd.f32 %v1081_v36, %v1080_v34  ;;  %v731_v39 = vmul.f32 %v1639_v47, %v708_v32 }
 0x17b   :  { %v709_v40 = vmul.f32 %v1082_v38, %v1002_v29  ;;  %v1006_v41 = vpop.f32.mrb[18].mxu0  ;;  %v1083_v42 = vpop.f32.mrb[16].mxu1  ;;  %753 = vadd.xlane.f32.xlu1 %v731_v39 }
 0x17c   :  { %v1007_v43 = vpop.f32.mrb[19].mxu0  ;;  %v1084_v44 = vpop.f32.mrb[17].mxu1 }
 0x17d   :  { %v1008_v45 = vadd.f32 %v1007_v43, %v1006_v41  ;;  %v1085_v46 = vadd.f32 %v1084_v44, %v1083_v42  ;;  %v732_v48 = vmul.f32 %v1639_v47, %v709_v40  ;;  %v946_v40 = vld [vmem:[#allocation2] ss:$0 sm:$0xff] }
 0x17f   :  { %v710_v49 = vmul.f32 %v1085_v46, %v1005_v37  ;;  %v1009_v50 = vpop.f32.mrb[20].mxu0  ;;  %v1086_v51 = vpop.f32.mrb[18].mxu1  ;;  %755 = vadd.xlane.f32.xlu0 %v732_v48 }
 0x180   :  { %v1010_v52 = vpop.f32.mrb[21].mxu0  ;;  %v1087_v53 = vpop.f32.mrb[19].mxu1 }
 0x181   :  { %v1011_v54 = vadd.f32 %v1010_v52, %v1009_v50  ;;  %v1088_v55 = vadd.f32 %v1087_v53, %v1086_v51  ;;  %v733_v56 = vmul.f32 %v1639_v47, %v710_v49 }
 0x183   :  { %v711_v57 = vmul.f32 %v1088_v55, %v1008_v45  ;;  %v1012_v58 = vpop.f32.mrb[22].mxu0  ;;  %v1089_v59 = vpop.f32.mrb[20].mxu1  ;;  %757 = vadd.xlane.f32.xlu1 %v733_v56 }
 0x184   :  { %v1013_v60 = vpop.f32.mrb[23].mxu0  ;;  %v1090_v61 = vpop.f32.mrb[21].mxu1 }
 0x185   :  { %v1014_v62 = vadd.f32 %v1013_v60, %v1012_v58  ;;  %v1091_v63 = vadd.f32 %v1090_v61, %v1089_v59  ;;  %v734_v0 = vmul.f32 %v1639_v47, %v711_v57 }
 0x187   :  { %v712_v1 = vmul.f32 %v1091_v63, %v1011_v54  ;;  %v1015_v2 = vpop.f32.mrb[24].mxu0  ;;  %v1092_v3 = vpop.f32.mrb[22].mxu1  ;;  %759 = vadd.xlane.f32.xlu0 %v734_v0 }
 0x188   :  { %v1016_v4 = vpop.f32.mrb[25].mxu0  ;;  %v1093_v5 = vpop.f32.mrb[23].mxu1 }
 0x189   :  { %v1017_v6 = vadd.f32 %v1016_v4, %v1015_v2  ;;  %v1094_v7 = vadd.f32 %v1093_v5, %v1092_v3  ;;  %v735_v8 = vmul.f32 %v1639_v47, %v712_v1 }
 0x18b   :  { %v713_v9 = vmul.f32 %v1094_v7, %v1014_v62  ;;  %v1018_v10 = vpop.f32.mrb[26].mxu0  ;;  %v1095_v11 = vpop.f32.mrb[24].mxu1  ;;  %761 = vadd.xlane.f32.xlu1 %v735_v8 }
 0x18c   :  { %v1019_v12 = vpop.f32.mrb[27].mxu0  ;;  %v1096_v13 = vpop.f32.mrb[25].mxu1 }
 0x18d   :  { %v1020_v14 = vadd.f32 %v1019_v12, %v1018_v10  ;;  %v1097_v15 = vadd.f32 %v1096_v13, %v1095_v11  ;;  %v736_v16 = vmul.f32 %v1639_v47, %v713_v9 }
 0x18f   :  { %v714_v17 = vmul.f32 %v1097_v15, %v1017_v6  ;;  %v1021_v18 = vpop.f32.mrb[28].mxu0  ;;  %v1098_v19 = vpop.f32.mrb[26].mxu1  ;;  %763 = vadd.xlane.f32.xlu0 %v736_v16 }
 0x190   :  { %v1022_v20 = vpop.f32.mrb[29].mxu0  ;;  %v1099_v21 = vpop.f32.mrb[27].mxu1 }
 0x191   :  { %v1023_v22 = vadd.f32 %v1022_v20, %v1021_v18  ;;  %v1100_v23 = vadd.f32 %v1099_v21, %v1098_v19  ;;  %v737_v24 = vmul.f32 %v1639_v47, %v714_v17 }
 0x193   :  { %v715_v25 = vmul.f32 %v1100_v23, %v1020_v14  ;;  %v1024_v26 = vpop.f32.mrb[30].mxu0  ;;  %v1101_v27 = vpop.f32.mrb[28].mxu1  ;;  %765 = vadd.xlane.f32.xlu1 %v737_v24 }
 0x194   :  { %v1025_v28 = vpop.f32.mrb[31].mxu0  ;;  %v1102_v29 = vpop.f32.mrb[29].mxu1 }
 0x195   :  { %v1026_v30 = vadd.f32 %v1025_v28, %v1024_v26  ;;  %v1103_v31 = vadd.f32 %v1102_v29, %v1101_v27  ;;  %v738_v32 = vmul.f32 %v1639_v47, %v715_v25 }
 0x197   :  { %v716_v33 = vmul.f32 %v1103_v31, %v1023_v22  ;;  %v1104_v34 = vpop.f32.mrb[30].mxu1  ;;  %767 = vadd.xlane.f32.xlu0 %v738_v32 }
 0x198   :  { %v1105_v35 = vpop.f32.mrb[31].mxu1 }
 0x199   :  { %v1106_v36 = vadd.f32 %v1105_v35, %v1104_v34  ;;  %v739_v37 = vmul.f32 %v1639_v47, %v716_v33 }
 0x19b   :  { %v717_v38 = vmul.f32 %v1106_v36, %v1026_v30  ;;  %769 = vadd.xlane.f32.xlu1 %v739_v37 }
 0x19d   :  { %v740_v39 = vmul.f32 %v1639_v47, %v717_v38 }
 0x19f   :  { %771 = vadd.xlane.f32.xlu0 %v740_v39 }
 0x1f0   :  { %v742_v41 = vpop.xlane.xlu0 %741 }
 0x1f1   :  { %v780_v42 = vadd.f32 %v946_v40, %v742_v41 }
 0x1f3   :  { %797 = vst.msk [vmem:[%s1727_s6] sm:$0xff] %vm796_vm0, %v780_v42 }
 0x1f4   :  { %v744_v43 = vpop.xlane.xlu1 %743 }
 0x1f5   :  { %v781_v44 = vadd.f32 %v946_v40, %v744_v43 }
 0x1f7   :  { %798 = vst.msk [vmem:[%s1727_s6 + $0x8] sm:$0xff] %vm796_vm0, %v781_v44 }
 0x1f8   :  { %v746_v45 = vpop.xlane.xlu0 %745 }
 0x1f9   :  { %v782_v46 = vadd.f32 %v946_v40, %v746_v45 }
 0x1fb   :  { %799 = vst.msk [vmem:[%s1727_s6 + $0x10] sm:$0xff] %vm796_vm0, %v782_v46 }
 0x1fc   :  { %v748_v47 = vpop.xlane.xlu0 %747 }
 0x1fd   :  { %v783_v48 = vadd.f32 %v946_v40, %v748_v47 }
 0x1ff   :  { %800 = vst.msk [vmem:[%s1727_s6 + $0x18] sm:$0xff] %vm796_vm0, %v783_v48 }
 0x200   :  { %v750_v49 = vpop.xlane.xlu1 %749 }
 0x201   :  { %v784_v50 = vadd.f32 %v946_v40, %v750_v49 }
 0x203   :  { %801 = vst.msk [vmem:[%s1727_s6 + $0x20] sm:$0xff] %vm796_vm0, %v784_v50 }
 0x204   :  { %v752_v51 = vpop.xlane.xlu0 %751 }
 0x205   :  { %v785_v52 = vadd.f32 %v946_v40, %v752_v51 }
 0x207   :  { %802 = vst.msk [vmem:[%s1727_s6 + $0x28] sm:$0xff] %vm796_vm0, %v785_v52 }
 0x208   :  { %v754_v53 = vpop.xlane.xlu1 %753 }
 0x209   :  { %v786_v54 = vadd.f32 %v946_v40, %v754_v53 }
 0x20b   :  { %803 = vst.msk [vmem:[%s1727_s6 + $0x30] sm:$0xff] %vm796_vm0, %v786_v54 }
 0x20c   :  { %v756_v55 = vpop.xlane.xlu0 %755 }
 0x20d   :  { %v787_v56 = vadd.f32 %v946_v40, %v756_v55 }
 0x20f   :  { %804 = vst.msk [vmem:[%s1727_s6 + $0x38] sm:$0xff] %vm796_vm0, %v787_v56 }
 0x210   :  { %v758_v57 = vpop.xlane.xlu1 %757 }
 0x211   :  { %v788_v58 = vadd.f32 %v946_v40, %v758_v57 }
 0x213   :  { %805 = vst.msk [vmem:[%s1727_s6 + $0x40] sm:$0xff] %vm796_vm0, %v788_v58 }
 0x214   :  { %v760_v59 = vpop.xlane.xlu0 %759 }
 0x215   :  { %v789_v60 = vadd.f32 %v946_v40, %v760_v59 }
 0x217   :  { %806 = vst.msk [vmem:[%s1727_s6 + $0x48] sm:$0xff] %vm796_vm0, %v789_v60 }
 0x218   :  { %v762_v61 = vpop.xlane.xlu1 %761 }
 0x219   :  { %v790_v62 = vadd.f32 %v946_v40, %v762_v61 }
 0x21b   :  { %807 = vst.msk [vmem:[%s1727_s6 + $0x50] sm:$0xff] %vm796_vm0, %v790_v62 }
 0x21c   :  { %v764_v63 = vpop.xlane.xlu0 %763 }
 0x21d   :  { %v791_v0 = vadd.f32 %v946_v40, %v764_v63 }
 0x21f   :  { %808 = vst.msk [vmem:[%s1727_s6 + $0x58] sm:$0xff] %vm796_vm0, %v791_v0 }
 0x220   :  { %v766_v1 = vpop.xlane.xlu1 %765 }
 0x221   :  { %v792_v2 = vadd.f32 %v946_v40, %v766_v1 }
 0x223   :  { %809 = vst.msk [vmem:[%s1727_s6 + $0x60] sm:$0xff] %vm796_vm0, %v792_v2 }
 0x224   :  { %v768_v3 = vpop.xlane.xlu0 %767 }
 0x225   :  { %v793_v4 = vadd.f32 %v946_v40, %v768_v3 }
 0x227   :  { %810 = vst.msk [vmem:[%s1727_s6 + $0x68] sm:$0xff] %vm796_vm0, %v793_v4 }
 0x228   :  { %v770_v5 = vpop.xlane.xlu1 %769 }
 0x229   :  { %v794_v6 = vadd.f32 %v946_v40, %v770_v5 }
 0x22b   :  { %811 = vst.msk [vmem:[%s1727_s6 + $0x70] sm:$0xff] %vm796_vm0, %v794_v6 }
 0x22c   :  { %v772_v7 = vpop.xlane.xlu0 %771 }
 0x22d   :  { %v795_v8 = vadd.f32 %v946_v40, %v772_v7 }
 0x22f   :  { %812 = vst.msk [vmem:[%s1727_s6 + $0x78] sm:$0xff] %vm796_vm0, %v795_v8 }

</bundles_post_ra>
